<compile_context>
chip_gen: v6e
topology: v6e:2x2x1
jax: 0.10.0
libtpu: 0.0.40
codegen_flags: <defaults>
</compile_context>

<pallas_src>
import functools

import jax
import jax.numpy as jnp
from jax.experimental import pallas as pl
from jax.experimental.pallas import tpu as pltpu

EPS = 1e-5                 # nn.LayerNorm default eps
MM_DTYPE = jnp.bfloat16    # MXU-native operand dtype; accumulation stays f32


# ----------------------------- in-kernel helpers -----------------------------

def _layer_norm(x, gamma, beta):
    mu = jnp.mean(x, axis=-1, keepdims=True)
    var = jnp.mean((x - mu) ** 2, axis=-1, keepdims=True)
    return (x - mu) * jax.lax.rsqrt(var + EPS) * gamma + beta


def _additive_attention(h3, aw, ab, aq_row):
    """h3: (G, S, F) -> (G, F): softmax_S(tanh(h W + b) . q) weighted sum of h."""
    G, S, Fn = h3.shape
    h2 = h3.reshape(G * S, Fn)
    att = jnp.tanh(jnp.dot(h2.astype(MM_DTYPE), aw,
                           preferred_element_type=jnp.float32) + ab)     # (G*S, Q)
    att3 = att.reshape(G, S, -1)
    # (S,Q)@(Q,1) matmul -> VPU broadcast-multiply + lane reduce (MXU stays free).
    scores = jnp.sum(att3 * aq_row, axis=-1, keepdims=True)              # (G, S, 1)
    m = jnp.max(scores, axis=1, keepdims=True)
    e = jnp.exp(scores - m)
    w = e / jnp.sum(e, axis=1, keepdims=True)                            # (G, S, 1)
    return jnp.sum(w * h3, axis=1)                                       # (G, F)


# ----------------------------- kernel bodies -----------------------------

def news_encoder_kernel(x_ref, cw_ref, cb_ref, aw_ref, ab_ref, aq_ref,
                        g_ref, b_ref, out_ref):
    # x_ref : (Nb, T, D) f32 block of Nb news items
    # cw_ref: (Wsz*D, F) bf16 im2col conv weight, cb_ref: (1, F)
    # aw_ref: (F, Q) bf16, ab_ref: (1, Q), aq_ref: (1, Q)
    # g_ref/b_ref: (1, F), out_ref: (Nb, F)
    x = x_ref[...]
    Nb, T, D = x.shape
    WD, Fn = cw_ref.shape
    Wsz = WD // D
    pad = (Wsz - 1) // 2                      # PyTorch 'same'-style for odd windows

    # Window padding in-kernel (no HBM copy of the embeddings in the wrapper).
    if pad > 0:
        zeros = jnp.zeros((Nb, pad, D), x.dtype)
        xp = jnp.concatenate([zeros, x, zeros], axis=1)      # (Nb, T+2p, D)
    else:
        xp = x

    # im2col: (Nb, T, Wsz*D) -> (Nb*T, Wsz*D); single deep matmul on the MXU.
    cols = jnp.concatenate([xp[:, w:w + T, :] for w in range(Wsz)], axis=-1)
    cols2 = cols.reshape(Nb * T, WD)
    h2 = jnp.dot(cols2.astype(MM_DTYPE), cw_ref[...],
                 preferred_element_type=jnp.float32) + cb_ref[...]
    h2 = jnp.maximum(h2, 0.0)                                 # relu -> (Nb*T, F)

    rep = _additive_attention(h2.reshape(Nb, T, Fn),
                              aw_ref[...], ab_ref[...], aq_ref[...])      # (Nb, F)
    out_ref[...] = _layer_norm(rep, g_ref[...], b_ref[...]).astype(out_ref.dtype)


def linear_kernel(x_ref, w_ref, b_ref, o_ref):
    # x_ref: (bm, F) f32, w_ref: (F, K) bf16, b_ref: (1, K), o_ref: (bm, K)
    o_ref[...] = (jnp.dot(x_ref[...].astype(MM_DTYPE), w_ref[...],
                          preferred_element_type=jnp.float32)
                  + b_ref[...]).astype(o_ref.dtype)


# ----------------------------- pallas_call wrappers -----------------------------

def _bcast_spec(shape):
    # Whole-array block, same for every grid step (weights / biases).
    return pl.BlockSpec(shape, lambda *_: (0,) * len(shape))


def run_news_encoder(x, p, *, block_items=128):
    """x: (N, T, D) f32 -> (N, F).  conv + relu + additive attention + LayerNorm."""
    N, T, D = x.shape
    WD, F = p["conv_w2"].shape
    Q = p["att_w"].shape[1]

    nb = min(block_items, N)
    n_blocks = pl.cdiv(N, nb)
    Np = n_blocks * nb
    if Np != N:
        # Ragged tail: zero-pad the item axis; extra outputs are sliced off.
        x = jnp.pad(x, ((0, Np - N), (0, 0), (0, 0)))

    out = pl.pallas_call(
        news_encoder_kernel,
        out_shape=jax.ShapeDtypeStruct((Np, F), jnp.float32),
        grid=(n_blocks,),
        in_specs=[
            pl.BlockSpec((nb, T, D), lambda n: (n, 0, 0)),
            _bcast_spec((WD, F)), _bcast_spec((1, F)),
            _bcast_spec((F, Q)), _bcast_spec((1, Q)), _bcast_spec((1, Q)),
            _bcast_spec((1, F)), _bcast_spec((1, F)),
        ],
        out_specs=pl.BlockSpec((nb, F), lambda n: (n, 0)),
        compiler_params=pltpu.CompilerParams(dimension_semantics=("parallel",)),
    )(x, p["conv_w2"], p["conv_b"], p["att_w"], p["att_b"], p["att_q_row"],
      p["ln_g"], p["ln_b"])
    return out[:N]


def run_linear(x, w, b, *, block_m=256):
    """Tiled (M-blocked) linear: x (N, F) f32 @ w (F, K) bf16 + b -> (N, K) f32."""
    N, F = x.shape
    K = w.shape[1]
    bm = min(block_m, N)
    n_blocks = pl.cdiv(N, bm)
    Np = n_blocks * bm
    if Np != N:
        x = jnp.pad(x, ((0, Np - N), (0, 0)))
    out = pl.pallas_call(
        linear_kernel,
        out_shape=jax.ShapeDtypeStruct((Np, K), jnp.float32),
        grid=(n_blocks,),
        in_specs=[pl.BlockSpec((bm, F), lambda i: (i, 0)),
                  _bcast_spec((F, K)), _bcast_spec((1, K))],
        out_specs=pl.BlockSpec((bm, K), lambda i: (i, 0)),
        compiler_params=pltpu.CompilerParams(dimension_semantics=("parallel",)),
    )(x, w, b)
    return out[:N]


def user_attention_pool(h, p):
    """h: (U, C, F) -> (U, F).  user_attention + norm2.
    Tiny per-user pooling kept in plain XLA: a Pallas launch costs more than this
    compute at these shapes (perf-review recommendation)."""
    att = jnp.tanh(jnp.einsum("ucf,fq->ucq", h, p["att_w"]) + p["att_b"])
    scores = jnp.einsum("ucq,q->uc", att, p["att_q"][:, 0])
    w = jax.nn.softmax(scores, axis=-1)
    rep = jnp.einsum("uc,ucf->uf", w, h)
    mu = jnp.mean(rep, axis=-1, keepdims=True)
    var = jnp.mean((rep - mu) ** 2, axis=-1, keepdims=True)
    return (rep - mu) * jax.lax.rsqrt(var + EPS) * p["ln_g"] + p["ln_b"]


# ----------------------------- full TANR forward -----------------------------

def _prep_encoder_params(p):
    """Fold conv weight into im2col layout and pre-cast matmul weights to bf16."""
    Wsz, D, F = p["conv_w"].shape
    return dict(
        conv_w2=p["conv_w"].reshape(Wsz * D, F).astype(MM_DTYPE),
        conv_b=p["conv_b"],
        att_w=p["att_w"].astype(MM_DTYPE),
        att_b=p["att_b"],
        att_q_row=p["att_q"].reshape(1, -1),
        ln_g=p["ln_g"],
        ln_b=p["ln_b"],
    )


def tanr_forward(params, cand_emb, clicked_emb, cand_cat, clicked_cat, *,
                 num_category, block_items=128):
    B, S, T, D = cand_emb.shape
    U, C, _, _ = clicked_emb.shape
    F = params["cand_enc"]["conv_w"].shape[2]

    cand_p = _prep_encoder_params(params["cand_enc"])
    user_p = _prep_encoder_params(params["user_news_enc"])

    # candidate news (loop over sample_num in PyTorch) -> new_rep (B, S, F)
    new_rep = run_news_encoder(cand_emb.reshape(B * S, T, D), cand_p,
                               block_items=block_items).reshape(B, S, F)

    # user-clicked news -> clicked_new_rep (U, C, F), user_rep (U, F)
    clicked_flat = run_news_encoder(clicked_emb.reshape(U * C, T, D), user_p,
                                    block_items=block_items)              # (U*C, F)
    clicked_new_rep = clicked_flat.reshape(U, C, F)
    user_rep = user_attention_pool(clicked_new_rep, params["user_att"])   # (U, F)

    # topic classification head
    new_rep_total = jnp.concatenate([new_rep.reshape(B * S, F), clicked_flat],
                                    axis=0)
    category_pred = run_linear(new_rep_total,
                               params["topic_w"].astype(MM_DTYPE),
                               params["topic_b"])
    category_index = jnp.concatenate(
        [cand_cat.reshape(-1), clicked_cat.reshape(-1)], axis=0).astype(jnp.int32)

    # weighted cross entropy (class-0 weight = 0), mean reduction as in PyTorch.
    class_weight = jnp.ones((num_category,), jnp.float32).at[0].set(0.0)
    logp = jax.nn.log_softmax(category_pred, axis=-1)
    nll = -jnp.take_along_axis(logp, category_index[:, None], axis=-1)[:, 0]
    wts = class_weight[category_index]
    topic_loss = jnp.sum(wts * nll) / jnp.sum(wts)

    # sorce = sum(new_rep * user_rep, dim=2)   (requires B == user_clicked_new_num)
    score = jnp.sum(new_rep * user_rep[:, None, :], axis=2)               # (B, S)
    return score, topic_loss


# ----------------------------- parameters -----------------------------

def init_params(key, D, F, Wsz, Q, K):
    ks = jax.random.split(key, 4)

    def enc_params(k):
        kk = jax.random.split(k, 5)
        return dict(
            conv_w=0.1 * jax.random.normal(kk[0], (Wsz, D, F), jnp.float32),
            conv_b=0.1 * jax.random.normal(kk[1], (1, F), jnp.float32),
            att_w=0.1 * jax.random.normal(kk[2], (F, Q), jnp.float32),
            att_b=0.1 * jax.random.normal(kk[3], (1, Q), jnp.float32),
            att_q=jax.random.uniform(kk[4], (Q, 1), jnp.float32, -0.1, 0.1),
            ln_g=jnp.ones((1, F), jnp.float32),
            ln_b=jnp.zeros((1, F), jnp.float32),
        )

    def att_params(k):
        kk = jax.random.split(k, 3)
        return dict(
            att_w=0.1 * jax.random.normal(kk[0], (F, Q), jnp.float32),
            att_b=0.1 * jax.random.normal(kk[1], (1, Q), jnp.float32),
            att_q=jax.random.uniform(kk[2], (Q, 1), jnp.float32, -0.1, 0.1),
            ln_g=jnp.ones((1, F), jnp.float32),
            ln_b=jnp.zeros((1, F), jnp.float32),
        )

    kt = jax.random.split(ks[3], 2)
    return dict(
        cand_enc=enc_params(ks[0]),          # TANR.new_encoder (+ its norm1)
        user_news_enc=enc_params(ks[1]),     # user_encoder.new_encoder (+ norm1)
        user_att=att_params(ks[2]),          # user_encoder.user_attention + norm2
        topic_w=0.1 * jax.random.normal(kt[0], (F, K), jnp.float32),
        topic_b=jnp.zeros((1, K), jnp.float32),
    )


# ----------------------------- demo -----------------------------

if __name__ == "__main__":
    # word_dim, title_words, window, filters, query_dim, categories
    D, T, W, F, Q, K = 32, 8, 3, 64, 32, 16
    B, S = 8, 4   # candidate batches == user_clicked_new_num, sample_num
    U, C = 8, 6   # users (must equal B for the score broadcast), clicked per user

    key = jax.random.PRNGKey(0)
    k1, k2, k3, k4, kp = jax.random.split(key, 5)
    cand_emb = jax.random.normal(k1, (B, S, T, D), jnp.float32)
    clicked_emb = jax.random.normal(k2, (U, C, T, D), jnp.float32)
    cand_cat = jax.random.randint(k3, (B, S), 0, K)
    clicked_cat = jax.random.randint(k4, (U, C), 0, K)

    params = init_params(kp, D, F, W, Q, K)

    # block_items=16 exercises a multi-step parallel grid even at demo scale;
    # production sizes should use 128-256 items per block (Nb*T aligned to
    # 128 on v5e / 256 on v6e-v7x, and >=2 grid blocks on v7x for both cores).
    fwd = jax.jit(functools.partial(tanr_forward, num_category=K, block_items=16))
    score, topic_loss = fwd(params, cand_emb, clicked_emb, cand_cat, clicked_cat)
    jax.block_until_ready((score, topic_loss))

    assert score.shape == (B, S)
    assert topic_loss.shape == ()
    print("KERNEL_OK")
</pallas_src>

<mosaic_0001>
module attributes {stable_mosaic.version = 11 : i64} {
  func.func @news_encoder_kernel(%arg0: i32, %arg1: memref<16x8x32xf32, #tpu.memory_space<vmem>>, %arg2: memref<96x64xbf16, #tpu.memory_space<vmem>>, %arg3: memref<1x64xf32, #tpu.memory_space<vmem>>, %arg4: memref<64x32xbf16, #tpu.memory_space<vmem>>, %arg5: memref<1x32xf32, #tpu.memory_space<vmem>>, %arg6: memref<1x32xf32, #tpu.memory_space<vmem>>, %arg7: memref<1x64xf32, #tpu.memory_space<vmem>>, %arg8: memref<1x64xf32, #tpu.memory_space<vmem>>, %arg9: memref<16x64xf32, #tpu.memory_space<vmem>>) attributes {dimension_semantics = [#tpu.dimension_semantics<parallel>], iteration_bounds = array<i64: 3>, scalar_prefetch = 0 : i64, scratch_operands = 0 : i64, tpu.core_type = #tpu.core_type<tc>, window_params = [{transform_indices = @transform_0, window_bounds = array<i64: 16, 8, 32>}, {pipeline_mode = #tpu.pipeline_mode<synchronous>, transform_indices = @transform_1, window_bounds = array<i64: 96, 64>}, {pipeline_mode = #tpu.pipeline_mode<synchronous>, transform_indices = @transform_2, window_bounds = array<i64: 1, 64>}, {pipeline_mode = #tpu.pipeline_mode<synchronous>, transform_indices = @transform_3, window_bounds = array<i64: 64, 32>}, {pipeline_mode = #tpu.pipeline_mode<synchronous>, transform_indices = @transform_4, window_bounds = array<i64: 1, 32>}, {pipeline_mode = #tpu.pipeline_mode<synchronous>, transform_indices = @transform_5, window_bounds = array<i64: 1, 32>}, {pipeline_mode = #tpu.pipeline_mode<synchronous>, transform_indices = @transform_6, window_bounds = array<i64: 1, 64>}, {pipeline_mode = #tpu.pipeline_mode<synchronous>, transform_indices = @transform_7, window_bounds = array<i64: 1, 64>}, {transform_indices = @transform_8, window_bounds = array<i64: 16, 64>}]} {
    %c0 = arith.constant 0 : index
    %c0_0 = arith.constant 0 : index
    %c0_1 = arith.constant 0 : index
    %0 = vector.load %arg1[%c0, %c0_0, %c0_1] : memref<16x8x32xf32, #tpu.memory_space<vmem>>, vector<16x8x32xf32>
    %cst = arith.constant 0.000000e+00 : f32
    %1 = vector.broadcast %cst : f32 to vector<16x1x32xf32>
    %2 = tpu.concatenate %1, %0, %1 in 1 : vector<16x1x32xf32>, vector<16x8x32xf32>, vector<16x1x32xf32> -> vector<16x10x32xf32>
    %3 = vector.extract_strided_slice %2 {offsets = [0, 0, 0], sizes = [16, 8, 32], strides = [1, 1, 1]} : vector<16x10x32xf32> to vector<16x8x32xf32>
    %4 = vector.extract_strided_slice %2 {offsets = [0, 1, 0], sizes = [16, 8, 32], strides = [1, 1, 1]} : vector<16x10x32xf32> to vector<16x8x32xf32>
    %5 = vector.extract_strided_slice %2 {offsets = [0, 2, 0], sizes = [16, 8, 32], strides = [1, 1, 1]} : vector<16x10x32xf32> to vector<16x8x32xf32>
    %6 = tpu.concatenate %3, %4, %5 in 2 : vector<16x8x32xf32>, vector<16x8x32xf32>, vector<16x8x32xf32> -> vector<16x8x96xf32>
    %7 = vector.shape_cast %6 : vector<16x8x96xf32> to vector<128x96xf32>
    %8 = arith.truncf %7 : vector<128x96xf32> to vector<128x96xbf16>
    %c0_2 = arith.constant 0 : index
    %c0_3 = arith.constant 0 : index
    %9 = vector.load %arg2[%c0_2, %c0_3] : memref<96x64xbf16, #tpu.memory_space<vmem>>, vector<96x64xbf16>
    %cst_4 = arith.constant dense<0.000000e+00> : vector<128x64xf32>
    %10 = tpu.matmul %8, %9, %cst_4 {dimension_numbers = #tpu.dot_dimension_numbers<[1], [0], [0], [1], [0, 0, 1, 1], [], []>} : vector<128x96xbf16>, vector<96x64xbf16>, vector<128x64xf32> -> vector<128x64xf32>
    %c0_5 = arith.constant 0 : index
    %c0_6 = arith.constant 0 : index
    %11 = vector.load %arg3[%c0_5, %c0_6] : memref<1x64xf32, #tpu.memory_space<vmem>>, vector<1x64xf32>
    %12 = vector.broadcast %11 : vector<1x64xf32> to vector<128x64xf32>
    %13 = arith.addf %10, %12 : vector<128x64xf32>
    %cst_7 = arith.constant 0.000000e+00 : f32
    %14 = vector.broadcast %cst_7 : f32 to vector<128x64xf32>
    %15 = arith.maximumf %13, %14 : vector<128x64xf32>
    %16 = vector.shape_cast %15 : vector<128x64xf32> to vector<16x8x64xf32>
    %c0_8 = arith.constant 0 : index
    %c0_9 = arith.constant 0 : index
    %17 = vector.load %arg4[%c0_8, %c0_9] : memref<64x32xbf16, #tpu.memory_space<vmem>>, vector<64x32xbf16>
    %c0_10 = arith.constant 0 : index
    %c0_11 = arith.constant 0 : index
    %18 = vector.load %arg5[%c0_10, %c0_11] : memref<1x32xf32, #tpu.memory_space<vmem>>, vector<1x32xf32>
    %c0_12 = arith.constant 0 : index
    %c0_13 = arith.constant 0 : index
    %19 = vector.load %arg6[%c0_12, %c0_13] : memref<1x32xf32, #tpu.memory_space<vmem>>, vector<1x32xf32>
    %20 = vector.shape_cast %16 : vector<16x8x64xf32> to vector<128x64xf32>
    %21 = arith.truncf %20 : vector<128x64xf32> to vector<128x64xbf16>
    %cst_14 = arith.constant dense<0.000000e+00> : vector<128x32xf32>
    %22 = tpu.matmul %21, %17, %cst_14 {dimension_numbers = #tpu.dot_dimension_numbers<[1], [0], [0], [1], [0, 0, 1, 1], [], []>} : vector<128x64xbf16>, vector<64x32xbf16>, vector<128x32xf32> -> vector<128x32xf32>
    %23 = vector.broadcast %18 : vector<1x32xf32> to vector<128x32xf32>
    %24 = arith.addf %22, %23 : vector<128x32xf32>
    %25 = math.tanh %24 : vector<128x32xf32>
    %26 = vector.shape_cast %25 : vector<128x32xf32> to vector<16x8x32xf32>
    %27 = vector.shape_cast %19 : vector<1x32xf32> to vector<1x1x32xf32>
    %28 = vector.broadcast %27 : vector<1x1x32xf32> to vector<16x8x32xf32>
    %29 = arith.mulf %26, %28 : vector<16x8x32xf32>
    %cst_15 = arith.constant dense<0.000000e+00> : vector<16x8xf32>
    %30 = vector.multi_reduction <add>, %29, %cst_15 [2] : vector<16x8x32xf32> to vector<16x8xf32>
    %31 = vector.shape_cast %30 : vector<16x8xf32> to vector<16x8x1xf32>
    %cst_16 = arith.constant dense<0xFF800000> : vector<16x1xf32>
    %32 = vector.multi_reduction <maximumf>, %31, %cst_16 [1] : vector<16x8x1xf32> to vector<16x1xf32>
    %33 = vector.shape_cast %32 : vector<16x1xf32> to vector<16x1x1xf32>
    %34 = vector.broadcast %33 : vector<16x1x1xf32> to vector<16x8x1xf32>
    %35 = arith.subf %31, %34 : vector<16x8x1xf32>
    %36 = math.exp %35 : vector<16x8x1xf32>
    %cst_17 = arith.constant dense<0.000000e+00> : vector<16x1xf32>
    %37 = vector.multi_reduction <add>, %36, %cst_17 [1] : vector<16x8x1xf32> to vector<16x1xf32>
    %38 = vector.shape_cast %37 : vector<16x1xf32> to vector<16x1x1xf32>
    %39 = vector.broadcast %38 : vector<16x1x1xf32> to vector<16x8x1xf32>
    %40 = arith.divf %36, %39 : vector<16x8x1xf32>
    %41 = vector.broadcast %40 : vector<16x8x1xf32> to vector<16x8x64xf32>
    %42 = arith.mulf %41, %16 : vector<16x8x64xf32>
    %cst_18 = arith.constant dense<0.000000e+00> : vector<16x64xf32>
    %43 = vector.multi_reduction <add>, %42, %cst_18 [1] : vector<16x8x64xf32> to vector<16x64xf32>
    %c0_19 = arith.constant 0 : index
    %c0_20 = arith.constant 0 : index
    %44 = vector.load %arg7[%c0_19, %c0_20] : memref<1x64xf32, #tpu.memory_space<vmem>>, vector<1x64xf32>
    %c0_21 = arith.constant 0 : index
    %c0_22 = arith.constant 0 : index
    %45 = vector.load %arg8[%c0_21, %c0_22] : memref<1x64xf32, #tpu.memory_space<vmem>>, vector<1x64xf32>
    %cst_23 = arith.constant dense<0.000000e+00> : vector<16xf32>
    %46 = vector.multi_reduction <add>, %43, %cst_23 [1] : vector<16x64xf32> to vector<16xf32>
    %47 = vector.shape_cast %46 : vector<16xf32> to vector<16x1xf32>
    %cst_24 = arith.constant 6.400000e+01 : f32
    %48 = vector.broadcast %cst_24 : f32 to vector<16x1xf32>
    %49 = arith.divf %47, %48 : vector<16x1xf32>
    %50 = vector.broadcast %49 : vector<16x1xf32> to vector<16x64xf32>
    %51 = arith.subf %43, %50 : vector<16x64xf32>
    %52 = arith.mulf %51, %51 : vector<16x64xf32>
    %cst_25 = arith.constant dense<0.000000e+00> : vector<16xf32>
    %53 = vector.multi_reduction <add>, %52, %cst_25 [1] : vector<16x64xf32> to vector<16xf32>
    %54 = vector.shape_cast %53 : vector<16xf32> to vector<16x1xf32>
    %cst_26 = arith.constant 6.400000e+01 : f32
    %55 = vector.broadcast %cst_26 : f32 to vector<16x1xf32>
    %56 = arith.divf %54, %55 : vector<16x1xf32>
    %57 = vector.broadcast %49 : vector<16x1xf32> to vector<16x64xf32>
    %58 = arith.subf %43, %57 : vector<16x64xf32>
    %cst_27 = arith.constant 9.99999974E-6 : f32
    %59 = vector.broadcast %cst_27 : f32 to vector<16x1xf32>
    %60 = arith.addf %56, %59 : vector<16x1xf32>
    %61 = math.rsqrt %60 : vector<16x1xf32>
    %62 = vector.broadcast %61 : vector<16x1xf32> to vector<16x64xf32>
    %63 = arith.mulf %58, %62 : vector<16x64xf32>
    %64 = vector.broadcast %44 : vector<1x64xf32> to vector<16x64xf32>
    %65 = arith.mulf %63, %64 : vector<16x64xf32>
    %66 = vector.broadcast %45 : vector<1x64xf32> to vector<16x64xf32>
    %67 = arith.addf %65, %66 : vector<16x64xf32>
    %c0_28 = arith.constant 0 : index
    %c0_29 = arith.constant 0 : index
    %68 = vector.load %arg9[%c0_28, %c0_29] : memref<16x64xf32, #tpu.memory_space<vmem>>, vector<16x64xf32>
    tpu.vector_store %arg9[%c0_28, %c0_29], %67 {strides = array<i32>} : memref<16x64xf32, #tpu.memory_space<vmem>>, vector<16x64xf32>,
    return
  }
  func.func @transform_0(%arg0: i32) -> (i32, i32, i32) {
    %c0_i32 = arith.constant 0 : i32
    %c0_i32_0 = arith.constant 0 : i32
    %c0_i32_1 = arith.constant 0 : i32
    return %arg0, %c0_i32, %c0_i32_0 : i32, i32, i32
  }
  func.func @transform_1(%arg0: i32) -> (i32, i32) {
    %c0_i32 = arith.constant 0 : i32
    %c0_i32_0 = arith.constant 0 : i32
    %c0_i32_1 = arith.constant 0 : i32
    return %c0_i32, %c0_i32_0 : i32, i32
  }
  func.func @transform_2(%arg0: i32) -> (i32, i32) {
    %c0_i32 = arith.constant 0 : i32
    %c0_i32_0 = arith.constant 0 : i32
    %c0_i32_1 = arith.constant 0 : i32
    return %c0_i32, %c0_i32_0 : i32, i32
  }
  func.func @transform_3(%arg0: i32) -> (i32, i32) {
    %c0_i32 = arith.constant 0 : i32
    %c0_i32_0 = arith.constant 0 : i32
    %c0_i32_1 = arith.constant 0 : i32
    return %c0_i32, %c0_i32_0 : i32, i32
  }
  func.func @transform_4(%arg0: i32) -> (i32, i32) {
    %c0_i32 = arith.constant 0 : i32
    %c0_i32_0 = arith.constant 0 : i32
    %c0_i32_1 = arith.constant 0 : i32
    return %c0_i32, %c0_i32_0 : i32, i32
  }
  func.func @transform_5(%arg0: i32) -> (i32, i32) {
    %c0_i32 = arith.constant 0 : i32
    %c0_i32_0 = arith.constant 0 : i32
    %c0_i32_1 = arith.constant 0 : i32
    return %c0_i32, %c0_i32_0 : i32, i32
  }
  func.func @transform_6(%arg0: i32) -> (i32, i32) {
    %c0_i32 = arith.constant 0 : i32
    %c0_i32_0 = arith.constant 0 : i32
    %c0_i32_1 = arith.constant 0 : i32
    return %c0_i32, %c0_i32_0 : i32, i32
  }
  func.func @transform_7(%arg0: i32) -> (i32, i32) {
    %c0_i32 = arith.constant 0 : i32
    %c0_i32_0 = arith.constant 0 : i32
    %c0_i32_1 = arith.constant 0 : i32
    return %c0_i32, %c0_i32_0 : i32, i32
  }
  func.func @transform_8(%arg0: i32) -> (i32, i32) {
    %c0_i32 = arith.constant 0 : i32
    %c0_i32_0 = arith.constant 0 : i32
    return %arg0, %c0_i32 : i32, i32
  }
}

module attributes {stable_mosaic.version = 11 : i64} {
  func.func @news_encoder_kernel(%arg0: i32, %arg1: memref<16x8x32xf32, #tpu.memory_space<vmem>>, %arg2: memref<96x64xbf16, #tpu.memory_space<vmem>>, %arg3: memref<1x64xf32, #tpu.memory_space<vmem>>, %arg4: memref<64x32xbf16, #tpu.memory_space<vmem>>, %arg5: memref<1x32xf32, #tpu.memory_space<vmem>>, %arg6: memref<1x32xf32, #tpu.memory_space<vmem>>, %arg7: memref<1x64xf32, #tpu.memory_space<vmem>>, %arg8: memref<1x64xf32, #tpu.memory_space<vmem>>, %arg9: memref<16x64xf32, #tpu.memory_space<vmem>>) attributes {dimension_semantics = [#tpu.dimension_semantics<parallel>], iteration_bounds = array<i64: 2>, scalar_prefetch = 0 : i64, scratch_operands = 0 : i64, tpu.core_type = #tpu.core_type<tc>, window_params = [{transform_indices = @transform_0, window_bounds = array<i64: 16, 8, 32>}, {pipeline_mode = #tpu.pipeline_mode<synchronous>, transform_indices = @transform_1, window_bounds = array<i64: 96, 64>}, {pipeline_mode = #tpu.pipeline_mode<synchronous>, transform_indices = @transform_2, window_bounds = array<i64: 1, 64>}, {pipeline_mode = #tpu.pipeline_mode<synchronous>, transform_indices = @transform_3, window_bounds = array<i64: 64, 32>}, {pipeline_mode = #tpu.pipeline_mode<synchronous>, transform_indices = @transform_4, window_bounds = array<i64: 1, 32>}, {pipeline_mode = #tpu.pipeline_mode<synchronous>, transform_indices = @transform_5, window_bounds = array<i64: 1, 32>}, {pipeline_mode = #tpu.pipeline_mode<synchronous>, transform_indices = @transform_6, window_bounds = array<i64: 1, 64>}, {pipeline_mode = #tpu.pipeline_mode<synchronous>, transform_indices = @transform_7, window_bounds = array<i64: 1, 64>}, {transform_indices = @transform_8, window_bounds = array<i64: 16, 64>}]} {
    %c0 = arith.constant 0 : index
    %c0_0 = arith.constant 0 : index
    %c0_1 = arith.constant 0 : index
    %0 = vector.load %arg1[%c0, %c0_0, %c0_1] : memref<16x8x32xf32, #tpu.memory_space<vmem>>, vector<16x8x32xf32>
    %cst = arith.constant 0.000000e+00 : f32
    %1 = vector.broadcast %cst : f32 to vector<16x1x32xf32>
    %2 = tpu.concatenate %1, %0, %1 in 1 : vector<16x1x32xf32>, vector<16x8x32xf32>, vector<16x1x32xf32> -> vector<16x10x32xf32>
    %3 = vector.extract_strided_slice %2 {offsets = [0, 0, 0], sizes = [16, 8, 32], strides = [1, 1, 1]} : vector<16x10x32xf32> to vector<16x8x32xf32>
    %4 = vector.extract_strided_slice %2 {offsets = [0, 1, 0], sizes = [16, 8, 32], strides = [1, 1, 1]} : vector<16x10x32xf32> to vector<16x8x32xf32>
    %5 = vector.extract_strided_slice %2 {offsets = [0, 2, 0], sizes = [16, 8, 32], strides = [1, 1, 1]} : vector<16x10x32xf32> to vector<16x8x32xf32>
    %6 = tpu.concatenate %3, %4, %5 in 2 : vector<16x8x32xf32>, vector<16x8x32xf32>, vector<16x8x32xf32> -> vector<16x8x96xf32>
    %7 = vector.shape_cast %6 : vector<16x8x96xf32> to vector<128x96xf32>
    %8 = arith.truncf %7 : vector<128x96xf32> to vector<128x96xbf16>
    %c0_2 = arith.constant 0 : index
    %c0_3 = arith.constant 0 : index
    %9 = vector.load %arg2[%c0_2, %c0_3] : memref<96x64xbf16, #tpu.memory_space<vmem>>, vector<96x64xbf16>
    %cst_4 = arith.constant dense<0.000000e+00> : vector<128x64xf32>
    %10 = tpu.matmul %8, %9, %cst_4 {dimension_numbers = #tpu.dot_dimension_numbers<[1], [0], [0], [1], [0, 0, 1, 1], [], []>} : vector<128x96xbf16>, vector<96x64xbf16>, vector<128x64xf32> -> vector<128x64xf32>
    %c0_5 = arith.constant 0 : index
    %c0_6 = arith.constant 0 : index
    %11 = vector.load %arg3[%c0_5, %c0_6] : memref<1x64xf32, #tpu.memory_space<vmem>>, vector<1x64xf32>
    %12 = vector.broadcast %11 : vector<1x64xf32> to vector<128x64xf32>
    %13 = arith.addf %10, %12 : vector<128x64xf32>
    %cst_7 = arith.constant 0.000000e+00 : f32
    %14 = vector.broadcast %cst_7 : f32 to vector<128x64xf32>
    %15 = arith.maximumf %13, %14 : vector<128x64xf32>
    %16 = vector.shape_cast %15 : vector<128x64xf32> to vector<16x8x64xf32>
    %c0_8 = arith.constant 0 : index
    %c0_9 = arith.constant 0 : index
    %17 = vector.load %arg4[%c0_8, %c0_9] : memref<64x32xbf16, #tpu.memory_space<vmem>>, vector<64x32xbf16>
    %c0_10 = arith.constant 0 : index
    %c0_11 = arith.constant 0 : index
    %18 = vector.load %arg5[%c0_10, %c0_11] : memref<1x32xf32, #tpu.memory_space<vmem>>, vector<1x32xf32>
    %c0_12 = arith.constant 0 : index
    %c0_13 = arith.constant 0 : index
    %19 = vector.load %arg6[%c0_12, %c0_13] : memref<1x32xf32, #tpu.memory_space<vmem>>, vector<1x32xf32>
    %20 = vector.shape_cast %16 : vector<16x8x64xf32> to vector<128x64xf32>
    %21 = arith.truncf %20 : vector<128x64xf32> to vector<128x64xbf16>
    %cst_14 = arith.constant dense<0.000000e+00> : vector<128x32xf32>
    %22 = tpu.matmul %21, %17, %cst_14 {dimension_numbers = #tpu.dot_dimension_numbers<[1], [0], [0], [1], [0, 0, 1, 1], [], []>} : vector<128x64xbf16>, vector<64x32xbf16>, vector<128x32xf32> -> vector<128x32xf32>
    %23 = vector.broadcast %18 : vector<1x32xf32> to vector<128x32xf32>
    %24 = arith.addf %22, %23 : vector<128x32xf32>
    %25 = math.tanh %24 : vector<128x32xf32>
    %26 = vector.shape_cast %25 : vector<128x32xf32> to vector<16x8x32xf32>
    %27 = vector.shape_cast %19 : vector<1x32xf32> to vector<1x1x32xf32>
    %28 = vector.broadcast %27 : vector<1x1x32xf32> to vector<16x8x32xf32>
    %29 = arith.mulf %26, %28 : vector<16x8x32xf32>
    %cst_15 = arith.constant dense<0.000000e+00> : vector<16x8xf32>
    %30 = vector.multi_reduction <add>, %29, %cst_15 [2] : vector<16x8x32xf32> to vector<16x8xf32>
    %31 = vector.shape_cast %30 : vector<16x8xf32> to vector<16x8x1xf32>
    %cst_16 = arith.constant dense<0xFF800000> : vector<16x1xf32>
    %32 = vector.multi_reduction <maximumf>, %31, %cst_16 [1] : vector<16x8x1xf32> to vector<16x1xf32>
    %33 = vector.shape_cast %32 : vector<16x1xf32> to vector<16x1x1xf32>
    %34 = vector.broadcast %33 : vector<16x1x1xf32> to vector<16x8x1xf32>
    %35 = arith.subf %31, %34 : vector<16x8x1xf32>
    %36 = math.exp %35 : vector<16x8x1xf32>
    %cst_17 = arith.constant dense<0.000000e+00> : vector<16x1xf32>
    %37 = vector.multi_reduction <add>, %36, %cst_17 [1] : vector<16x8x1xf32> to vector<16x1xf32>
    %38 = vector.shape_cast %37 : vector<16x1xf32> to vector<16x1x1xf32>
    %39 = vector.broadcast %38 : vector<16x1x1xf32> to vector<16x8x1xf32>
    %40 = arith.divf %36, %39 : vector<16x8x1xf32>
    %41 = vector.broadcast %40 : vector<16x8x1xf32> to vector<16x8x64xf32>
    %42 = arith.mulf %41, %16 : vector<16x8x64xf32>
    %cst_18 = arith.constant dense<0.000000e+00> : vector<16x64xf32>
    %43 = vector.multi_reduction <add>, %42, %cst_18 [1] : vector<16x8x64xf32> to vector<16x64xf32>
    %c0_19 = arith.constant 0 : index
    %c0_20 = arith.constant 0 : index
    %44 = vector.load %arg7[%c0_19, %c0_20] : memref<1x64xf32, #tpu.memory_space<vmem>>, vector<1x64xf32>
    %c0_21 = arith.constant 0 : index
    %c0_22 = arith.constant 0 : index
    %45 = vector.load %arg8[%c0_21, %c0_22] : memref<1x64xf32, #tpu.memory_space<vmem>>, vector<1x64xf32>
    %cst_23 = arith.constant dense<0.000000e+00> : vector<16xf32>
    %46 = vector.multi_reduction <add>, %43, %cst_23 [1] : vector<16x64xf32> to vector<16xf32>
    %47 = vector.shape_cast %46 : vector<16xf32> to vector<16x1xf32>
    %cst_24 = arith.constant 6.400000e+01 : f32
    %48 = vector.broadcast %cst_24 : f32 to vector<16x1xf32>
    %49 = arith.divf %47, %48 : vector<16x1xf32>
    %50 = vector.broadcast %49 : vector<16x1xf32> to vector<16x64xf32>
    %51 = arith.subf %43, %50 : vector<16x64xf32>
    %52 = arith.mulf %51, %51 : vector<16x64xf32>
    %cst_25 = arith.constant dense<0.000000e+00> : vector<16xf32>
    %53 = vector.multi_reduction <add>, %52, %cst_25 [1] : vector<16x64xf32> to vector<16xf32>
    %54 = vector.shape_cast %53 : vector<16xf32> to vector<16x1xf32>
    %cst_26 = arith.constant 6.400000e+01 : f32
    %55 = vector.broadcast %cst_26 : f32 to vector<16x1xf32>
    %56 = arith.divf %54, %55 : vector<16x1xf32>
    %57 = vector.broadcast %49 : vector<16x1xf32> to vector<16x64xf32>
    %58 = arith.subf %43, %57 : vector<16x64xf32>
    %cst_27 = arith.constant 9.99999974E-6 : f32
    %59 = vector.broadcast %cst_27 : f32 to vector<16x1xf32>
    %60 = arith.addf %56, %59 : vector<16x1xf32>
    %61 = math.rsqrt %60 : vector<16x1xf32>
    %62 = vector.broadcast %61 : vector<16x1xf32> to vector<16x64xf32>
    %63 = arith.mulf %58, %62 : vector<16x64xf32>
    %64 = vector.broadcast %44 : vector<1x64xf32> to vector<16x64xf32>
    %65 = arith.mulf %63, %64 : vector<16x64xf32>
    %66 = vector.broadcast %45 : vector<1x64xf32> to vector<16x64xf32>
    %67 = arith.addf %65, %66 : vector<16x64xf32>
    %c0_28 = arith.constant 0 : index
    %c0_29 = arith.constant 0 : index
    %68 = vector.load %arg9[%c0_28, %c0_29] : memref<16x64xf32, #tpu.memory_space<vmem>>, vector<16x64xf32>
    tpu.vector_store %arg9[%c0_28, %c0_29], %67 {strides = array<i32>} : memref<16x64xf32, #tpu.memory_space<vmem>>, vector<16x64xf32>,
    return
  }
  func.func @transform_0(%arg0: i32) -> (i32, i32, i32) {
    %c0_i32 = arith.constant 0 : i32
    %c0_i32_0 = arith.constant 0 : i32
    %c0_i32_1 = arith.constant 0 : i32
    return %arg0, %c0_i32, %c0_i32_0 : i32, i32, i32
  }
  func.func @transform_1(%arg0: i32) -> (i32, i32) {
    %c0_i32 = arith.constant 0 : i32
    %c0_i32_0 = arith.constant 0 : i32
    %c0_i32_1 = arith.constant 0 : i32
    return %c0_i32, %c0_i32_0 : i32, i32
  }
  func.func @transform_2(%arg0: i32) -> (i32, i32) {
    %c0_i32 = arith.constant 0 : i32
    %c0_i32_0 = arith.constant 0 : i32
    %c0_i32_1 = arith.constant 0 : i32
    return %c0_i32, %c0_i32_0 : i32, i32
  }
  func.func @transform_3(%arg0: i32) -> (i32, i32) {
    %c0_i32 = arith.constant 0 : i32
    %c0_i32_0 = arith.constant 0 : i32
    %c0_i32_1 = arith.constant 0 : i32
    return %c0_i32, %c0_i32_0 : i32, i32
  }
  func.func @transform_4(%arg0: i32) -> (i32, i32) {
    %c0_i32 = arith.constant 0 : i32
    %c0_i32_0 = arith.constant 0 : i32
    %c0_i32_1 = arith.constant 0 : i32
    return %c0_i32, %c0_i32_0 : i32, i32
  }
  func.func @transform_5(%arg0: i32) -> (i32, i32) {
    %c0_i32 = arith.constant 0 : i32
    %c0_i32_0 = arith.constant 0 : i32
    %c0_i32_1 = arith.constant 0 : i32
    return %c0_i32, %c0_i32_0 : i32, i32
  }
  func.func @transform_6(%arg0: i32) -> (i32, i32) {
    %c0_i32 = arith.constant 0 : i32
    %c0_i32_0 = arith.constant 0 : i32
    %c0_i32_1 = arith.constant 0 : i32
    return %c0_i32, %c0_i32_0 : i32, i32
  }
  func.func @transform_7(%arg0: i32) -> (i32, i32) {
    %c0_i32 = arith.constant 0 : i32
    %c0_i32_0 = arith.constant 0 : i32
    %c0_i32_1 = arith.constant 0 : i32
    return %c0_i32, %c0_i32_0 : i32, i32
  }
  func.func @transform_8(%arg0: i32) -> (i32, i32) {
    %c0_i32 = arith.constant 0 : i32
    %c0_i32_0 = arith.constant 0 : i32
    return %arg0, %c0_i32 : i32, i32
  }
}

module attributes {stable_mosaic.version = 11 : i64} {
  func.func @linear_kernel(%arg0: i32, %arg1: memref<80x64xf32, #tpu.memory_space<vmem>>, %arg2: memref<64x16xbf16, #tpu.memory_space<vmem>>, %arg3: memref<1x16xf32, #tpu.memory_space<vmem>>, %arg4: memref<80x16xf32, #tpu.memory_space<vmem>>) attributes {dimension_semantics = [#tpu.dimension_semantics<parallel>], iteration_bounds = array<i64: 1>, scalar_prefetch = 0 : i64, scratch_operands = 0 : i64, tpu.core_type = #tpu.core_type<tc>, window_params = [{transform_indices = @transform_0, window_bounds = array<i64: 80, 64>}, {pipeline_mode = #tpu.pipeline_mode<synchronous>, transform_indices = @transform_1, window_bounds = array<i64: 64, 16>}, {pipeline_mode = #tpu.pipeline_mode<synchronous>, transform_indices = @transform_2, window_bounds = array<i64: 1, 16>}, {transform_indices = @transform_3, window_bounds = array<i64: 80, 16>}]} {
    %c0 = arith.constant 0 : index
    %c0_0 = arith.constant 0 : index
    %0 = vector.load %arg1[%c0, %c0_0] : memref<80x64xf32, #tpu.memory_space<vmem>>, vector<80x64xf32>
    %1 = arith.truncf %0 : vector<80x64xf32> to vector<80x64xbf16>
    %c0_1 = arith.constant 0 : index
    %c0_2 = arith.constant 0 : index
    %2 = vector.load %arg2[%c0_1, %c0_2] : memref<64x16xbf16, #tpu.memory_space<vmem>>, vector<64x16xbf16>
    %cst = arith.constant dense<0.000000e+00> : vector<80x16xf32>
    %3 = tpu.matmul %1, %2, %cst {dimension_numbers = #tpu.dot_dimension_numbers<[1], [0], [0], [1], [0, 0, 1, 1], [], []>} : vector<80x64xbf16>, vector<64x16xbf16>, vector<80x16xf32> -> vector<80x16xf32>
    %c0_3 = arith.constant 0 : index
    %c0_4 = arith.constant 0 : index
    %4 = vector.load %arg3[%c0_3, %c0_4] : memref<1x16xf32, #tpu.memory_space<vmem>>, vector<1x16xf32>
    %5 = vector.broadcast %4 : vector<1x16xf32> to vector<80x16xf32>
    %6 = arith.addf %3, %5 : vector<80x16xf32>
    %c0_5 = arith.constant 0 : index
    %c0_6 = arith.constant 0 : index
    %7 = vector.load %arg4[%c0_5, %c0_6] : memref<80x16xf32, #tpu.memory_space<vmem>>, vector<80x16xf32>
    tpu.vector_store %arg4[%c0_5, %c0_6], %6 {strides = array<i32>} : memref<80x16xf32, #tpu.memory_space<vmem>>, vector<80x16xf32>,
    return
  }
  func.func @transform_0(%arg0: i32) -> (i32, i32) {
    %c0_i32 = arith.constant 0 : i32
    %c0_i32_0 = arith.constant 0 : i32
    return %arg0, %c0_i32 : i32, i32
  }
  func.func @transform_1(%arg0: i32) -> (i32, i32) {
    %c0_i32 = arith.constant 0 : i32
    %c0_i32_0 = arith.constant 0 : i32
    %c0_i32_1 = arith.constant 0 : i32
    return %c0_i32, %c0_i32_0 : i32, i32
  }
  func.func @transform_2(%arg0: i32) -> (i32, i32) {
    %c0_i32 = arith.constant 0 : i32
    %c0_i32_0 = arith.constant 0 : i32
    %c0_i32_1 = arith.constant 0 : i32
    return %c0_i32, %c0_i32_0 : i32, i32
  }
  func.func @transform_3(%arg0: i32) -> (i32, i32) {
    %c0_i32 = arith.constant 0 : i32
    %c0_i32_0 = arith.constant 0 : i32
    return %arg0, %c0_i32 : i32, i32
  }
}

</mosaic_0001>

<bundles_post_ra>
// kernel: tanr_forward.4
= control target key start
LH: loop header
LB: loop body
LE: loop exit
PB: predicated region body
PF: predicated region fallthrough
CT: control target
= control target key end

     0   :  { %13 = vsyncpa [#allocation3], 0  ;;  %s3304_s0 = inlined_call_operand.hbm [shape: f32[48,8,32], index: 0, kind: input, shape index: {}]   ;;  %s3305_s1 = inlined_call_operand.vmem [shape: bf16[96,64], index: 1, kind: input, shape index: {}]   ;;  %s3306_s2 = inlined_call_operand.vmem [shape: f32[1,64], index: 2, kind: input, shape index: {}]   ;;  %s3307_s3 = inlined_call_operand.vmem [shape: bf16[64,32], index: 3, kind: input, shape index: {}]   ;;  %s3308_s4 = inlined_call_operand.vmem [shape: f32[1,32], index: 4, kind: input, shape index: {}]   ;;  %s3309_s5 = inlined_call_operand.vmem [shape: f32[1,32], index: 5, kind: input, shape index: {}]   ;;  %s3310_s6 = inlined_call_operand.vmem [shape: f32[1,64], index: 6, kind: input, shape index: {}]   ;;  %s3311_s7 = inlined_call_operand.vmem [shape: f32[1,64], index: 7, kind: input, shape index: {}]   ;;  %s3312_s8 = inlined_call_operand.vmem [shape: f32[48,64], index: 8, kind: output, shape index: {}]  }
   0x1   :  { %15 = vsyncpa [#allocation3 + $0x1], 0  ;;  %s2391_s27 = smov 0   ;;  %s2393_s28 = smov 0  }
   0x2   :  { %s2395_s29 = smov 0   ;;  %s2397_s30 = smov 0  }
   0x3 LB: > { %s1921_s9 = sadd.s32 4294967295, %s2339_s30   ;;  %s2411_s10 = sadd.s32 1, %s2339_s30   ;;  %s2339_s30 = sphi %s2397_s30, %s3347_s30   ;;  %s2335_s29 = sphi %s2395_s29, %s3346_s29   ;;  %s2331_s28 = sphi %s2393_s28, %s3345_s28   ;;  %s2327_s27 = sphi %s2391_s27, %s3344_s27  }
   0x4   : > { %s25_s11 = ssub.s32 %s2339_s30, %s2411_s10  ;;  %s28_s12 = sadd.s32 1, %s2335_s29 }
   0x5   : > { %p26_p0 = scmp.eq.s32.totalorder %s25_s11, 0  ;;  %p35_p1 = scmp.ne.s32.totalorder %s2335_s29, %s2331_s28 }
   0x6   : > { %p36_p2 = scmp.eq.s32.totalorder %s2339_s30, 0  ;;  %p41_p3 = scmp.ne.s32.totalorder %s2331_s28, %s2327_s27 }
   0x7   : > { %s2421_s13 = scalar_select %p26_p0, %s2335_s29, %s28_s12  }
   0x8   : > { %p37_p4 = por %p36_p2, %p35_p1  ;;  %p42_p5 = scmp.eq.s32.totalorder %s1921_s9, 0 }
   0x9   : > { %p2050_p6 = scmp.lt.s32.totalorder %s2339_s30, 3  ;;  %s259_s15 = sand.u32 1, %s2335_s29  }
   0xa   : > { %p2426_p7 = por %p42_p5, %p41_p3  ;;  %s1925_s16 = sshll.u32 %s259_s15, 7 }
   0xb   : > { %s1965_s17 = sshll.u32 %s2339_s30, 11  ;;  %s263_s21 = scalar_lea.vmem [#allocation2], %s1925_s16 }
   0xc   : > { %s3327_s14 = scalar_select %p2426_p7, 1, 0 }
   0xd   : > { %s2435_s20 = scalar_lea.hbm %s3304_s0, %s1965_s17  ;;  %s270_s22 = sshll.u32 %s263_s21, 4  ;;  %s2437_s22 = int_to_ptr.vmem [resolvable:$true] %s270_s22 }
   0xe   : > { %p2439_p8 = pnand %p2050_p6, %p37_p4  ;;  %s2444_s24 = scalar_lea.sflag [#allocation3], %s259_s15 }
   0xf   : > { %s2277_s25 = scalar_lea.hbm %s2435_s20, 2048  ;;  %s2282_s11 = scalar_lea.hbm %s3304_s0, 6144 }
  0x10   : > { %p2278_p10 = scmp.ne.s32.totalorder %s2435_s20, %s2277_s25  ;;  %p2279_p11 = pneg %p2439_p8 }
  0x11   : > { %p2283_p0 = scmp.lt.s32.totalorder %s2435_s20, %s3304_s0  ;;  %p2284_p1 = scmp.lt.s32.totalorder %s2282_s11, %s2277_s25 }
  0x12   : > { %p2280_p12 = pnand %p2279_p11, %p2278_p10 }
  0x13   : > { %p2285_p2 = por %p2284_p1, %p2283_p0 }
  0x14   : > { %p2281_p13 = pneg %p2280_p12 }
  0x16   : > { %p2286_p3 = pnand %p2285_p2, %p2281_p13 }
  0x18   : > { %2289 = shalt.err (!%p2286_p3)
}
  0x19   : > { %s2290_s15 = scalar_lea.vmem %s2437_s22, 2048  ;;  %s2341_s17 = smov [#allocation2]  }
  0x1a   : > { %p2291_p4 = scmp.ne.s32.totalorder %s2437_s22, %s2290_s15  ;;  %s2295_s18 = sshll.u32 %s2341_s17, 4  ;;  %s2296_s18 = int_to_ptr.vmem [resolvable:$false] %s2295_s18 }
  0x1b   : > { %s2297_s19 = scalar_lea.vmem %s2296_s18, 4096  ;;  %p2298_p10 = scmp.lt.s32.totalorder %s2437_s22, %s2296_s18 }
  0x1c   : > { %p2293_p5 = pnand %p2291_p4, %p2279_p11  ;;  %p2299_p12 = scmp.lt.s32.totalorder %s2297_s19, %s2290_s15 }
  0x1e   : > { %p2294_p6 = pneg %p2293_p5  ;;  %p2300_p9 = por %p2299_p12, %p2298_p10 }
  0x20   : > { %p2301_p7 = pnand %p2300_p9, %p2294_p6 }
  0x22   : > { %2304 = shalt.err (!%p2301_p7)
}
  0x23   : > { %s2342_s21 = smov 128   ;;  %s2343_s25 = smov 8  }
  0x24   : > { %2049 = dma.hbm_to_vmem [thread:$0]  (!%p2439_p8), %s2435_s20, 2048, %s2437_s22, %s2444_s24, %s2342_s21, %s2342_s21, %s2343_s25  }
  0x25   : > { %p278_p11 = scmp.lt.s32.totalorder %s2339_s30, 4  ;;  %p3329_p13 = scmp.ge.s32.totalorder %s2339_s30, 1 }
  0x27   : > { %p279_p0 = pnand %p3329_p13, %p278_p11 }
  0x28   : > { %s284_s26 = sand.u32 (!%p279_p0), 1, %s2331_s28   ;;  %p3330_p7 = scmp.ne.s32.totalorder (!%p279_p0), %s3327_s14, 0 }
  0x29   : > { %282 = sbr.rel (%p279_p0) target bundleno = 1204 (0x4b4), region = 52  ;;  %s1929_s27 = sshll.u32 (!%p279_p0), %s284_s26, 7 }
  0x2a   : > { %s285_s11 = scalar_lea.sflag (!%p279_p0), [#allocation3], %s284_s26  ;;  %s2469_s12 = scalar_lea.vmem (!%p279_p0), [#allocation2], %s1929_s27 }
  0x2e   : > { %2322 = dma.done.wait (%p3330_p7), %s285_s11, 2048  }
  0x2f   : > { %2324 = vsyncadd (%p3330_p7), %s285_s11, 4294965248  ;;  %v329_v0 = vld [vmem:[%s2469_s12] sm:$0xff]  ;;  %v330_v1 = vld [vmem:[%s2469_s12 + $0x8] sm:$0xff]  ;;  %vm393_vm0 = vcmask 1040384   ;;  %vm555_vm1 = vcmask 1045504   ;;  %vm458_vm2 = vcmask 1046528  }
  0x30   : > { %v331_v2 = vld [vmem:[%s2469_s12 + $0x10] sm:$0xff]  ;;  %v361_v3 = vrot.slane %v329_v0, 7  ;;  %v362_v4 = vrot.slane %v330_v1, 7  ;;  %v332_v5 = vld [vmem:[%s2469_s12 + $0x18] sm:$0xff]  ;;  %v2167_v28 = vld [vmem:[%s3305_s1 + $0x28] sm:$0xff]   ;;  %s2344_s24 = smov 64  }
  0x31   : > { %v335_v6 = vld [vmem:[%s2469_s12 + $0x30] sm:$0xff]  ;;  %v336_v7 = vld [vmem:[%s2469_s12 + $0x38] sm:$0xff]  ;;  %v363_v8 = vrot.slane %v331_v2, 7  ;;  %v364_v9 = vrot.slane %v332_v5, 7  ;;  %v2168_v33 = vld [vmem:[%s3305_s1 + $0x20] sm:$0xff]   ;;  %1992 = vmatprep.subr.bf16.mxu0 %v2167_v28  ;;  %s2345_s16 = smov 32  }
  0x32   : > { %v367_v10 = vrot.slane %v335_v6, 7  ;;  %v368_v11 = vrot.slane %v336_v7, 7  ;;  %v2482_v12 = vsel %vm393_vm0, 0.0, %v361_v3  ;;  %v2485_v13 = vsel %vm393_vm0, 0.0, %v362_v4  ;;  %v333_v42 = vld [vmem:[%s2469_s12 + $0x20] sm:$0xff]  ;;  %v334_v43 = vld [vmem:[%s2469_s12 + $0x28] sm:$0xff]  ;;  %1993 = vmatpush3.bf16.msra.mxu0 %v2167_v28 }
  0x33   : > { %v410_v14 = vsel %vm393_vm0, %v361_v3, 0.0  ;;  %v411_v15 = vsel %vm393_vm0, %v362_v4, 0.0  ;;  %v556_v16 = vrot.slane %v2482_v12, 2  ;;  %v559_v18 = vrot.slane %v2485_v13, 2  ;;  %1994 = vmatprep.subr.bf16.mxu0 %v2168_v33  ;;  %v2169_v48 = vld [vmem:[%s3305_s1 + $0x18] sm:$0xff]   ;;  %v2170_v61 = vld [vmem:[%s3305_s1 + $0x10] sm:$0xff]  }
  0x34   : > { %v557_v17 = vrot.slane %v410_v14, 2  ;;  %v560_v19 = vrot.slane %v411_v15, 2  ;;  %v459_v20 = vrot.slane %v2482_v12, 1  ;;  %v460_v21 = vrot.slane %v410_v14, 1  ;;  %v339_v6 = vld [vmem:[%s2469_s12 + $0x50] sm:$0xff]  ;;  %v340_v7 = vld [vmem:[%s2469_s12 + $0x58] sm:$0xff] }
  0x35   : > { %v462_v22 = vrot.slane %v2485_v13, 1  ;;  %v463_v23 = vrot.slane %v411_v15, 1  ;;  %v2496_v26 = vsel %vm393_vm0, 0.0, %v363_v8  ;;  %v2499_v27 = vsel %vm393_vm0, 0.0, %v364_v9  ;;  %v337_v14 = vld [vmem:[%s2469_s12 + $0x40] sm:$0xff]  ;;  %v338_v15 = vld [vmem:[%s2469_s12 + $0x48] sm:$0xff] }
  0x36   : > { %v558_v24 = vsel %vm555_vm1, %v556_v16, %v557_v17  ;;  %v561_v25 = vsel %vm555_vm1, %v559_v18, %v560_v19  ;;  %v461_v30 = vsel %vm458_vm2, %v459_v20, %v460_v21  ;;  %v412_v32 = vsel %vm393_vm0, %v363_v8, 0.0  ;;  %1995 = vmatpush3.bf16.msra.mxu0 %v2168_v33  ;;  %v2171_v16 = vld [vmem:[%s3305_s1 + $0x8] sm:$0xff]   ;;  %s3204_s26 = sshll.u32 %s1921_s9, 1 }
  0x37   : > { %v2097_v29 = vpack.i.bf16 %v561_v25, %v558_v24  ;;  %v464_v31 = vsel %vm458_vm2, %v462_v22, %v463_v23  ;;  %v413_v35 = vsel %vm393_vm0, %v364_v9, 0.0  ;;  %v562_v36 = vrot.slane %v2496_v26, 2  ;;  %1996 = vmatprep.subr.bf16.mxu0 %v2169_v48  ;;  %p323_p8 = scmp.lt.s32.totalorder %s3204_s26, 5 }
  0x38   : > { %v2087_v34 = vpack.i.bf16 %v464_v31, %v461_v30  ;;  %v563_v37 = vrot.slane %v412_v32, 2  ;;  %v565_v38 = vrot.slane %v2499_v27, 2  ;;  %v566_v39 = vrot.slane %v413_v35, 2 }
  0x39   : > { %2098 = vrot.lane.b32.xlu1 %v2097_v29, %s2344_s24  ;;  %v465_v40 = vrot.slane %v2496_v26, 1  ;;  %v466_v41 = vrot.slane %v412_v32, 1  ;;  %v468_v45 = vrot.slane %v2499_v27, 1  ;;  %v469_v46 = vrot.slane %v413_v35, 1  ;;  %s3349_s26 = smov (!%p323_p8, %s3204_s26), 5 }
  0x3a   : > { %2088 = vrot.lane.b32.xlu0 %v2087_v34, %s2345_s16  ;;  %v564_v44 = vsel %vm555_vm1, %v562_v36, %v563_v37  ;;  %v2521_v47 = vsel %vm393_vm0, 0.0, %v367_v10  ;;  %v567_v49 = vsel %vm555_vm1, %v565_v38, %v566_v39  ;;  %v2529_v51 = vsel %vm393_vm0, 0.0, %v368_v11  ;;  %1997 = vmatpush3.bf16.msra.mxu0 %v2169_v48 }
  0x3b   : > { %v467_v50 = vsel %vm458_vm2, %v465_v40, %v466_v41  ;;  %v416_v52 = vsel %vm393_vm0, %v367_v10, 0.0  ;;  %v2102_v53 = vpack.i.bf16 %v567_v49, %v564_v44  ;;  %v470_v54 = vsel %vm458_vm2, %v468_v45, %v469_v46  ;;  %1998 = vmatprep.subr.bf16.mxu0 %v2170_v61 }
  0x3c   : > { %v417_v55 = vsel %vm393_vm0, %v368_v11, 0.0  ;;  %v477_v56 = vrot.slane %v2521_v47, 1  ;;  %v2092_v57 = vpack.i.bf16 %v470_v54, %v467_v50  ;;  %v478_v58 = vrot.slane %v416_v52, 1 }
  0x3d   : > { %v480_v59 = vrot.slane %v2529_v51, 1  ;;  %v481_v60 = vrot.slane %v417_v55, 1  ;;  %2103 = vrot.lane.b32.xlu1 %v2102_v53, %s2344_s24  ;;  %v365_v62 = vrot.slane %v333_v42, 7  ;;  %v366_v63 = vrot.slane %v334_v43, 7  ;;  %v2172_v43 = vld [vmem:[%s3305_s1] sm:$0xff]  }
  0x3e   : > { %v574_v0 = vrot.slane %v2521_v47, 2  ;;  %v575_v1 = vrot.slane %v416_v52, 2  ;;  %2093 = vrot.lane.b32.xlu0 %v2092_v57, %s2345_s16  ;;  %v479_v2 = vsel %vm458_vm2, %v477_v56, %v478_v58  ;;  %v577_v4 = vrot.slane %v2529_v51, 2  ;;  %1999 = vmatpush3.bf16.msra.mxu0 %v2170_v61 }
  0x3f   : > { %v482_v3 = vsel %vm458_vm2, %v480_v59, %v481_v60  ;;  %v578_v5 = vrot.slane %v417_v55, 2  ;;  %v2548_v9 = vsel %vm393_vm0, 0.0, %v365_v62  ;;  %v2551_v10 = vsel %vm393_vm0, 0.0, %v366_v63  ;;  %2000 = vmatprep.subr.bf16.mxu0 %v2171_v16 }
  0x40   : > { %v2112_v8 = vpack.i.bf16 %v482_v3, %v479_v2  ;;  %v414_v11 = vsel %vm393_vm0, %v365_v62, 0.0  ;;  %v415_v17 = vsel %vm393_vm0, %v366_v63, 0.0  ;;  %v471_v18 = vrot.slane %v2548_v9, 1  ;;  %v343_v2 = vld [vmem:[%s2469_s12 + $0x70] sm:$0xff]  ;;  %v344_v3 = vld [vmem:[%s2469_s12 + $0x78] sm:$0xff] }
  0x41   : > { %v472_v19 = vrot.slane %v414_v11, 1  ;;  %v474_v20 = vrot.slane %v2551_v10, 1  ;;  %v475_v21 = vrot.slane %v415_v17, 1  ;;  %v576_v22 = vsel %vm555_vm1, %v574_v0, %v575_v1 }
  0x42   : > { %2113 = vrot.lane.b32.xlu1 %v2112_v8, %s2345_s16  ;;  %v579_v23 = vsel %vm555_vm1, %v577_v4, %v578_v5  ;;  %v568_v24 = vrot.slane %v2548_v9, 2  ;;  %v569_v29 = vrot.slane %v414_v11, 2  ;;  %v571_v30 = vrot.slane %v2551_v10, 2  ;;  %2001 = vmatpush3.bf16.msra.mxu0 %v2171_v16  ;;  %v341_v8 = vld [vmem:[%s2469_s12 + $0x60] sm:$0xff]  ;;  %v342_v11 = vld [vmem:[%s2469_s12 + $0x68] sm:$0xff]  ;;  %s1931_s12 = sshll.u32 %s3349_s26, 3 }
  0x43   : > { %v473_v25 = vsel %vm458_vm2, %v471_v18, %v472_v19  ;;  %v2122_v28 = vpack.i.bf16 %v579_v23, %v576_v22  ;;  %v476_v31 = vsel %vm458_vm2, %v474_v20, %v475_v21  ;;  %v572_v32 = vrot.slane %v415_v17, 2  ;;  %2002 = vmatprep.subr.bf16.mxu0 %v2172_v43  ;;  %s3251_s22 = scalar_lea.vmem %s3312_s8, %s1931_s12 }
  0x44   : > { %v371_v33 = vrot.slane %v339_v6, 7  ;;  %v372_v34 = vrot.slane %v340_v7, 7  ;;  %v2107_v35 = vpack.i.bf16 %v476_v31, %v473_v25  ;;  %v570_v36 = vsel %vm555_vm1, %v568_v24, %v569_v29 }
  0x45   : > { %v369_v37 = vrot.slane %v337_v14, 7  ;;  %v370_v38 = vrot.slane %v338_v15, 7  ;;  %v573_v39 = vsel %vm555_vm1, %v571_v30, %v572_v32  ;;  %v375_v20 = vrot.slane %v343_v2, 7 }
  0x46   : > { %2123 = vrot.lane.b32.xlu1 %v2122_v28, %s2344_s24  ;;  %v2573_v40 = vsel %vm393_vm0, 0.0, %v371_v33  ;;  %v2576_v41 = vsel %vm393_vm0, 0.0, %v372_v34  ;;  %v420_v42 = vsel %vm393_vm0, %v371_v33, 0.0  ;;  %2108 = vrot.lane.b32.xlu0 %v2107_v35, %s2345_s16  ;;  %v2117_v44 = vpack.i.bf16 %v573_v39, %v570_v36 }
  0x47   : > { %v421_v45 = vsel %vm393_vm0, %v372_v34, 0.0  ;;  %v489_v46 = vrot.slane %v2573_v40, 1  ;;  %v490_v48 = vrot.slane %v420_v42, 1  ;;  %v492_v49 = vrot.slane %v2576_v41, 1  ;;  %2003 = vmatpush3.bf16.msra.mxu0 %v2172_v43 }
  0x48   : > { %v493_v50 = vrot.slane %v421_v45, 1  ;;  %v2587_v52 = vsel %vm393_vm0, 0.0, %v369_v37  ;;  %v2590_v53 = vsel %vm393_vm0, 0.0, %v370_v38  ;;  %v418_v55 = vsel %vm393_vm0, %v369_v37, 0.0 }
  0x49   : > { %v491_v54 = vsel %vm458_vm2, %v489_v46, %v490_v48  ;;  %v419_v56 = vsel %vm393_vm0, %v370_v38, 0.0  ;;  %v483_v57 = vrot.slane %v2587_v52, 1  ;;  %v484_v59 = vrot.slane %v418_v55, 1 }
  0x4a   : > { %v494_v58 = vsel %vm458_vm2, %v492_v49, %v493_v50  ;;  %v486_v60 = vrot.slane %v2590_v53, 1  ;;  %v487_v61 = vrot.slane %v419_v56, 1  ;;  %2118 = vrot.lane.b32.xlu0 %v2117_v44, %s2344_s24  ;;  %v586_v63 = vrot.slane %v2573_v40, 2 }
  0x4b   : > { %v2132_v62 = vpack.i.bf16 %v494_v58, %v491_v54  ;;  %v587_v0 = vrot.slane %v420_v42, 2  ;;  %v589_v1 = vrot.slane %v2576_v41, 2  ;;  %v485_v4 = vsel %vm458_vm2, %v483_v57, %v484_v59 }
  0x4c   : > { %v488_v5 = vsel %vm458_vm2, %v486_v60, %v487_v61  ;;  %v590_v6 = vrot.slane %v421_v45, 2  ;;  %v580_v7 = vrot.slane %v2587_v52, 2  ;;  %v581_v16 = vrot.slane %v418_v55, 2 }
  0x4d   : > { %2133 = vrot.lane.b32.xlu1 %v2132_v62, %s2345_s16  ;;  %v2127_v14 = vpack.i.bf16 %v488_v5, %v485_v4  ;;  %v588_v15 = vsel %vm555_vm1, %v586_v63, %v587_v0  ;;  %v583_v17 = vrot.slane %v2590_v53, 2  ;;  %v584_v19 = vrot.slane %v419_v56, 2  ;;  %v2173_v62 = vld [vmem:[%s3307_s3 + $0x18] sm:$0xff]  }
  0x4e   : > { %v591_v18 = vsel %vm555_vm1, %v589_v1, %v590_v6  ;;  %v376_v21 = vrot.slane %v344_v3, 7  ;;  %v582_v23 = vsel %vm555_vm1, %v580_v7, %v581_v16  ;;  %v373_v24 = vrot.slane %v341_v8, 7  ;;  %2020 = vmatprep.subr.bf16.mxu1 %v2173_v62 }
  0x4f   : > { %2128 = vrot.lane.b32.xlu0 %v2127_v14, %s2345_s16  ;;  %v2142_v22 = vpack.i.bf16 %v591_v18, %v588_v15  ;;  %v374_v25 = vrot.slane %v342_v11, 7  ;;  %v585_v28 = vsel %vm555_vm1, %v583_v17, %v584_v19  ;;  %v2616_v29 = vsel %vm393_vm0, 0.0, %v375_v20  ;;  %2021 = vmatpush3.bf16.msra.mxu1 %v2173_v62 }
  0x50   : > { %v2619_v30 = vsel %vm393_vm0, 0.0, %v376_v21  ;;  %v424_v31 = vsel %vm393_vm0, %v375_v20, 0.0  ;;  %v2137_v32 = vpack.i.bf16 %v585_v28, %v582_v23  ;;  %v425_v33 = vsel %vm393_vm0, %v376_v21, 0.0 }
  0x51   : > { %2143 = vrot.lane.b32.xlu1 %v2142_v22, %s2344_s24  ;;  %v501_v34 = vrot.slane %v2616_v29, 1  ;;  %v502_v35 = vrot.slane %v424_v31, 1  ;;  %v504_v36 = vrot.slane %v2619_v30, 1  ;;  %v505_v37 = vrot.slane %v425_v33, 1 }
  0x52   : > { %v2627_v38 = vsel %vm393_vm0, 0.0, %v373_v24  ;;  %v2630_v39 = vsel %vm393_vm0, 0.0, %v374_v25  ;;  %v422_v43 = vsel %vm393_vm0, %v373_v24, 0.0  ;;  %v423_v44 = vsel %vm393_vm0, %v374_v25, 0.0 }
  0x53   : > { %2138 = vrot.lane.b32.xlu0 %v2137_v32, %s2344_s24  ;;  %v503_v42 = vsel %vm458_vm2, %v501_v34, %v502_v35  ;;  %v495_v45 = vrot.slane %v2627_v38, 1  ;;  %v506_v46 = vsel %vm458_vm2, %v504_v36, %v505_v37  ;;  %v496_v48 = vrot.slane %v422_v43, 1 }
  0x54   : > { %v498_v49 = vrot.slane %v2630_v39, 1  ;;  %v499_v50 = vrot.slane %v423_v44, 1  ;;  %v2152_v54 = vpack.i.bf16 %v506_v46, %v503_v42  ;;  %v598_v55 = vrot.slane %v2616_v29, 2 }
  0x55   : > { %v599_v56 = vrot.slane %v424_v31, 2  ;;  %v601_v57 = vrot.slane %v2619_v30, 2  ;;  %v497_v58 = vsel %vm458_vm2, %v495_v45, %v496_v48  ;;  %v602_v60 = vrot.slane %v425_v33, 2 }
  0x56   : > { %v500_v59 = vsel %vm458_vm2, %v498_v49, %v499_v50  ;;  %v592_v61 = vrot.slane %v2627_v38, 2  ;;  %2153 = vrot.lane.b32.xlu1 %v2152_v54, %s2345_s16  ;;  %v593_v1 = vrot.slane %v422_v43, 2  ;;  %v595_v2 = vrot.slane %v2630_v39, 2 }
  0x57   : > { %v2147_v63 = vpack.i.bf16 %v500_v59, %v497_v58  ;;  %v600_v0 = vsel %vm555_vm1, %v598_v55, %v599_v56  ;;  %v603_v3 = vsel %vm555_vm1, %v601_v57, %v602_v60  ;;  %v596_v4 = vrot.slane %v423_v44, 2 }
  0x58   : > { %v2162_v5 = vpack.i.bf16 %v603_v3, %v600_v0  ;;  %v594_v6 = vsel %vm555_vm1, %v592_v61, %v593_v1  ;;  %vm652_vm3 = vcmask 261120   ;;  %vm669_vm4 = vcmask 523264  }
  0x59   : > { %2148 = vrot.lane.b32.xlu0 %v2147_v63, %s2345_s16  ;;  %v597_v7 = vsel %vm555_vm1, %v595_v2, %v596_v4  ;;  %vm749_vm5 = vcmask 785408   ;;  %vm1560_vm6 = vcmask 1041409   ;;  %vm1562_vm7 = vcmask 1042434  }
  0x5a   : > { %2163 = vrot.lane.b32.xlu1 %v2162_v5, %s2344_s24  ;;  %v2157_v8 = vpack.i.bf16 %v597_v7, %v594_v6  ;;  %vm1564_vm8 = vcmask 1043459   ;;  %vm1566_vm9 = vcmask 1044484   ;;  %vm1568_vm10 = vcmask 1045509  }
  0x5b   : > { %vm1570_vm11 = vcmask 1046534   ;;  %vm1572_vm12 = vcmask 1047559  }
  0x5d   : > { %2158 = vrot.lane.b32.xlu0 %v2157_v8, %s2344_s24 }
  0xab   : > { %v2099_v11 = vpop.permute.xlu1 %2098 }
  0xac   : > { %v2101_v14 = vunpack.i.h.bf16 %v2099_v11  ;;  %v2100_v15 = vunpack.i.l.bf16 %v2099_v11  ;;  %v2089_v16 = vpop.permute.xlu0 %2088 }
  0xad   : > { %v2091_v17 = vunpack.i.h.bf16 %v2089_v16  ;;  %v2090_v18 = vunpack.i.l.bf16 %v2089_v16 }
  0xaf   : > { %v653_v19 = vsel %vm652_vm3, %v2482_v12, %v2090_v18  ;;  %v654_v20 = vsel %vm652_vm3, %v2485_v13, %v2091_v17  ;;  %v2104_v21 = vpop.permute.xlu1 %2103 }
  0xb0   : > { %v670_v22 = vsel %vm669_vm4, %v653_v19, %v2100_v15  ;;  %v671_v23 = vsel %vm669_vm4, %v654_v20, %v2101_v14  ;;  %v2106_v24 = vunpack.i.h.bf16 %v2104_v21  ;;  %v2105_v25 = vunpack.i.l.bf16 %v2104_v21  ;;  %v2094_v28 = vpop.permute.xlu0 %2093 }
  0xb1   : > { %v686_v31 = vpack.c.bf16 %v671_v23, %v670_v22  ;;  %v2096_v32 = vunpack.i.h.bf16 %v2094_v28  ;;  %v2095_v33 = vunpack.i.l.bf16 %v2094_v28 }
  0xb3   : > { %2004 = vmatprep.mubr.msk.bf16.mxu0 %vm749_vm5, %v686_v31  ;;  %v656_v12 = vsel %vm652_vm3, %v2499_v27, %v2096_v32  ;;  %v655_v13 = vsel %vm652_vm3, %v2496_v26, %v2095_v33 }
  0xb4   : > { %v2114_v34 = vpop.permute.xlu1 %2113  ;;  %v672_v35 = vsel %vm669_vm4, %v655_v13, %v2105_v25  ;;  %v673_v36 = vsel %vm669_vm4, %v656_v12, %v2106_v24 }
  0xb5   : > { %v687_v37 = vpack.c.bf16 %v673_v36, %v672_v35  ;;  %v2116_v42 = vunpack.i.h.bf16 %v2114_v34  ;;  %v2115_v43 = vunpack.i.l.bf16 %v2114_v34 }
  0xb7   : > { %2005 = vmatmul.mubr.msk.bf16.vlgmr.msra.gmra.mxu0 %vm749_vm5, %v687_v37  ;;  %v660_v27 = vsel %vm652_vm3, %v2529_v51, %v2116_v42  ;;  %v659_v26 = vsel %vm652_vm3, %v2521_v47, %v2115_v43 }
  0xb8   : > { %v2124_v44 = vpop.permute.xlu1 %2123  ;;  %v2109_v45 = vpop.permute.xlu0 %2108 }
  0xb9   : > { %v2126_v46 = vunpack.i.h.bf16 %v2124_v44  ;;  %v2125_v48 = vunpack.i.l.bf16 %v2124_v44  ;;  %v2111_v49 = vunpack.i.h.bf16 %v2109_v45  ;;  %v2110_v50 = vunpack.i.l.bf16 %v2109_v45  ;;  %v2176_v45 = vld [vmem:[%s3307_s3] sm:$0xff]  }
  0xbb   : > { %v676_v54 = vsel %vm669_vm4, %v659_v26, %v2125_v48  ;;  %v677_v55 = vsel %vm669_vm4, %v660_v27, %v2126_v46  ;;  %v658_v59 = vsel %vm652_vm3, %v2551_v10, %v2111_v49  ;;  %v657_v60 = vsel %vm652_vm3, %v2548_v9, %v2110_v50  ;;  %v1932_v49 = vld [vmem:[%s3306_s2] ss:$0 sm:$0xff] }
  0xbc   : > { %v2119_v56 = vpop.permute.xlu0 %2118  ;;  %v689_v62 = vpack.c.bf16 %v677_v55, %v676_v54 }
  0xbd   : > { %v2121_v57 = vunpack.i.h.bf16 %v2119_v56  ;;  %v2120_v58 = vunpack.i.l.bf16 %v2119_v56 }
  0xbf   : > { %v2134_v61 = vpop.permute.xlu1 %2133  ;;  %v674_v51 = vsel %vm669_vm4, %v657_v60, %v2120_v58  ;;  %v675_v63 = vsel %vm669_vm4, %v658_v59, %v2121_v57 }
  0xc0   : > { %v688_v47 = vpack.c.bf16 %v675_v63, %v674_v51  ;;  %v2136_v0 = vunpack.i.h.bf16 %v2134_v61  ;;  %v2135_v1 = vunpack.i.l.bf16 %v2134_v61 }
  0xc1   : > { %v2129_v2 = vpop.permute.xlu0 %2128 }
  0xc2   : > { %v2131_v3 = vunpack.i.h.bf16 %v2129_v2  ;;  %v2130_v4 = vunpack.i.l.bf16 %v2129_v2  ;;  %2008 = vmatprep.mubr.msk.bf16.mxu0 %vm749_vm5, %v688_v47  ;;  %v664_v9 = vsel %vm652_vm3, %v2576_v41, %v2136_v0  ;;  %v663_v7 = vsel %vm652_vm3, %v2573_v40, %v2135_v1 }
  0xc3   : > { %v2144_v5 = vpop.permute.xlu1 %2143  ;;  %2009 = vmatmul.mubr.msk.bf16.gmra.mxu0 %vm749_vm5, %v689_v62 }
  0xc4   : > { %v2146_v10 = vunpack.i.h.bf16 %v2144_v5  ;;  %v2145_v6 = vunpack.i.l.bf16 %v2144_v5  ;;  %v662_v17 = vsel %vm652_vm3, %v2590_v53, %v2131_v3  ;;  %v661_v18 = vsel %vm652_vm3, %v2587_v52, %v2130_v4 }
  0xc5   : > { %v2139_v8 = vpop.permute.xlu0 %2138 }
  0xc6   : > { %v680_v11 = vsel %vm669_vm4, %v663_v7, %v2145_v6  ;;  %v681_v14 = vsel %vm669_vm4, %v664_v9, %v2146_v10  ;;  %v2141_v15 = vunpack.i.h.bf16 %v2139_v8  ;;  %v2140_v16 = vunpack.i.l.bf16 %v2139_v8 }
  0xc7   : > { %v691_v19 = vpack.c.bf16 %v681_v14, %v680_v11 }
  0xc8   : > { %v678_v20 = vsel %vm669_vm4, %v661_v18, %v2140_v16  ;;  %v679_v41 = vsel %vm669_vm4, %v662_v17, %v2141_v15  ;;  %v2154_v40 = vpop.permute.xlu1 %2153 }
  0xc9   : > { %v690_v21 = vpack.c.bf16 %v679_v41, %v678_v20  ;;  %v2156_v22 = vunpack.i.h.bf16 %v2154_v40  ;;  %v2155_v23 = vunpack.i.l.bf16 %v2154_v40 }
  0xcb   : > { %v2149_v24 = vpop.permute.xlu0 %2148  ;;  %2012 = vmatprep.mubr.msk.bf16.mxu0 %vm749_vm5, %v690_v21  ;;  %v668_v53 = vsel %vm652_vm3, %v2619_v30, %v2156_v22  ;;  %v667_v52 = vsel %vm652_vm3, %v2616_v29, %v2155_v23 }
  0xcc   : > { %v2151_v25 = vunpack.i.h.bf16 %v2149_v24  ;;  %v2150_v28 = vunpack.i.l.bf16 %v2149_v24  ;;  %2013 = vmatmul.mubr.msk.bf16.gmra.mxu0 %vm749_vm5, %v691_v19  ;;  %v2164_v31 = vpop.permute.xlu1 %2163 }
  0xcd   : > { %v2166_v32 = vunpack.i.h.bf16 %v2164_v31  ;;  %v2165_v33 = vunpack.i.l.bf16 %v2164_v31 }
  0xce   : > { %v666_v12 = vsel %vm652_vm3, %v2630_v39, %v2151_v25  ;;  %v665_v13 = vsel %vm652_vm3, %v2627_v38, %v2150_v28  ;;  %v2174_v38 = vld [vmem:[%s3307_s3 + $0x10] sm:$0xff]   ;;  %v2175_v39 = vld [vmem:[%s3307_s3 + $0x8] sm:$0xff]  }
  0xcf   : > { %v2159_v34 = vpop.permute.xlu0 %2158  ;;  %v684_v35 = vsel %vm669_vm4, %v667_v52, %v2165_v33  ;;  %v685_v36 = vsel %vm669_vm4, %v668_v53, %v2166_v32  ;;  %2022 = vmatprep.subr.bf16.mxu1 %v2174_v38 }
  0xd0   : > { %v2161_v37 = vunpack.i.h.bf16 %v2159_v34  ;;  %v2160_v42 = vunpack.i.l.bf16 %v2159_v34  ;;  %v693_v30 = vpack.c.bf16 %v685_v36, %v684_v35  ;;  %2023 = vmatpush3.bf16.msra.mxu1 %v2174_v38 }
  0xd1   : > { %2024 = vmatprep.subr.bf16.mxu1 %v2175_v39 }
  0xd2   : > { %v682_v43 = vsel %vm669_vm4, %v665_v13, %v2160_v42  ;;  %v683_v29 = vsel %vm669_vm4, %v666_v12, %v2161_v37 }
  0xd3   : > { %v692_v44 = vpack.c.bf16 %v683_v29, %v682_v43 }
  0xd4   : > { %2025 = vmatpush3.bf16.msra.mxu1 %v2175_v39 }
  0xd5   : > { %2016 = vmatprep.mubr.msk.bf16.mxu0 %vm749_vm5, %v692_v44  ;;  %2026 = vmatprep.subr.bf16.mxu1 %v2176_v45 }
  0xd6   : > { %2017 = vmatmul.mubr.msk.bf16.gmra.mxu0 %vm749_vm5, %v693_v30  ;;  %v2815_v30 = vld [vmem:[%s3308_s4] ss:$0 sm:$0xff] }
  0xd8   : > { %2027 = vmatpush3.bf16.msra.mxu1 %v2176_v45 }
 0x177   : > { %v2006_v46 = vpop.f32.mrf.mxu0 }
 0x178   : > { %v2728_v54 = vadd.f32 %v2006_v46, %v1932_v49 }
 0x179   : > { %v808_v48 = vpop.f32.mrf.mxu0 }
 0x17a   : > { %v2724_v27 = vadd.f32 %v1932_v49, %v808_v48  ;;  %v873_v60 = vmax.f32 %v2728_v54, 0.0 }
 0x17b   : > { %v2007_v50 = vpop.f32.mrf.mxu0 }
 0x17c   : > { %v2726_v26 = vadd.f32 %v2007_v50, %v1932_v49  ;;  %v871_v58 = vmax.f32 %v2724_v27, 0.0 }
 0x17d   : > { %v811_v55 = vpop.f32.mrf.mxu0 }
 0x17e   : > { %v2730_v56 = vadd.f32 %v1932_v49, %v811_v55  ;;  %v3326_v57 = vmax.f32 %v2726_v26, 0.0 }
 0x180   : > { %v872_v59 = vmax.f32 %v2730_v56, 0.0  ;;  %v898_v62 = vpack.c.bf16 %v3326_v57, %v873_v60 }
 0x182   : > { %v897_v61 = vpack.c.bf16 %v872_v59, %v871_v58 }
 0x183   : > { %v2010_v51 = vpop.f32.mrf.mxu0 }
 0x184   : > { %2028 = vmatprep.mubr.msk.bf16.mxu1 %vm669_vm4, %v897_v61  ;;  %v2750_v2 = vadd.f32 %v2010_v51, %v1932_v49  ;;  %v2825_v61 = vld [vmem:[%s3309_s5] ss:$0 sm:$0xff] }
 0x185   : > { %v824_v63 = vpop.f32.mrf.mxu0  ;;  %2029 = vmatmul.mubr.msk.bf16.vlgmr.msra.gmra.mxu1 %vm669_vm4, %v898_v62 }
 0x186   : > { %v2746_v0 = vadd.f32 %v1932_v49, %v824_v63  ;;  %v3323_v7 = vmax.f32 %v2750_v2, 0.0 }
 0x187   : > { %v2011_v47 = vpop.f32.mrf.mxu0 }
 0x188   : > { %v2748_v1 = vadd.f32 %v2011_v47, %v1932_v49  ;;  %v3325_v6 = vmax.f32 %v2746_v0, 0.0  ;;  %v3332_v54 = vmax.f32 %v2746_v0, 0.0 }
 0x189   : > { %v827_v3 = vpop.f32.mrf.mxu0 }
 0x18a   : > { %v2752_v4 = vadd.f32 %v1932_v49, %v827_v3  ;;  %v3322_v5 = vmax.f32 %v2748_v1, 0.0 }
 0x18c   : > { %v2014_v10 = vpop.f32.mrf.mxu0  ;;  %v3324_v9 = vmax.f32 %v2752_v4, 0.0  ;;  %v900_v14 = vpack.c.bf16 %v3322_v5, %v3323_v7 }
 0x18d   : > { %v2771_v18 = vadd.f32 %v2014_v10, %v1932_v49 }
 0x18e   : > { %v840_v8 = vpop.f32.mrf.mxu0  ;;  %v899_v11 = vpack.c.bf16 %v3324_v9, %v3325_v6 }
 0x18f   : > { %v2766_v16 = vadd.f32 %v1932_v49, %v840_v8  ;;  %v3319_v22 = vmax.f32 %v2771_v18, 0.0 }
 0x190   : > { %v2015_v15 = vpop.f32.mrf.mxu0  ;;  %2032 = vmatprep.mubr.msk.bf16.mxu1 %vm669_vm4, %v899_v11 }
 0x191   : > { %v2768_v17 = vadd.f32 %v2015_v15, %v1932_v49  ;;  %2033 = vmatmul.mubr.msk.bf16.gmra.mxu1 %vm669_vm4, %v900_v14  ;;  %v3321_v21 = vmax.f32 %v2766_v16, 0.0 }
 0x192   : > { %v843_v19 = vpop.f32.mrf.mxu0 }
 0x193   : > { %v2774_v20 = vadd.f32 %v1932_v49, %v843_v19  ;;  %v3318_v41 = vmax.f32 %v2768_v17, 0.0 }
 0x195   : > { %v3320_v40 = vmax.f32 %v2774_v20, 0.0  ;;  %v902_v25 = vpack.c.bf16 %v3318_v41, %v3319_v22 }
 0x196   : > { %v2018_v23 = vpop.f32.mrf.mxu0 }
 0x197   : > { %v901_v24 = vpack.c.bf16 %v3320_v40, %v3321_v21  ;;  %v2794_v32 = vadd.f32 %v2018_v23, %v1932_v49 }
 0x198   : > { %v856_v28 = vpop.f32.mrf.mxu0 }
 0x199   : > { %2036 = vmatprep.mubr.msk.bf16.mxu1 %vm669_vm4, %v901_v24  ;;  %v2790_v52 = vadd.f32 %v1932_v49, %v856_v28  ;;  %v3315_v36 = vmax.f32 %v2794_v32, 0.0 }
 0x19a   : > { %v2019_v53 = vpop.f32.mrf.mxu0  ;;  %2037 = vmatmul.mubr.msk.bf16.gmra.mxu1 %vm669_vm4, %v902_v25 }
 0x19b   : > { %v2792_v31 = vadd.f32 %v2019_v53, %v1932_v49  ;;  %v3317_v34 = vmax.f32 %v2790_v52, 0.0 }
 0x19c   : > { %v859_v33 = vpop.f32.mrf.mxu0 }
 0x19d   : > { %v2796_v12 = vadd.f32 %v1932_v49, %v859_v33  ;;  %v3314_v13 = vmax.f32 %v2792_v31, 0.0 }
 0x19f   : > { %v3316_v35 = vmax.f32 %v2796_v12, 0.0  ;;  %v904_v42 = vpack.c.bf16 %v3314_v13, %v3315_v36 }
 0x1a1   : > { %v903_v37 = vpack.c.bf16 %v3316_v35, %v3317_v34 }
 0x1a3   : > { %2040 = vmatprep.mubr.msk.bf16.mxu1 %vm669_vm4, %v903_v37 }
 0x1a4   : > { %2041 = vmatmul.mubr.msk.bf16.gmra.mxu1 %vm669_vm4, %v904_v42 }
 0x245   : > { %v2030_v43 = vpop.f32.mrf.mxu1 }
 0x246   : > { %v1002_v29 = vadd.f32 %v2030_v43, %v2815_v30 }
 0x247   : > { %v993_v44 = vpop.f32.mrf.mxu1 }
 0x248   : > { %2177 = vtanh.f32 %v1002_v29  ;;  %v994_v38 = vadd.f32 %v2815_v30, %v993_v44 }
 0x249   : > { %v2031_v39 = vpop.f32.mrf.mxu1 }
 0x24a   : > { %2179 = vtanh.f32 %v994_v38  ;;  %v1005_v45 = vadd.f32 %v2031_v39, %v2815_v30 }
 0x24b   : > { %v996_v46 = vpop.f32.mrf.mxu1 }
 0x24c   : > { %2181 = vtanh.f32 %v1005_v45  ;;  %v997_v48 = vadd.f32 %v2815_v30, %v996_v46 }
 0x24e   : > { %2183 = vtanh.f32 %v997_v48 }
 0x251   : > { %v2034_v49 = vpop.f32.mrf.mxu1 }
 0x252   : > { %v1018_v50 = vadd.f32 %v2034_v49, %v2815_v30 }
 0x253   : > { %v1009_v55 = vpop.f32.mrf.mxu1 }
 0x254   : > { %2185 = vtanh.f32 %v1018_v50  ;;  %v1010_v62 = vadd.f32 %v2815_v30, %v1009_v55 }
 0x255   : > { %v2178_v51 = vpop.eup %2177  ;;  %v2035_v63 = vpop.f32.mrf.mxu1 }
 0x256   : > { %2187 = vtanh.f32 %v1010_v62  ;;  %v1080_v47 = vmul.f32 %v2178_v51, %v2825_v61  ;;  %v1021_v25 = vadd.f32 %v2035_v63, %v2815_v30 }
 0x257   : > { %v2180_v3 = vpop.eup %2179  ;;  %v1012_v10 = vpop.f32.mrf.mxu1 }
 0x258   : > { %v1013_v8 = vadd.f32 %v2815_v30, %v1012_v10  ;;  %v1100_v11 = vsel %vm652_vm3, %v1080_v47, 0.0  ;;  %v1078_v14 = vmul.f32 %v2180_v3, %v2825_v61 }
 0x259   : > { %v2182_v15 = vpop.eup %2181  ;;  %1101 = vadd.xlane.f32.xlu0 %v1100_v11 }
 0x25a   : > { %v2038_v19 = vpop.f32.mrf.mxu1  ;;  %2189 = vtanh.f32 %v1013_v8  ;;  %v1094_v53 = vsel %vm652_vm3, %v1078_v14, 0.0  ;;  %v1081_v42 = vmul.f32 %v2182_v15, %v2825_v61 }
 0x25b   : > { %v1034_v23 = vadd.f32 %v2038_v19, %v2815_v30  ;;  %v2184_v24 = vpop.eup %2183 }
 0x25c   : > { %v1025_v28 = vpop.f32.mrf.mxu1  ;;  %v1079_v37 = vmul.f32 %v2184_v24, %v2825_v61  ;;  %v1103_v45 = vsel %vm652_vm3, %v1081_v42, 0.0 }
 0x25d   : > { %2191 = vtanh.f32 %v1034_v23  ;;  %v1026_v33 = vadd.f32 %v2815_v30, %v1025_v28  ;;  %1095 = vadd.xlane.f32.xlu0 %v1094_v53 }
 0x25e   : > { %v2039_v43 = vpop.f32.mrf.mxu1  ;;  %v1097_v44 = vsel %vm652_vm3, %v1079_v37, 0.0 }
 0x25f   : > { %2193 = vtanh.f32 %v1026_v33  ;;  %v1037_v29 = vadd.f32 %v2039_v43, %v2815_v30  ;;  %1098 = vadd.xlane.f32.xlu1 %v1097_v44 }
 0x260   : > { %2195 = vtanh.f32 %v1021_v25  ;;  %v1028_v38 = vpop.f32.mrf.mxu1 }
 0x261   : > { %2197 = vtanh.f32 %v1037_v29  ;;  %v1029_v39 = vadd.f32 %v2815_v30, %v1028_v38  ;;  %v2186_v46 = vpop.eup %2185  ;;  %1104 = vadd.xlane.f32.xlu0 %v1103_v45 }
 0x262   : > { %v1084_v48 = vmul.f32 %v2186_v46, %v2825_v61 }
 0x263   : > { %2199 = vtanh.f32 %v1029_v39  ;;  %v2188_v49 = vpop.eup %2187 }
 0x264   : > { %v2042_v50 = vpop.f32.mrf.mxu1  ;;  %v1112_v55 = vsel %vm652_vm3, %v1084_v48, 0.0  ;;  %v1082_v62 = vmul.f32 %v2188_v49, %v2825_v61 }
 0x265   : > { %1113 = vadd.xlane.f32.xlu0 %v1112_v55  ;;  %v1050_v3 = vadd.f32 %v2042_v50, %v2815_v30 }
 0x266   : > { %v1041_v51 = vpop.f32.mrf.mxu1  ;;  %v1106_v11 = vsel %vm652_vm3, %v1082_v62, 0.0 }
 0x267   : > { %v1042_v63 = vadd.f32 %v2815_v30, %v1041_v51  ;;  %v2190_v47 = vpop.eup %2189 }
 0x268   : > { %v2043_v10 = vpop.f32.mrf.mxu1  ;;  %v1083_v14 = vmul.f32 %v2190_v47, %v2825_v61 }
 0x269   : > { %2201 = vtanh.f32 %v1042_v63  ;;  %v1053_v8 = vadd.f32 %v2043_v10, %v2815_v30  ;;  %1107 = vadd.xlane.f32.xlu0 %v1106_v11 }
 0x26a   : > { %v2192_v15 = vpop.eup %2191  ;;  %v1044_v19 = vpop.f32.mrf.mxu1  ;;  %v1109_v33 = vsel %vm652_vm3, %v1083_v14, 0.0 }
 0x26b   : > { %2203 = vtanh.f32 %v1053_v8  ;;  %v1045_v23 = vadd.f32 %v2815_v30, %v1044_v19  ;;  %v1088_v24 = vmul.f32 %v2192_v15, %v2825_v61 }
 0x26c   : > { %v2194_v25 = vpop.eup %2193  ;;  %2205 = vtanh.f32 %v1050_v3 }
 0x26d   : > { %v2196_v28 = vpop.eup %2195  ;;  %2207 = vtanh.f32 %v1045_v23  ;;  %v1124_v53 = vsel %vm652_vm3, %v1088_v24, 0.0  ;;  %v1086_v37 = vmul.f32 %v2194_v25, %v2825_v61  ;;  %1110 = vadd.xlane.f32.xlu0 %v1109_v33 }
 0x26e   : > { %v2198_v42 = vpop.eup %2197  ;;  %1125 = vadd.xlane.f32.xlu1 %v1124_v53  ;;  %v1085_v39 = vmul.f32 %v2196_v28, %v2825_v61 }
 0x26f   : > { %v1089_v43 = vmul.f32 %v2198_v42, %v2825_v61  ;;  %v1118_v38 = vsel %vm652_vm3, %v1086_v37, 0.0 }
 0x270   : > { %v2200_v29 = vpop.eup %2199  ;;  %v1115_v46 = vsel %vm652_vm3, %v1085_v39, 0.0 }
 0x271   : > { %v1127_v30 = vsel %vm652_vm3, %v1089_v43, 0.0  ;;  %v1087_v44 = vmul.f32 %v2200_v29, %v2825_v61  ;;  %1119 = vadd.xlane.f32.xlu0 %v1118_v38 }
 0x272   : > { %1128 = vadd.xlane.f32.xlu1 %v1127_v30 }
 0x273   : > { %v1121_v45 = vsel %vm652_vm3, %v1087_v44, 0.0 }
 0x275   : > { %1116 = vadd.xlane.f32.xlu0 %v1115_v46 }
 0x276   : > { %v2202_v48 = vpop.eup %2201  ;;  %1122 = vadd.xlane.f32.xlu1 %v1121_v45 }
 0x277   : > { %v1090_v49 = vmul.f32 %v2202_v48, %v2825_v61 }
 0x278   : > { %v2204_v50 = vpop.eup %2203 }
 0x279   : > { %v2206_v55 = vpop.eup %2205  ;;  %v1130_v62 = vsel %vm652_vm3, %v1090_v49, 0.0  ;;  %v1093_v51 = vmul.f32 %v2204_v50, %v2825_v61 }
 0x27a   : > { %v2208_v63 = vpop.eup %2207  ;;  %1131 = vadd.xlane.f32.xlu1 %v1130_v62  ;;  %v1092_v8 = vmul.f32 %v2206_v55, %v2825_v61 }
 0x27b   : > { %v1091_v47 = vmul.f32 %v2208_v63, %v2825_v61  ;;  %v1139_v3 = vsel %vm652_vm3, %v1093_v51, 0.0 }
 0x27c   : > { %1140 = vadd.xlane.f32.xlu0 %v1139_v3  ;;  %v1136_v11 = vsel %vm652_vm3, %v1092_v8, 0.0 }
 0x27d   : > { %v1133_v10 = vsel %vm652_vm3, %v1091_v47, 0.0 }
 0x27e   : > { %1134 = vadd.xlane.f32.xlu1 %v1133_v10 }
 0x282   : > { %1137 = vadd.xlane.f32.xlu1 %v1136_v11 }
 0x2e2   : > { %v1102_v14 = vpop.xlane.xlu0 %1101 }
 0x2e3   : > { %v1154_v15 = vrot.slane %v1102_v14, 4 }
 0x2e5   : > { %v1155_v19 = vmax.f32 %v1102_v14, %v1154_v15 }
 0x2e6   : > { %v1096_v23 = vpop.xlane.xlu0 %1095 }
 0x2e7   : > { %v1156_v24 = vrot.slane %v1155_v19, 2  ;;  %v1142_v25 = vrot.slane %v1096_v23, 4 }
 0x2e8   : > { %v1099_v28 = vpop.xlane.xlu1 %1098 }
 0x2e9   : > { %v1157_v53 = vmax.f32 %v1155_v19, %v1156_v24  ;;  %v1143_v33 = vmax.f32 %v1096_v23, %v1142_v25  ;;  %v1148_v37 = vrot.slane %v1099_v28, 4 }
 0x2ea   : > { %v1105_v42 = vpop.xlane.xlu0 %1104 }
 0x2eb   : > { %v1158_v43 = vrot.slane %v1157_v53, 1  ;;  %v1144_v29 = vrot.slane %v1143_v33, 2  ;;  %v1149_v30 = vmax.f32 %v1099_v28, %v1148_v37  ;;  %v1160_v44 = vrot.slane %v1105_v42, 4 }
 0x2ed   : > { %v1159_v61 = vmax.f32 %v1157_v53, %v1158_v43  ;;  %v1145_v38 = vmax.f32 %v1143_v33, %v1144_v29  ;;  %v1150_v39 = vrot.slane %v1149_v30, 2  ;;  %v1161_v45 = vmax.f32 %v1105_v42, %v1160_v44 }
 0x2ee   : > { %v1114_v46 = vpop.xlane.xlu0 %1113 }
 0x2ef   : > { %v1240_v48 = vsub.f32 %v1102_v14, %v1159_v61  ;;  %v1146_v49 = vrot.slane %v1145_v38, 1  ;;  %v1151_v50 = vmax.f32 %v1149_v30, %v1150_v39  ;;  %v1162_v55 = vrot.slane %v1161_v45, 2 }
 0x2f0   : > { %v1178_v62 = vrot.slane %v1114_v46, 4 }
 0x2f1   : > { %v1258_v51 = vmul.f32 1.442695, %v1240_v48  ;;  %v1147_v63 = vmax.f32 %v1145_v38, %v1146_v49  ;;  %v1152_v47 = vrot.slane %v1151_v50, 1  ;;  %v1163_v3 = vmax.f32 %v1161_v45, %v1162_v55 }
 0x2f2   : > { %v1179_v10 = vmax.f32 %v1114_v46, %v1178_v62  ;;  %v1108_v8 = vpop.xlane.xlu0 %1107 }
 0x2f3   : > { %2209 = vpow2.f32 %v1258_v51  ;;  %v1238_v11 = vsub.f32 %v1096_v23, %v1147_v63  ;;  %v1153_v15 = vmax.f32 %v1151_v50, %v1152_v47  ;;  %v1164_v19 = vrot.slane %v1163_v3, 1 }
 0x2f4   : > { %v1180_v24 = vrot.slane %v1179_v10, 2  ;;  %v1166_v25 = vrot.slane %v1108_v8, 4 }
 0x2f5   : > { %v1254_v53 = vmul.f32 1.442695, %v1238_v11  ;;  %v1239_v33 = vsub.f32 %v1099_v28, %v1153_v15  ;;  %v1165_v37 = vmax.f32 %v1163_v3, %v1164_v19 }
 0x2f6   : > { %v1181_v14 = vmax.f32 %v1179_v10, %v1180_v24  ;;  %v1167_v29 = vmax.f32 %v1108_v8, %v1166_v25  ;;  %v1111_v30 = vpop.xlane.xlu0 %1110 }
 0x2f7   : > { %v1126_v43 = vpop.xlane.xlu1 %1125  ;;  %2211 = vpow2.f32 %v1254_v53  ;;  %v1256_v44 = vmul.f32 1.442695, %v1239_v33  ;;  %v1241_v61 = vsub.f32 %v1105_v42, %v1165_v37  ;;  %v1172_v48 = vrot.slane %v1111_v30, 4 }
 0x2f8   : > { %v1202_v38 = vrot.slane %v1126_v43, 4  ;;  %v1182_v39 = vrot.slane %v1181_v14, 1  ;;  %v1168_v45 = vrot.slane %v1167_v29, 2 }
 0x2f9   : > { %2213 = vpow2.f32 %v1256_v44  ;;  %v1260_v23 = vmul.f32 1.442695, %v1241_v61  ;;  %v1173_v28 = vmax.f32 %v1111_v30, %v1172_v48 }
 0x2fa   : > { %v1203_v49 = vmax.f32 %v1126_v43, %v1202_v38  ;;  %v1183_v50 = vmax.f32 %v1181_v14, %v1182_v39  ;;  %v1169_v55 = vmax.f32 %v1167_v29, %v1168_v45  ;;  %v2872_v51 = vpop.xlane.xlu0 %1119 }
 0x2fb   : > { %v2870_v62 = vpop.xlane.xlu1 %1128  ;;  %2215 = vpow2.f32 %v1260_v23  ;;  %v1190_v42 = vrot.slane %v2872_v51, 4  ;;  %v1174_v11 = vrot.slane %v1173_v28, 2 }
 0x2fc   : > { %v1204_v63 = vrot.slane %v1203_v49, 2  ;;  %v1208_v47 = vrot.slane %v2870_v62, 4  ;;  %v1244_v3 = vsub.f32 %v1114_v46, %v1183_v50  ;;  %v1170_v10 = vrot.slane %v1169_v55, 1 }
 0x2fd   : > { %v1191_v24 = vmax.f32 %v2872_v51, %v1190_v42  ;;  %v1175_v33 = vmax.f32 %v1173_v28, %v1174_v11 }
 0x2fe   : > { %v1205_v15 = vmax.f32 %v1203_v49, %v1204_v63  ;;  %v1209_v19 = vmax.f32 %v2870_v62, %v1208_v47  ;;  %v1266_v25 = vmul.f32 1.442695, %v1244_v3  ;;  %v1171_v53 = vmax.f32 %v1169_v55, %v1170_v10  ;;  %v2881_v38 = vpop.xlane.xlu0 %1116 }
 0x2ff   : > { %v2878_v37 = vpop.xlane.xlu1 %1122  ;;  %v1192_v61 = vrot.slane %v1191_v24, 2  ;;  %v1176_v45 = vrot.slane %v1175_v33, 1  ;;  %v1184_v42 = vrot.slane %v2881_v38, 4 }
 0x300   : > { %v1206_v14 = vrot.slane %v1205_v15, 1  ;;  %v1210_v29 = vrot.slane %v1209_v19, 2  ;;  %v1196_v44 = vrot.slane %v2878_v37, 4  ;;  %v2883_v46 = vpop.eup %2209  ;;  %2217 = vpow2.f32 %v1266_v25 }
 0x301   : > { %v1242_v39 = vsub.f32 %v1108_v8, %v1171_v53  ;;  %v1298_v48 = vrot.slane %v2883_v46, 4  ;;  %v1177_v28 = vmax.f32 %v1175_v33, %v1176_v45  ;;  %v1193_v63 = vmax.f32 %v1191_v24, %v1192_v61 }
 0x302   : > { %v1207_v23 = vmax.f32 %v1205_v15, %v1206_v14  ;;  %v1211_v49 = vmax.f32 %v1209_v19, %v1210_v29  ;;  %v1197_v50 = vmax.f32 %v2878_v37, %v1196_v44 }
 0x303   : > { %v1262_v55 = vmul.f32 1.442695, %v1242_v39  ;;  %v2887_v47 = vpop.xlane.xlu1 %1131  ;;  %v1299_v3 = vadd.f32 %v2883_v46, %v1298_v48  ;;  %v1243_v53 = vsub.f32 %v1111_v30, %v1177_v28  ;;  %v1194_v15 = vrot.slane %v1193_v63, 1 }
 0x304   : > { %v1248_v10 = vsub.f32 %v1126_v43, %v1207_v23  ;;  %v1212_v11 = vrot.slane %v1211_v49, 1  ;;  %v1198_v25 = vrot.slane %v1197_v50, 2  ;;  %v2891_v8 = vpop.eup %2211  ;;  %v1214_v19 = vrot.slane %v2887_v47, 4 }
 0x305   : > { %2219 = vpow2.f32 %v1262_v55  ;;  %v1300_v14 = vrot.slane %v1299_v3, 2  ;;  %v1286_v33 = vrot.slane %v2891_v8, 4  ;;  %v1264_v61 = vmul.f32 1.442695, %v1243_v53 }
 0x306   : > { %v1274_v24 = vmul.f32 1.442695, %v1248_v10  ;;  %v1213_v29 = vmax.f32 %v1211_v49, %v1212_v11  ;;  %v2895_v44 = vpop.eup %2213  ;;  %v1199_v39 = vmax.f32 %v1197_v50, %v1198_v25  ;;  %v1195_v45 = vmax.f32 %v1193_v63, %v1194_v15 }
 0x307   : > { %v1215_v43 = vmax.f32 %v2887_v47, %v1214_v19  ;;  %v1287_v48 = vadd.f32 %v2891_v8, %v1286_v33  ;;  %v1292_v23 = vrot.slane %v2895_v44, 4  ;;  %v1185_v30 = vmax.f32 %v2881_v38, %v1184_v42  ;;  %v2908_v33 = vpop.xlane.xlu1 %1134 }
 0x308   : > { %2221 = vpow2.f32 %v1274_v24  ;;  %v2901_v55 = vpop.eup %2215  ;;  %v1249_v28 = vsub.f32 %v2870_v62, %v1213_v29  ;;  %v1200_v49 = vrot.slane %v1199_v39, 1  ;;  %v1246_v10 = vsub.f32 %v2872_v51, %v1195_v45  ;;  %v2914_v45 = vpop.xlane.xlu0 %1140 }
 0x309   : > { %2223 = vpow2.f32 %v1264_v61  ;;  %v2905_v11 = vadd.f32 %v1300_v14, %v1299_v3  ;;  %v1288_v50 = vrot.slane %v1287_v48, 2  ;;  %v1293_v63 = vadd.f32 %v2895_v44, %v1292_v23 }
 0x30a   : > { %v1276_v25 = vmul.f32 1.442695, %v1249_v28  ;;  %v1201_v53 = vmax.f32 %v1199_v39, %v1200_v49  ;;  %v1270_v15 = vmul.f32 1.442695, %v1246_v10  ;;  %v1216_v19 = vrot.slane %v1215_v43, 2 }
 0x30b   : > { %v1289_v42 = vadd.f32 %v1288_v50, %v1287_v48  ;;  %v1294_v24 = vrot.slane %v1293_v63, 2  ;;  %v1304_v13 = vrot.slane %v2901_v55, 4  ;;  %v1186_v51 = vrot.slane %v1185_v30, 2 }
 0x30c   : > { %2225 = vpow2.f32 %v1276_v25  ;;  %v1247_v62 = vsub.f32 %v2878_v37, %v1201_v53  ;;  %v1217_v29 = vmax.f32 %v1215_v43, %v1216_v19  ;;  %v1302_v39 = vrot.slane %v2905_v11, 1 }
 0x30d   : > { %v2912_v3 = vpop.eup %2217  ;;  %v1290_v14 = vrot.slane %v1289_v42, 1  ;;  %v1295_v61 = vadd.f32 %v1294_v24, %v1293_v63  ;;  %2227 = vpow2.f32 %v1270_v15  ;;  %v1187_v48 = vmax.f32 %v1185_v30, %v1186_v51  ;;  %v2920_v63 = vpop.xlane.xlu1 %1137 }
 0x30e   : > { %v1272_v23 = vmul.f32 1.442695, %v1247_v62  ;;  %v1218_v28 = vrot.slane %v1217_v29, 1  ;;  %v1305_v50 = vadd.f32 %v2901_v55, %v1304_v13  ;;  %v1220_v37 = vrot.slane %v2908_v33, 4 }
 0x30f   : > { %v1291_v49 = vadd.f32 %v1290_v14, %v1289_v42  ;;  %v1296_v10 = vrot.slane %v1295_v61, 1  ;;  %v1188_v25 = vrot.slane %v1187_v48, 1  ;;  %v1232_v53 = vrot.slane %v2914_v45, 4 }
 0x310   : > { %2229 = vpow2.f32 %v1272_v23  ;;  %v1219_v43 = vmax.f32 %v1217_v29, %v1218_v28  ;;  %v1322_v24 = vrot.slane %v2912_v3, 4  ;;  %v1221_v30 = vmax.f32 %v2908_v33, %v1220_v37 }
 0x311   : > { %2231 = vrcp.f32 %v1291_v49  ;;  %v1297_v19 = vadd.f32 %v1296_v10, %v1295_v61  ;;  %v1189_v62 = vmax.f32 %v1187_v48, %v1188_v25  ;;  %v1233_v29 = vmax.f32 %v2914_v45, %v1232_v53 }
 0x312   : > { %v2922_v15 = vpop.eup %2219  ;;  %v1250_v13 = vsub.f32 %v2887_v47, %v1219_v43  ;;  %v1306_v51 = vrot.slane %v1305_v50, 2  ;;  %v1222_v14 = vrot.slane %v1221_v30, 2  ;;  %v1226_v23 = vrot.slane %v2920_v63, 4 }
 0x313   : > { %v1310_v42 = vrot.slane %v2922_v15, 4  ;;  %2233 = vrcp.f32 %v1297_v19  ;;  %v1245_v10 = vsub.f32 %v2881_v38, %v1189_v62  ;;  %v1234_v37 = vrot.slane %v1233_v29, 2 }
 0x314   : > { %v1278_v49 = vmul.f32 1.442695, %v1250_v13  ;;  %v1223_v48 = vmax.f32 %v1221_v30, %v1222_v14  ;;  %v1227_v43 = vmax.f32 %v2920_v63, %v1226_v23  ;;  %v1323_v25 = vadd.f32 %v2912_v3, %v1322_v24 }
 0x315   : > { %v2930_v28 = vpop.eup %2221  ;;  %v1311_v61 = vadd.f32 %v2922_v15, %v1310_v42  ;;  %v1268_v35 = vmul.f32 1.442695, %v1245_v10  ;;  %v1307_v34 = vadd.f32 %v1306_v51, %v1305_v50  ;;  %v1235_v13 = vmax.f32 %v1233_v29, %v1234_v37 }
 0x316   : > { %v2934_v36 = vpop.eup %2223  ;;  %v1346_v47 = vrot.slane %v2930_v28, 4  ;;  %2235 = vpow2.f32 %v1278_v49  ;;  %v1224_v42 = vrot.slane %v1223_v48, 1  ;;  %v1228_v41 = vrot.slane %v1227_v43, 2 }
 0x317   : > { %v1312_v53 = vrot.slane %v1311_v61, 2  ;;  %v1316_v19 = vrot.slane %v2934_v36, 4  ;;  %2237 = vpow2.f32 %v1268_v35  ;;  %v1236_v14 = vrot.slane %v1235_v13, 1 }
 0x318   : > { %v1347_v38 = vadd.f32 %v2930_v28, %v1346_v47  ;;  %v1225_v30 = vmax.f32 %v1223_v48, %v1224_v42  ;;  %v1229_v23 = vmax.f32 %v1227_v43, %v1228_v41  ;;  %v1324_v24 = vrot.slane %v1323_v25, 2 }
 0x319   : > { %v1317_v62 = vadd.f32 %v2934_v36, %v1316_v19  ;;  %v2942_v22 = vpop.eup %2225  ;;  %v1303_v49 = vadd.f32 %v1302_v39, %v2905_v11  ;;  %v1313_v10 = vadd.f32 %v1312_v53, %v1311_v61  ;;  %v1308_v51 = vrot.slane %v1307_v34, 1 }
 0x31a   : > { %v2944_v40 = vpop.eup %2227  ;;  %v1352_v50 = vrot.slane %v2942_v22, 4  ;;  %v1251_v47 = vsub.f32 %v2908_v33, %v1225_v30  ;;  %v1237_v35 = vmax.f32 %v1235_v13, %v1236_v14  ;;  %v1348_v19 = vrot.slane %v1347_v38, 2 }
 0x31b   : > { %v1318_v29 = vrot.slane %v1317_v62, 2  ;;  %v1334_v37 = vrot.slane %v2944_v40, 4  ;;  %v1230_v42 = vrot.slane %v1229_v23, 1  ;;  %v1325_v61 = vadd.f32 %v1324_v24, %v1323_v25 }
 0x31c   : > { %v1353_v48 = vadd.f32 %v2942_v22, %v1352_v50  ;;  %v1280_v11 = vmul.f32 1.442695, %v1251_v47  ;;  %v1253_v39 = vsub.f32 %v2914_v45, %v1237_v35  ;;  %v1314_v33 = vrot.slane %v1313_v10, 1 }
 0x31d   : > { %v1319_v41 = vadd.f32 %v1318_v29, %v1317_v62  ;;  %v2951_v43 = vpop.eup %2229  ;;  %v1335_v21 = vadd.f32 %v2944_v40, %v1334_v37  ;;  %v1231_v9 = vmax.f32 %v1229_v23, %v1230_v42  ;;  %v1349_v62 = vadd.f32 %v1348_v19, %v1347_v38 }
 0x31e   : > { %v2232_v53 = vpop.eup %2231  ;;  %v1354_v5 = vrot.slane %v1353_v48, 2  ;;  %v1340_v7 = vrot.slane %v2951_v43, 4  ;;  %2239 = vpow2.f32 %v1280_v11  ;;  %v1284_v30 = vmul.f32 1.442695, %v1253_v39 }
 0x31f   : > { %v1336_v13 = vrot.slane %v1335_v21, 2  ;;  %v1320_v14 = vrot.slane %v1319_v41, 1  ;;  %v1252_v37 = vsub.f32 %v2920_v63, %v1231_v9  ;;  %v1309_v47 = vadd.f32 %v1308_v51, %v1307_v34 }
 0x320   : > { %v2234_v50 = vpop.eup %2233  ;;  %v1341_v29 = vadd.f32 %v2951_v43, %v1340_v7  ;;  %2241 = vpow2.f32 %v1284_v30  ;;  %v1326_v45 = vrot.slane %v1325_v61, 1  ;;  %v1383_v25 = vmul.f32 %v2232_v53, %v2891_v8 }
 0x321   : > { %v1337_v6 = vadd.f32 %v1336_v13, %v1335_v21  ;;  %v1282_v35 = vmul.f32 1.442695, %v1252_v37  ;;  %v1315_v23 = vadd.f32 %v1314_v33, %v1313_v10  ;;  %v1385_v42 = vmul.f32 %v2234_v50, %v2895_v44 }
 0x322   : > { %v1342_v24 = vrot.slane %v1341_v29, 2  ;;  %v1355_v39 = vadd.f32 %v1354_v5, %v1353_v48  ;;  %v1321_v57 = vadd.f32 %v1320_v14, %v1319_v41  ;;  %2243 = vrcp.f32 %v1303_v49 }
 0x323   : > { %v2960_v11 = vpop.eup %2235  ;;  %v1414_v7 = vmul.f32 %v1383_v25, %v871_v58  ;;  %2245 = vpow2.f32 %v1282_v35  ;;  %v1415_v34 = vmul.f32 %v1385_v42, %v872_v59  ;;  %v1338_v63 = vrot.slane %v1337_v6, 1 }
 0x324   : > { %v1343_v9 = vadd.f32 %v1342_v24, %v1341_v29  ;;  %v1358_v21 = vrot.slane %v2960_v11, 4  ;;  %v2967_v8 = vpop.eup %2237  ;;  %v1327_v38 = vadd.f32 %v1326_v45, %v1325_v61  ;;  %2247 = vrcp.f32 %v1309_v47 }
 0x325   : > { %v1430_v44 = vsel %vm669_vm4, %v1414_v7, 0.0  ;;  %v1328_v27 = vrot.slane %v2967_v8, 4  ;;  %2249 = vrcp.f32 %v1315_v23  ;;  %v1350_v58 = vrot.slane %v1349_v62, 1 }
 0x326   : > { %v1344_v5 = vrot.slane %v1343_v9, 1  ;;  %v1359_v49 = vadd.f32 %v2960_v11, %v1358_v21  ;;  %v1431_v10 = vrot.slane %v1430_v44, 4  ;;  %v1437_v51 = vsel %vm669_vm4, %v1415_v34, 0.0 }
 0x327   : > { %v1356_v19 = vrot.slane %v1355_v39, 1  ;;  %v1329_v59 = vadd.f32 %v2967_v8, %v1328_v27  ;;  %2251 = vrcp.f32 %v1321_v57  ;;  %v1339_v48 = vadd.f32 %v1338_v63, %v1337_v6 }
 0x328   : > { %v1360_v56 = vrot.slane %v1359_v49, 2  ;;  %2253 = vrcp.f32 %v1327_v38  ;;  %v1438_v41 = vrot.slane %v1437_v51, 4  ;;  %v1345_v61 = vadd.f32 %v1344_v5, %v1343_v9 }
 0x329   : > { %v1330_v33 = vrot.slane %v1329_v59, 2  ;;  %v1351_v13 = vadd.f32 %v1350_v58, %v1349_v62  ;;  %v1432_v30 = vadd.f32 %v1431_v10, %v1430_v44  ;;  %v1357_v29 = vadd.f32 %v1356_v19, %v1355_v39 }
 0x32a   : > { %v1361_v53 = vadd.f32 %v1360_v56, %v1359_v49  ;;  %2255 = vrcp.f32 %v1339_v48  ;;  %v1439_v45 = vadd.f32 %v1438_v41, %v1437_v51  ;;  %v3331_v19 = vmax.f32 %v2726_v26, 0.0 }
 0x32b   : > { %v2974_v14 = vpop.eup %2239  ;;  %v1331_v50 = vadd.f32 %v1330_v33, %v1329_v59  ;;  %2257 = vrcp.f32 %v1345_v61  ;;  %v1433_v35 = vrot.slane %v1432_v30, 2  ;;  %v3333_v26 = vmax.f32 %v2752_v4, 0.0 }
 0x32c   : > { %v1362_v37 = vrot.slane %v1361_v53, 1  ;;  %v1364_v47 = vrot.slane %v2974_v14, 4  ;;  %2259 = vrcp.f32 %v1351_v13  ;;  %v1440_v9 = vrot.slane %v1439_v45, 2 }
 0x32d   : > { %v2977_v25 = vpop.eup %2241  ;;  %v1332_v57 = vrot.slane %v1331_v50, 1  ;;  %2261 = vrcp.f32 %v1357_v29  ;;  %v1434_v27 = vadd.f32 %v1433_v35, %v1432_v30 }
 0x32e   : > { %v1363_v6 = vadd.f32 %v1362_v37, %v1361_v53  ;;  %v1365_v24 = vadd.f32 %v2974_v14, %v1364_v47  ;;  %v1376_v62 = vrot.slane %v2977_v25, 4  ;;  %v1441_v59 = vadd.f32 %v1440_v9, %v1439_v45 }
 0x32f   : > { %v2244_v23 = vpop.eup %2243  ;;  %v1333_v42 = vadd.f32 %v1332_v57, %v1331_v50  ;;  %v1435_v13 = vrot.slane %v1434_v27, 1 }
 0x330   : > { %v2981_v39 = vpop.eup %2245  ;;  %v1387_v7 = vmul.f32 %v2244_v23, %v2883_v46  ;;  %v1366_v21 = vrot.slane %v1365_v24, 2  ;;  %2263 = vrcp.f32 %v1363_v6  ;;  %v1377_v38 = vadd.f32 %v2977_v25, %v1376_v62 }
 0x331   : > { %v2248_v34 = vpop.eup %2247  ;;  %v1370_v63 = vrot.slane %v2981_v39, 4  ;;  %2265 = vrcp.f32 %v1333_v42 }
 0x332   : > { %v2250_v44 = vpop.eup %2249  ;;  %v1389_v5 = vmul.f32 %v2248_v34, %v2901_v55  ;;  %v1416_v49 = vmul.f32 %v1387_v7, %v873_v60  ;;  %v1378_v10 = vrot.slane %v1377_v38, 2  ;;  %v1367_v41 = vadd.f32 %v1366_v21, %v1365_v24 }
 0x333   : > { %v1391_v58 = vmul.f32 %v2250_v44, %v2922_v15  ;;  %v1371_v46 = vadd.f32 %v2981_v39, %v1370_v63 }
 0x334   : > { %v2252_v51 = vpop.eup %2251  ;;  %v1417_v56 = vmul.f32 %v1389_v5, %v3331_v19  ;;  %v1444_v48 = vsel %vm669_vm4, %v1416_v49, 0.0  ;;  %v1379_v50 = vadd.f32 %v1378_v10, %v1377_v38  ;;  %v1368_v6 = vrot.slane %v1367_v41, 1 }
 0x335   : > { %v2254_v61 = vpop.eup %2253  ;;  %v1393_v55 = vmul.f32 %v2252_v51, %v2934_v36  ;;  %v1418_v60 = vmul.f32 %v1391_v58, %v3332_v54  ;;  %v1445_v53 = vrot.slane %v1444_v48, 4  ;;  %v1372_v33 = vrot.slane %v1371_v46, 2 }
 0x336   : > { %v1395_v15 = vmul.f32 %v2254_v61, %v2912_v3  ;;  %v1451_v30 = vsel %vm669_vm4, %v1417_v56, 0.0  ;;  %v3334_v36 = vmax.f32 %v2750_v2, 0.0  ;;  %v1442_v3 = vrot.slane %v1441_v59, 1 }
 0x337   : > { %v1419_v29 = vmul.f32 %v1393_v55, %v3333_v26  ;;  %v1446_v37 = vadd.f32 %v1445_v53, %v1444_v48  ;;  %v1452_v47 = vrot.slane %v1451_v30, 4  ;;  %v1458_v45 = vsel %vm669_vm4, %v1418_v60, 0.0  ;;  %v2256_v35 = vpop.eup %2255 }
 0x338   : > { %v1420_v0 = vmul.f32 %v1395_v15, %v3334_v36  ;;  %v1459_v57 = vrot.slane %v1458_v45, 4  ;;  %v1373_v24 = vadd.f32 %v1372_v33, %v1371_v46  ;;  %v2258_v7 = vpop.eup %2257  ;;  %v1380_v5 = vrot.slane %v1379_v50, 1 }
 0x339   : > { %v1447_v62 = vrot.slane %v1446_v37, 2  ;;  %v1453_v23 = vadd.f32 %v1452_v47, %v1451_v30  ;;  %v1465_v42 = vsel %vm669_vm4, %v1419_v29, 0.0  ;;  %v2260_v63 = vpop.eup %2259  ;;  %v3006_v58 = vadd.f32 %v1435_v13, %v1434_v27 }
 0x33a   : > { %v1460_v4 = vadd.f32 %v1459_v57, %v1458_v45  ;;  %v1466_v9 = vrot.slane %v1465_v42, 4  ;;  %v1472_v21 = vsel %vm669_vm4, %v1420_v0, 0.0  ;;  %v1374_v34 = vrot.slane %v1373_v24, 1  ;;  %v2262_v49 = vpop.eup %2261 }
 0x33b   : > { %v1448_v38 = vadd.f32 %v1447_v62, %v1446_v37  ;;  %v1454_v2 = vrot.slane %v1453_v23, 2  ;;  %v1473_v44 = vrot.slane %v1472_v21, 4  ;;  %v1369_v51 = vadd.f32 %v1368_v6, %v1367_v41 }
 0x33c   : > { %v1461_v46 = vrot.slane %v1460_v4, 2  ;;  %v1467_v10 = vadd.f32 %v1466_v9, %v1465_v42  ;;  %v3008_v56 = vadd.f32 %v1442_v3, %v1441_v59  ;;  %v1399_v55 = vmul.f32 %v2256_v35, %v2944_v40 }
 0x33d   : > { %v2264_v19 = vpop.eup %2263  ;;  %v1455_v48 = vadd.f32 %v1454_v2, %v1453_v23  ;;  %v1474_v61 = vadd.f32 %v1473_v44, %v1472_v21  ;;  %v1375_v33 = vadd.f32 %v1374_v34, %v1373_v24  ;;  %v1401_v15 = vmul.f32 %v2258_v7, %v2951_v43 }
 0x33e   : > { %v2266_v54 = vpop.eup %2265  ;;  %v1462_v60 = vadd.f32 %v1461_v46, %v1460_v4  ;;  %v1468_v53 = vrot.slane %v1467_v10, 2  ;;  %v1449_v13 = vrot.slane %v1448_v38, 1  ;;  %v1381_v30 = vadd.f32 %v1380_v5, %v1379_v50 }
 0x33f   : > { %v1397_v27 = vmul.f32 %v2266_v54, %v2967_v8  ;;  %v1403_v41 = vmul.f32 %v2260_v63, %v2930_v28  ;;  %v1456_v26 = vrot.slane %v1455_v48, 1  ;;  %v1475_v29 = vrot.slane %v1474_v61, 2 }
 0x340   : > { %v1469_v59 = vadd.f32 %v1468_v53, %v1467_v10  ;;  %2267 = vrcp.f32 %v1369_v51  ;;  %v3335_v40 = vmax.f32 %v2748_v1, 0.0  ;;  %v1405_v47 = vmul.f32 %v2262_v49, %v2942_v22 }
 0x341   : > { %v1407_v45 = vmul.f32 %v2264_v19, %v2960_v11  ;;  %v3336_v43 = vmax.f32 %v2766_v16, 0.0  ;;  %v1463_v36 = vrot.slane %v1462_v60, 1  ;;  %v1561_v28 = vsel %vm1560_vm6, %v3008_v56, %v3006_v58 }
 0x342   : > { %v1421_v37 = vmul.f32 %v1397_v27, %v3335_v40  ;;  %2269 = vrcp.f32 %v1375_v33  ;;  %v3337_v50 = vmax.f32 %v2774_v20, 0.0  ;;  %v3025_v57 = vadd.f32 %v1449_v13, %v1448_v38 }
 0x343   : > { %v1422_v8 = vmul.f32 %v1399_v55, %v3336_v43  ;;  %v1470_v1 = vrot.slane %v1469_v59, 1  ;;  %2271 = vrcp.f32 %v1381_v30  ;;  %v3028_v22 = vadd.f32 %v1456_v26, %v1455_v48 }
 0x344   : > { %v1423_v0 = vmul.f32 %v1401_v15, %v3337_v50  ;;  %v1479_v6 = vsel %vm669_vm4, %v1421_v37, 0.0  ;;  %v1476_v11 = vadd.f32 %v1475_v29, %v1474_v61  ;;  %v3338_v24 = vmax.f32 %v2771_v18, 0.0 }
 0x345   : > { %v1480_v16 = vrot.slane %v1479_v6, 4  ;;  %v1563_v3 = vsel %vm1562_vm7, %v3025_v57, %v1561_v28  ;;  %v3339_v20 = vmax.f32 %v2768_v17, 0.0  ;;  %v3340_v23 = vmax.f32 %v2790_v52, 0.0 }
 0x346   : > { %v1424_v35 = vmul.f32 %v1403_v41, %v3338_v24  ;;  %v1486_v7 = vsel %vm669_vm4, %v1422_v8, 0.0  ;;  %v3039_v4 = vadd.f32 %v1463_v36, %v1462_v60  ;;  %v1493_v34 = vsel %vm669_vm4, %v1423_v0, 0.0 }
 0x347   : > { %v1425_v62 = vmul.f32 %v1405_v47, %v3339_v20  ;;  %v1426_v42 = vmul.f32 %v1407_v45, %v3340_v23  ;;  %v1481_v9 = vadd.f32 %v1480_v16, %v1479_v6  ;;  %v1487_v21 = vrot.slane %v1486_v7, 4 }
 0x348   : > { %v3042_v63 = vadd.f32 %v1470_v1, %v1469_v59  ;;  %v1494_v18 = vrot.slane %v1493_v34, 4  ;;  %v1500_v38 = vsel %vm669_vm4, %v1424_v35, 0.0  ;;  %v1477_v49 = vrot.slane %v1476_v11, 1 }
 0x349   : > { %v1507_v2 = vsel %vm669_vm4, %v1425_v62, 0.0  ;;  %v1482_v17 = vrot.slane %v1481_v9, 2  ;;  %v1488_v44 = vadd.f32 %v1487_v21, %v1486_v7  ;;  %v1501_v5 = vrot.slane %v1500_v38, 4 }
 0x34a   : > { %v1508_v52 = vrot.slane %v1507_v2, 4  ;;  %v1565_v46 = vsel %vm1564_vm8, %v3028_v22, %v1563_v3  ;;  %v1495_v10 = vadd.f32 %v1494_v18, %v1493_v34  ;;  %v1514_v51 = vsel %vm669_vm4, %v1426_v42, 0.0 }
 0x34b   : > { %v1483_v19 = vadd.f32 %v1482_v17, %v1481_v9  ;;  %v1489_v48 = vrot.slane %v1488_v44, 2  ;;  %v1502_v61 = vadd.f32 %v1501_v5, %v1500_v38  ;;  %v1567_v54 = vsel %vm1566_vm9, %v3039_v4, %v1565_v46 }
 0x34c   : > { %v1509_v55 = vadd.f32 %v1508_v52, %v1507_v2  ;;  %v1496_v60 = vrot.slane %v1495_v10, 2  ;;  %v1515_v53 = vrot.slane %v1514_v51, 4  ;;  %v1569_v15 = vsel %vm1568_vm10, %v3042_v63, %v1567_v54 }
 0x34d   : > { %v1484_v33 = vrot.slane %v1483_v19, 1  ;;  %v1490_v27 = vadd.f32 %v1489_v48, %v1488_v44  ;;  %v1503_v13 = vrot.slane %v1502_v61, 2  ;;  %v2268_v30 = vpop.eup %2267  ;;  %v3053_v41 = vadd.f32 %v1477_v49, %v1476_v11 }
 0x34e   : > { %v1497_v26 = vadd.f32 %v1496_v60, %v1495_v10  ;;  %v1510_v59 = vrot.slane %v1509_v55, 2  ;;  %v1516_v29 = vadd.f32 %v1515_v53, %v1514_v51  ;;  %v1409_v37 = vmul.f32 %v2268_v30, %v2974_v14 }
 0x34f   : > { %v3055_v40 = vadd.f32 %v1484_v33, %v1483_v19  ;;  %v1491_v47 = vrot.slane %v1490_v27, 1  ;;  %v2270_v45 = vpop.eup %2269  ;;  %v1571_v43 = vsel %vm1570_vm11, %v3053_v41, %v1569_v15  ;;  %v1504_v36 = vadd.f32 %v1503_v13, %v1502_v61 }
 0x350   : > { %v1498_v8 = vrot.slane %v1497_v26, 1  ;;  %v1517_v28 = vrot.slane %v1516_v29, 2  ;;  %v2272_v50 = vpop.eup %2271  ;;  %v1411_v1 = vmul.f32 %v2270_v45, %v2981_v39  ;;  %v3341_v6 = vmax.f32 %v2796_v12, 0.0 }
 0x351   : > { %v1573_v0 = vsel %vm1572_vm12, %v3055_v40, %v1571_v43  ;;  %v1413_v14 = vmul.f32 %v2272_v50, %v2977_v25  ;;  %v1511_v24 = vadd.f32 %v1510_v59, %v1509_v55  ;;  %v3342_v35 = vmax.f32 %v2794_v32, 0.0 }
 0x352   : > { %v1427_v11 = vmul.f32 %v1409_v37, %v3341_v6  ;;  %v1583_v16 = vsel %vm669_vm4, %v1573_v0, 0.0  ;;  %v3069_v20 = vadd.f32 %v1491_v47, %v1490_v27  ;;  %v3071_v62 = vadd.f32 %v1498_v8, %v1497_v26 }
 0x353   : > { %1584 = vadd.xlane.f32.xlu1 %v1583_v16  ;;  %v1428_v3 = vmul.f32 %v1411_v1, %v3342_v35  ;;  %v3343_v39 = vmax.f32 %v2792_v31, 0.0  ;;  %v1505_v12 = vrot.slane %v1504_v36, 1  ;;  %v1518_v7 = vadd.f32 %v1517_v28, %v1516_v29 }
 0x354   : > { %v1521_v23 = vsel %vm669_vm4, %v1427_v11, 0.0  ;;  %v1512_v32 = vrot.slane %v1511_v24, 1  ;;  %v1574_v2 = vsel %vm1560_vm6, %v3071_v62, %v3069_v20 }
 0x355   : > { %v1429_v42 = vmul.f32 %v1413_v14, %v3343_v39  ;;  %v1522_v9 = vrot.slane %v1521_v23, 4  ;;  %v1528_v21 = vsel %vm669_vm4, %v1428_v3, 0.0  ;;  %v3081_v17 = vadd.f32 %v1505_v12, %v1504_v36 }
 0x356   : > { %v1529_v34 = vrot.slane %v1528_v21, 4  ;;  %v1519_v44 = vrot.slane %v1518_v7, 1  ;;  %v3085_v51 = vadd.f32 %v1512_v32, %v1511_v24 }
 0x357   : > { %v1523_v25 = vadd.f32 %v1522_v9, %v1521_v23  ;;  %v1535_v18 = vsel %vm669_vm4, %v1429_v42, 0.0  ;;  %v1575_v10 = vsel %vm1562_vm7, %v3081_v17, %v1574_v2 }
 0x358   : > { %v1536_v38 = vrot.slane %v1535_v18, 4  ;;  %v1530_v5 = vadd.f32 %v1529_v34, %v1528_v21  ;;  %v3087_v48 = vadd.f32 %v1519_v44, %v1518_v7  ;;  %v1576_v60 = vsel %vm1564_vm8, %v3085_v51, %v1575_v10 }
 0x359   : > { %v1524_v31 = vrot.slane %v1523_v25, 2 }
 0x35a   : > { %v1537_v52 = vadd.f32 %v1536_v38, %v1535_v18  ;;  %v1531_v46 = vrot.slane %v1530_v5, 2  ;;  %v1577_v13 = vsel %vm1566_vm9, %v3087_v48, %v1576_v60 }
 0x35b   : > { %v1525_v49 = vadd.f32 %v1524_v31, %v1523_v25 }
 0x35c   : > { %v1538_v19 = vrot.slane %v1537_v52, 2  ;;  %v1532_v55 = vadd.f32 %v1531_v46, %v1530_v5 }
 0x35d   : > { %v1526_v61 = vrot.slane %v1525_v49, 1 }
 0x35e   : > { %v1539_v54 = vadd.f32 %v1538_v19, %v1537_v52  ;;  %v1533_v33 = vrot.slane %v1532_v55, 1 }
 0x35f   : > { %v3091_v53 = vadd.f32 %v1526_v61, %v1525_v49 }
 0x360   : > { %v1540_v15 = vrot.slane %v1539_v54, 1  ;;  %v3093_v27 = vadd.f32 %v1533_v33, %v1532_v55 }
 0x361   : > { %v1578_v26 = vsel %vm1568_vm10, %v3091_v53, %v1577_v13 }
 0x362   : > { %v3097_v30 = vadd.f32 %v1540_v15, %v1539_v54  ;;  %v1579_v59 = vsel %vm1570_vm11, %v3093_v27, %v1578_v26 }
 0x364   : > { %v1580_v29 = vsel %vm1572_vm12, %v3097_v30, %v1579_v59 }
 0x365   : > { %v1586_v37 = vsel %vm669_vm4, %v1580_v29, 0.0 }
 0x366   : > { %1587 = vadd.xlane.f32.xlu0 %v1586_v37 }
 0x3dc   : > { %v1585_v47 = vpop.xlane.xlu1 %1584 }
 0x3dd   : > { %v1590_v45 = vmul.f32 0.015625, %v1585_v47 }
 0x3df   : > { %v1594_v43 = vrot.slane %v1590_v45, 1  ;;  %v1595_v8 = vrot.slane %v1590_v45, 2  ;;  %v1596_v36 = vrot.slane %v1590_v45, 3  ;;  %v1597_v28 = vrot.slane %v1590_v45, 4 }
 0x3e0   : > { %v1598_v50 = vrot.slane %v1590_v45, 5  ;;  %v1599_v0 = vrot.slane %v1590_v45, 6  ;;  %v1600_v1 = vrot.slane %v1590_v45, 7  ;;  %v3107_v6 = vsub.f32 %v3006_v58, %v1590_v45 }
 0x3e1   : > { %v3110_v11 = vsub.f32 %v3008_v56, %v1594_v43  ;;  %v3113_v16 = vsub.f32 %v3025_v57, %v1595_v8  ;;  %v3116_v14 = vsub.f32 %v3028_v22, %v1596_v36  ;;  %v3119_v24 = vsub.f32 %v3039_v4, %v1597_v28 }
 0x3e2   : > { %v3122_v35 = vsub.f32 %v3042_v63, %v1598_v50  ;;  %v3125_v3 = vsub.f32 %v3053_v41, %v1599_v0  ;;  %v3128_v58 = vsub.f32 %v3055_v40, %v1600_v1  ;;  %v1640_v63 = vmul.f32 %v3107_v6, %v3107_v6 }
 0x3e3   : > { %v1641_v56 = vmul.f32 %v3110_v11, %v3110_v11  ;;  %v1642_v57 = vmul.f32 %v3113_v16, %v3113_v16  ;;  %v1643_v22 = vmul.f32 %v3116_v14, %v3116_v14  ;;  %v1644_v4 = vmul.f32 %v3119_v24, %v3119_v24 }
 0x3e4   : > { %v1645_v41 = vmul.f32 %v3122_v35, %v3122_v35  ;;  %v1646_v39 = vmul.f32 %v3125_v3, %v3125_v3  ;;  %v1647_v42 = vmul.f32 %v3128_v58, %v3128_v58 }
 0x3e5   : > { %v1672_v40 = vrot.slane %v1641_v56, 7  ;;  %v1674_v23 = vrot.slane %v1642_v57, 6  ;;  %v1676_v7 = vrot.slane %v1643_v22, 5  ;;  %v1678_v21 = vrot.slane %v1644_v4, 4 }
 0x3e6   : > { %v1680_v34 = vrot.slane %v1645_v41, 3  ;;  %v1682_v32 = vrot.slane %v1646_v39, 2  ;;  %v1684_v2 = vrot.slane %v1647_v42, 1 }
 0x3e7   : > { %v1673_v12 = vsel %vm1560_vm6, %v1672_v40, %v1640_v63 }
 0x3e8   : > { %v1675_v9 = vsel %vm1562_vm7, %v1674_v23, %v1673_v12 }
 0x3e9   : > { %v1677_v25 = vsel %vm1564_vm8, %v1676_v7, %v1675_v9  ;;  %v3209_v7 = vld [vmem:[%s3310_s6] ss:$0 sm:$0xff] }
 0x3ea   : > { %v1679_v18 = vsel %vm1566_vm9, %v1678_v21, %v1677_v25 }
 0x3eb   : > { %v1681_v38 = vsel %vm1568_vm10, %v1680_v34, %v1679_v18 }
 0x3ec   : > { %v1683_v44 = vsel %vm1570_vm11, %v1682_v32, %v1681_v38 }
 0x3ed   : > { %v1685_v31 = vsel %vm1572_vm12, %v1684_v2, %v1683_v44 }
 0x3ee   : > { %v1702_v52 = vsel %vm669_vm4, %v1685_v31, 0.0 }
 0x3ef   : > { %v1588_v5 = vpop.xlane.xlu0 %1587  ;;  %1703 = vadd.xlane.f32.xlu1 %v1702_v52 }
 0x3f0   : > { %v1591_v49 = vmul.f32 0.015625, %v1588_v5 }
 0x3f2   : > { %v1601_v46 = vrot.slane %v1591_v49, 1  ;;  %v1602_v10 = vrot.slane %v1591_v49, 2  ;;  %v1603_v19 = vrot.slane %v1591_v49, 3  ;;  %v1604_v61 = vrot.slane %v1591_v49, 4 }
 0x3f3   : > { %v1605_v55 = vrot.slane %v1591_v49, 5  ;;  %v1606_v54 = vrot.slane %v1591_v49, 6  ;;  %v1607_v60 = vrot.slane %v1591_v49, 7  ;;  %v3155_v33 = vsub.f32 %v3069_v20, %v1591_v49 }
 0x3f4   : > { %v3158_v15 = vsub.f32 %v3071_v62, %v1601_v46  ;;  %v3161_v13 = vsub.f32 %v3081_v17, %v1602_v10  ;;  %v3164_v26 = vsub.f32 %v3085_v51, %v1603_v19  ;;  %v3167_v59 = vsub.f32 %v3087_v48, %v1604_v61 }
 0x3f5   : > { %v3170_v29 = vsub.f32 %v3091_v53, %v1605_v55  ;;  %v3173_v37 = vsub.f32 %v3093_v27, %v1606_v54  ;;  %v3176_v20 = vsub.f32 %v3097_v30, %v1607_v60  ;;  %v1648_v53 = vmul.f32 %v3155_v33, %v3155_v33 }
 0x3f6   : > { %v1649_v62 = vmul.f32 %v3158_v15, %v3158_v15  ;;  %v1650_v17 = vmul.f32 %v3161_v13, %v3161_v13  ;;  %v1651_v51 = vmul.f32 %v3164_v26, %v3164_v26  ;;  %v1652_v48 = vmul.f32 %v3167_v59, %v3167_v59 }
 0x3f7   : > { %v1653_v27 = vmul.f32 %v3170_v29, %v3170_v29  ;;  %v1654_v45 = vmul.f32 %v3173_v37, %v3173_v37  ;;  %v1655_v43 = vmul.f32 %v3176_v20, %v3176_v20 }
 0x3f8   : > { %v1686_v30 = vrot.slane %v1649_v62, 7  ;;  %v1688_v47 = vrot.slane %v1650_v17, 6  ;;  %v1690_v36 = vrot.slane %v1651_v51, 5  ;;  %v1692_v50 = vrot.slane %v1652_v48, 4 }
 0x3f9   : > { %v1694_v1 = vrot.slane %v1653_v27, 3  ;;  %v1696_v57 = vrot.slane %v1654_v45, 2  ;;  %v1698_v4 = vrot.slane %v1655_v43, 1 }
 0x3fa   : > { %v1687_v8 = vsel %vm1560_vm6, %v1686_v30, %v1648_v53 }
 0x3fb   : > { %v1689_v28 = vsel %vm1562_vm7, %v1688_v47, %v1687_v8 }
 0x3fc   : > { %v1691_v0 = vsel %vm1564_vm8, %v1690_v36, %v1689_v28 }
 0x3fd   : > { %v1693_v56 = vsel %vm1566_vm9, %v1692_v50, %v1691_v0 }
 0x3fe   : > { %v1695_v22 = vsel %vm1568_vm10, %v1694_v1, %v1693_v56 }
 0x3ff   : > { %v1697_v63 = vsel %vm1570_vm11, %v1696_v57, %v1695_v22 }
 0x400   : > { %v1699_v41 = vsel %vm1572_vm12, %v1698_v4, %v1697_v63 }
 0x401   : > { %v1705_v40 = vsel %vm669_vm4, %v1699_v41, 0.0 }
 0x402   : > { %1706 = vadd.xlane.f32.xlu0 %v1705_v40 }
 0x478   : > { %v1704_v23 = vpop.xlane.xlu1 %1703 }
 0x479   : > { %v1708_v39 = vmul.f32 0.015625, %v1704_v23 }
 0x47b   : > { %v1710_v42 = vadd.f32 1e-05, %v1708_v39 }
 0x47d   : > { %2273 = vrsqrt.f32 %v1710_v42 }
 0x48a   : > { %v2274_v12 = vpop.eup %2273 }
 0x48b   : > { %v1716_v9 = vrot.slane %v2274_v12, 1  ;;  %v1717_v21 = vrot.slane %v2274_v12, 2  ;;  %v1718_v25 = vrot.slane %v2274_v12, 3  ;;  %v1719_v34 = vrot.slane %v2274_v12, 4 }
 0x48c   : > { %v1720_v18 = vrot.slane %v2274_v12, 5  ;;  %v1721_v32 = vrot.slane %v2274_v12, 6  ;;  %v1722_v38 = vrot.slane %v2274_v12, 7  ;;  %v1746_v2 = vmul.f32 %v2274_v12, %v3107_v6 }
 0x48d   : > { %v1747_v44 = vmul.f32 %v1716_v9, %v3110_v11  ;;  %v1748_v31 = vmul.f32 %v1717_v21, %v3113_v16  ;;  %v1749_v5 = vmul.f32 %v1718_v25, %v3116_v14  ;;  %v1750_v52 = vmul.f32 %v1719_v34, %v3119_v24  ;;  %v1707_v24 = vpop.xlane.xlu0 %1706 }
 0x48e   : > { %v1751_v49 = vmul.f32 %v1720_v18, %v3122_v35  ;;  %v1752_v46 = vmul.f32 %v1721_v32, %v3125_v3  ;;  %v1753_v10 = vmul.f32 %v1722_v38, %v3128_v58  ;;  %v1768_v19 = vmul.f32 %v3209_v7, %v1746_v2  ;;  %v3228_v35 = vld [vmem:[%s3311_s7] ss:$0 sm:$0xff] }
 0x48f   : > { %v1769_v6 = vmul.f32 %v3209_v7, %v1747_v44  ;;  %v1770_v11 = vmul.f32 %v3209_v7, %v1748_v31  ;;  %v1771_v16 = vmul.f32 %v3209_v7, %v1749_v5  ;;  %v1772_v14 = vmul.f32 %v3209_v7, %v1750_v52 }
 0x490   : > { %v1773_v3 = vmul.f32 %v3209_v7, %v1751_v49  ;;  %v1774_v58 = vmul.f32 %v3209_v7, %v1752_v46  ;;  %v1775_v61 = vmul.f32 %v3209_v7, %v1753_v10  ;;  %v1709_v17 = vmul.f32 0.015625, %v1707_v24 }
 0x491   : > { %v1791_v55 = vadd.f32 %v3228_v35, %v1769_v6  ;;  %v1792_v54 = vadd.f32 %v3228_v35, %v1770_v11  ;;  %v1793_v60 = vadd.f32 %v3228_v35, %v1771_v16  ;;  %v1794_v62 = vadd.f32 %v3228_v35, %v1772_v14 }
 0x492   : > { %v1790_v51 = vadd.f32 %v3228_v35, %v1768_v19  ;;  %v1795_v48 = vadd.f32 %v3228_v35, %v1773_v3  ;;  %v1796_v30 = vadd.f32 %v3228_v35, %v1774_v58  ;;  %v1711_v47 = vadd.f32 1e-05, %v1709_v17 }
 0x493   : > { %v1822_v53 = vrot.slane %v1791_v55, 7  ;;  %v1824_v27 = vrot.slane %v1792_v54, 6  ;;  %v1797_v45 = vadd.f32 %v3228_v35, %v1775_v61  ;;  %v1826_v8 = vrot.slane %v1793_v60, 5 }
 0x494   : > { %v1828_v28 = vrot.slane %v1794_v62, 4  ;;  %2275 = vrsqrt.f32 %v1711_v47  ;;  %v1830_v0 = vrot.slane %v1795_v48, 3  ;;  %v1832_v56 = vrot.slane %v1796_v30, 2 }
 0x495   : > { %v1823_v43 = vsel %vm1560_vm6, %v1822_v53, %v1790_v51  ;;  %v1834_v22 = vrot.slane %v1797_v45, 1 }
 0x496   : > { %v1825_v36 = vsel %vm1562_vm7, %v1824_v27, %v1823_v43 }
 0x497   : > { %v1827_v50 = vsel %vm1564_vm8, %v1826_v8, %v1825_v36 }
 0x498   : > { %v1829_v1 = vsel %vm1566_vm9, %v1828_v28, %v1827_v50 }
 0x499   : > { %v1831_v57 = vsel %vm1568_vm10, %v1830_v0, %v1829_v1 }
 0x49a   : > { %v1833_v4 = vsel %vm1570_vm11, %v1832_v56, %v1831_v57 }
 0x49b   : > { %v1835_v63 = vsel %vm1572_vm12, %v1834_v22, %v1833_v4 }
 0x49c   : > { %1852 = vst.msk [vmem:[%s3251_s22] sm:$0xff] %vm669_vm4, %v1835_v63 }
 0x4a1   : > { %v2276_v41 = vpop.eup %2275 }
 0x4a2   : > { %v1723_v40 = vrot.slane %v2276_v41, 1  ;;  %v1724_v23 = vrot.slane %v2276_v41, 2  ;;  %v1725_v39 = vrot.slane %v2276_v41, 3  ;;  %v1726_v42 = vrot.slane %v2276_v41, 4 }
 0x4a3   : > { %v1727_v12 = vrot.slane %v2276_v41, 5  ;;  %v1728_v9 = vrot.slane %v2276_v41, 6  ;;  %v1729_v21 = vrot.slane %v2276_v41, 7  ;;  %v1754_v25 = vmul.f32 %v2276_v41, %v3155_v33 }
 0x4a4   : > { %v1755_v34 = vmul.f32 %v1723_v40, %v3158_v15  ;;  %v1756_v18 = vmul.f32 %v1724_v23, %v3161_v13  ;;  %v1757_v32 = vmul.f32 %v1725_v39, %v3164_v26  ;;  %v1758_v38 = vmul.f32 %v1726_v42, %v3167_v59 }
 0x4a5   : > { %v1759_v2 = vmul.f32 %v1727_v12, %v3170_v29  ;;  %v1760_v44 = vmul.f32 %v1728_v9, %v3173_v37  ;;  %v1761_v31 = vmul.f32 %v1729_v21, %v3176_v20  ;;  %v1776_v5 = vmul.f32 %v3209_v7, %v1754_v25 }
 0x4a6   : > { %v1777_v52 = vmul.f32 %v3209_v7, %v1755_v34  ;;  %v1778_v33 = vmul.f32 %v3209_v7, %v1756_v18  ;;  %v1779_v15 = vmul.f32 %v3209_v7, %v1757_v32  ;;  %v1780_v13 = vmul.f32 %v3209_v7, %v1758_v38 }
 0x4a7   : > { %v1781_v26 = vmul.f32 %v3209_v7, %v1759_v2  ;;  %v1782_v59 = vmul.f32 %v3209_v7, %v1760_v44  ;;  %v1783_v29 = vmul.f32 %v3209_v7, %v1761_v31  ;;  %v1798_v10 = vadd.f32 %v3228_v35, %v1776_v5 }
 0x4a8   : > { %v1799_v37 = vadd.f32 %v3228_v35, %v1777_v52  ;;  %v1800_v20 = vadd.f32 %v3228_v35, %v1778_v33  ;;  %v1801_v49 = vadd.f32 %v3228_v35, %v1779_v15  ;;  %v1802_v46 = vadd.f32 %v3228_v35, %v1780_v13 }
 0x4a9   : > { %v1803_v19 = vadd.f32 %v3228_v35, %v1781_v26  ;;  %v1804_v16 = vadd.f32 %v3228_v35, %v1782_v59  ;;  %v1805_v14 = vadd.f32 %v3228_v35, %v1783_v29 }
 0x4aa   : > { %v1836_v6 = vrot.slane %v1799_v37, 7  ;;  %v1838_v11 = vrot.slane %v1800_v20, 6  ;;  %v1840_v24 = vrot.slane %v1801_v49, 5  ;;  %v1842_v58 = vrot.slane %v1802_v46, 4 }
 0x4ab   : > { %v1844_v55 = vrot.slane %v1803_v19, 3  ;;  %v1846_v60 = vrot.slane %v1804_v16, 2  ;;  %v1848_v17 = vrot.slane %v1805_v14, 1 }
 0x4ac   : > { %v1837_v7 = vsel %vm1560_vm6, %v1836_v6, %v1798_v10 }
 0x4ad   : > { %v1839_v3 = vsel %vm1562_vm7, %v1838_v11, %v1837_v7 }
 0x4ae   : > { %v1841_v61 = vsel %vm1564_vm8, %v1840_v24, %v1839_v3 }
 0x4af   : > { %v1843_v54 = vsel %vm1566_vm9, %v1842_v58, %v1841_v61 }
 0x4b0   : > { %v1845_v62 = vsel %vm1568_vm10, %v1844_v55, %v1843_v54 }
 0x4b1   : > { %v1847_v51 = vsel %vm1570_vm11, %v1846_v60, %v1845_v62 }
 0x4b2   : > { %v1849_v48 = vsel %vm1572_vm12, %v1848_v17, %v1847_v51 }
 0x4b3   : > { %1853 = vst.msk [vmem:[%s3251_s22 + $0x8] sm:$0xff] %vm669_vm4, %v1849_v48 }
 0x4b4 PF: > { %p18_p9 = scmp.ge.s32.totalorder %s2411_s10, 5   ;;  %s3344_s27 = smov %s2331_s28 }
 0x4b5   : > { %s3345_s28 = smov %s2335_s29  ;;  %s3346_s29 = smov %s2421_s13 }
 0x4b6   : > { %s3347_s30 = smov %s2411_s10  ;;  %20 = sbr.rel (!%p18_p9) target bundleno = 3 (0x3), region = 92 }
 0x4bb   :  { %1876 = vsyncpa [#allocation3], 1 }
 0x4bc   :  { %1878 = vsyncpa [#allocation3 + $0x1], 1 }

// kernel: tanr_forward.5
= control target key start
LH: loop header
LB: loop body
LE: loop exit
PB: predicated region body
PF: predicated region fallthrough
CT: control target
= control target key end

     0   :  { %v234_v0 = vmov 0.0   ;;  %vm235_vm0 = vmmov 0   ;;  %vm69_vm1 = vcmask 523264   ;;  %vm158_vm2 = vcmask 130048   ;;  %s351_s1 = inlined_call_operand.vmem [shape: bf16[64,16], index: 1, kind: input, shape index: {}]   ;;  %s352_s0 = inlined_call_operand.vmem [shape: f32[80,64], index: 0, kind: input, shape index: {}]   ;;  %s353_s2 = inlined_call_operand.vmem [shape: f32[1,16], index: 2, kind: input, shape index: {}]   ;;  %s354_s3 = inlined_call_operand.vmem [shape: f32[80,16], index: 3, kind: output, shape index: {}]  }
   0x1   :  { %192 = vmatprep.subr.bf16.mxu0 %v234_v0  ;;  %v230_v1 = vld [vmem:[%s351_s1 + $0x18] sm:$0xff]   ;;  %220 = vmatprep.subr.bf16.mxu1 %v234_v0  ;;  %v231_v2 = vld [vmem:[%s351_s1 + $0x10] sm:$0xff]   ;;  %v232_v3 = vld [vmem:[%s351_s1 + $0x8] sm:$0xff]  }
   0x2   :  { %200 = vmatprep.mubr.msk.bf16.mxu0 %vm235_vm0, %v234_v0  ;;  %212 = vmatprep.mubr.msk.bf16.mxu1 %vm235_vm0, %v234_v0  ;;  %v233_v4 = vld [vmem:[%s351_s1] sm:$0xff]   ;;  %v16_v6 = vld [vmem:[%s352_s0 + $0x8] sm:$0xff]  ;;  %v21_v7 = vld [vmem:[%s352_s0 + $0x30] sm:$0xff] }
   0x3   :  { %193 = vmatpush3.bf16.msra.mxu0 %v230_v1  ;;  %224 = vmatpush3.bf16.msra.mxu1 %v230_v1  ;;  %v15_v5 = vld [vmem:[%s352_s0] sm:$0xff]  ;;  %v22_v8 = vld [vmem:[%s352_s0 + $0x38] sm:$0xff]  ;;  %v17_v11 = vld [vmem:[%s352_s0 + $0x10] sm:$0xff] }
   0x4   :  { %194 = vmatprep.subr.bf16.mxu0 %v234_v0  ;;  %221 = vmatprep.subr.bf16.mxu1 %v234_v0  ;;  %v25_v9 = vpack.c.bf16 %v16_v6, %v15_v5  ;;  %v28_v10 = vpack.c.bf16 %v22_v8, %v21_v7  ;;  %v18_v12 = vld [vmem:[%s352_s0 + $0x18] sm:$0xff]  ;;  %v23_v13 = vld [vmem:[%s352_s0 + $0x40] sm:$0xff]  ;;  %v24_v14 = vld [vmem:[%s352_s0 + $0x48] sm:$0xff] }
   0x5   :  { %v26_v15 = vpack.c.bf16 %v18_v12, %v17_v11  ;;  %v29_v16 = vpack.c.bf16 %v24_v14, %v23_v13  ;;  %v19_v17 = vld [vmem:[%s352_s0 + $0x20] sm:$0xff]  ;;  %v20_v18 = vld [vmem:[%s352_s0 + $0x28] sm:$0xff] }
   0x6   :  { %v27_v19 = vpack.c.bf16 %v20_v18, %v19_v17  ;;  %v173_v20 = vld [vmem:[%s353_s2] ss:$0 sm:$0xff] }
   0x7   :  { %195 = vmatpush3.bf16.msra.mxu0 %v231_v2  ;;  %225 = vmatpush3.bf16.msra.mxu1 %v231_v2 }
   0x8   :  { %196 = vmatprep.subr.bf16.mxu0 %v234_v0  ;;  %222 = vmatprep.subr.bf16.mxu1 %v234_v0 }
   0xb   :  { %197 = vmatpush3.bf16.msra.mxu0 %v232_v3  ;;  %226 = vmatpush3.bf16.msra.mxu1 %v232_v3 }
   0xc   :  { %198 = vmatprep.subr.bf16.mxu0 %v234_v0  ;;  %223 = vmatprep.subr.bf16.mxu1 %v234_v0 }
   0xf   :  { %199 = vmatpush3.bf16.msra.mxu0 %v233_v4  ;;  %227 = vmatpush3.bf16.msra.mxu1 %v233_v4 }
  0x12   :  { %201 = vmatmul.mubr.msk.bf16.vlgmr.msra.gmra.mxu0 %vm69_vm1, %v25_v9  ;;  %213 = vmatmul.mubr.msk.bf16.vlgmr.msra.gmra.mxu1 %vm69_vm1, %v28_v10 }
  0x13   :  { %204 = vmatprep.mubr.msk.bf16.mxu0 %vm235_vm0, %v234_v0  ;;  %216 = vmatprep.mubr.msk.bf16.mxu1 %vm235_vm0, %v234_v0 }
  0x1a   :  { %205 = vmatmul.mubr.msk.bf16.gmra.mxu0 %vm69_vm1, %v26_v15  ;;  %217 = vmatmul.mubr.msk.bf16.gmra.mxu1 %vm69_vm1, %v29_v16 }
  0x1b   :  { %208 = vmatprep.mubr.msk.bf16.mxu0 %vm235_vm0, %v234_v0 }
  0x22   :  { %209 = vmatmul.mubr.msk.bf16.gmra.mxu0 %vm69_vm1, %v27_v19 }
  0xd2   :  { %v119_v21 = vpop.f32.mrf.mxu0  ;;  %v143_v22 = vpop.f32.mrf.mxu1 }
  0xd3   :  { %v120_v23 = vadd.f32 %v173_v20, %v119_v21  ;;  %v144_v24 = vadd.f32 %v173_v20, %v143_v22 }
  0xd4   :  { %v202_v25 = vpop.f32.mrf.mxu0  ;;  %v214_v26 = vpop.f32.mrf.mxu1 }
  0xd5   :  { %159 = vst.msk [vmem:[%s354_s3] sm:$0xff] %vm158_vm2, %v120_v23  ;;  %165 = vst.msk [vmem:[%s354_s3 + $0x30] sm:$0xff] %vm158_vm2, %v144_v24 }
  0xd6   :  { %v122_v27 = vpop.f32.mrf.mxu0  ;;  %v146_v28 = vpop.f32.mrf.mxu1 }
  0xd7   :  { %v123_v29 = vadd.f32 %v173_v20, %v122_v27  ;;  %v147_v30 = vadd.f32 %v173_v20, %v146_v28 }
  0xd8   :  { %v203_v31 = vpop.f32.mrf.mxu0  ;;  %v215_v32 = vpop.f32.mrf.mxu1 }
  0xd9   :  { %160 = vst.msk [vmem:[%s354_s3 + $0x8] sm:$0xff] %vm158_vm2, %v123_v29  ;;  %166 = vst.msk [vmem:[%s354_s3 + $0x38] sm:$0xff] %vm158_vm2, %v147_v30 }
  0xda   :  { %v127_v33 = vpop.f32.mrf.mxu0  ;;  %v151_v34 = vpop.f32.mrf.mxu1 }
  0xdb   :  { %v128_v35 = vadd.f32 %v173_v20, %v127_v33  ;;  %v152_v36 = vadd.f32 %v173_v20, %v151_v34 }
  0xdc   :  { %v206_v37 = vpop.f32.mrf.mxu0  ;;  %v218_v38 = vpop.f32.mrf.mxu1 }
  0xdd   :  { %161 = vst.msk [vmem:[%s354_s3 + $0x10] sm:$0xff] %vm158_vm2, %v128_v35  ;;  %167 = vst.msk [vmem:[%s354_s3 + $0x40] sm:$0xff] %vm158_vm2, %v152_v36 }
  0xde   :  { %v130_v39 = vpop.f32.mrf.mxu0  ;;  %v154_v40 = vpop.f32.mrf.mxu1 }
  0xdf   :  { %v131_v41 = vadd.f32 %v173_v20, %v130_v39  ;;  %v155_v42 = vadd.f32 %v173_v20, %v154_v40 }
  0xe0   :  { %v207_v43 = vpop.f32.mrf.mxu0  ;;  %v219_v44 = vpop.f32.mrf.mxu1 }
  0xe1   :  { %162 = vst.msk [vmem:[%s354_s3 + $0x18] sm:$0xff] %vm158_vm2, %v131_v41  ;;  %168 = vst.msk [vmem:[%s354_s3 + $0x48] sm:$0xff] %vm158_vm2, %v155_v42 }
  0xe2   :  { %v135_v45 = vpop.f32.mrf.mxu0 }
  0xe3   :  { %v136_v46 = vadd.f32 %v173_v20, %v135_v45 }
  0xe4   :  { %v210_v47 = vpop.f32.mrf.mxu0 }
  0xe5   :  { %163 = vst.msk [vmem:[%s354_s3 + $0x20] sm:$0xff] %vm158_vm2, %v136_v46 }
  0xe6   :  { %v138_v48 = vpop.f32.mrf.mxu0 }
  0xe7   :  { %v139_v49 = vadd.f32 %v173_v20, %v138_v48 }
  0xe8   :  { %v211_v50 = vpop.f32.mrf.mxu0 }
  0xe9   :  { %164 = vst.msk [vmem:[%s354_s3 + $0x28] sm:$0xff] %vm158_vm2, %v139_v49 }

// kernel: tanr_forward.3
= control target key start
LH: loop header
LB: loop body
LE: loop exit
PB: predicated region body
PF: predicated region fallthrough
CT: control target
= control target key end

     0   :  { %s2266_s27 = smov 0   ;;  %s3100_s0 = inlined_call_operand.vmem [shape: f32[32,8,32], index: 0, kind: input, shape index: {}]   ;;  %s3101_s1 = inlined_call_operand.vmem [shape: bf16[96,64], index: 1, kind: input, shape index: {}]   ;;  %s3102_s2 = inlined_call_operand.vmem [shape: f32[1,64], index: 2, kind: input, shape index: {}]   ;;  %s3103_s3 = inlined_call_operand.vmem [shape: bf16[64,32], index: 3, kind: input, shape index: {}]   ;;  %s3104_s4 = inlined_call_operand.vmem [shape: f32[1,32], index: 4, kind: input, shape index: {}]   ;;  %s3105_s5 = inlined_call_operand.vmem [shape: f32[1,32], index: 5, kind: input, shape index: {}]   ;;  %s3106_s6 = inlined_call_operand.vmem [shape: f32[1,64], index: 6, kind: input, shape index: {}]   ;;  %s3107_s7 = inlined_call_operand.vmem [shape: f32[1,64], index: 7, kind: input, shape index: {}]   ;;  %s3108_s8 = inlined_call_operand.vmem [shape: f32[32,64], index: 8, kind: output, shape index: {}]  }
   0x1 LB: > { %s1891_s28 = sadd.s32 4294967295, %s2217_s27   ;;  %p1895_p0 = scmp.ge.s32.totalorder %s2217_s27, 1  ;;  %s2217_s27 = sphi %s2266_s27, %s18_s27  }
   0x2   : > { %p263_p1 = scmp.lt.s32.totalorder %s2217_s27, 3 }
   0x4   : > { %p264_p2 = pnand %p1895_p0, %p263_p1 }
   0x5   : > { %s1896_s29 = sshll.u32 (!%p264_p2), %s1891_s28, 4  ;;  %s2219_s24 = smov (!%p264_p2), 64  }
   0x6   : > { %267 = sbr.rel (%p264_p2) target bundleno = 1171 (0x493), region = 52  ;;  %p298_p3 = scmp.lt.s32.totalorder (!%p264_p2), %s1896_s29, 31 }
   0x7   : > { %s2220_s25 = smov (!%p264_p2), 32   ;;  %s3010_s20 = sshll.u32 (!%p264_p2), %s1891_s28, 1 }
   0x8   : > { %p304_p4 = scmp.lt.s32.totalorder (!%p264_p2), %s3010_s20, 3 }
   0xb   : > { %v2101_v0 = vld [vmem:[%s3101_s1 + $0x28] sm:$0xff]   ;;  %v2102_v1 = vld [vmem:[%s3101_s1 + $0x20] sm:$0xff]   ;;  %s3136_s29 = smov (!%p298_p3, %s1896_s29), 31  ;;  %v2103_v2 = vld [vmem:[%s3101_s1 + $0x18] sm:$0xff]   ;;  %vm374_vm0 = vcmask 1040384   ;;  %vm536_vm1 = vcmask 1045504  }
   0xc   : > { %1959 = vmatprep.subr.bf16.mxu0 %v2101_v0  ;;  %s1897_s14 = sshll.u32 %s3136_s29, 3  ;;  %v2104_v3 = vld [vmem:[%s3101_s1 + $0x10] sm:$0xff]   ;;  %vm439_vm2 = vcmask 1046528   ;;  %v2105_v28 = vld [vmem:[%s3101_s1 + $0x8] sm:$0xff]   ;;  %v2106_v41 = vld [vmem:[%s3101_s1] sm:$0xff]   ;;  %vm633_vm3 = vcmask 261120  }
   0xd   : > { %1960 = vmatpush3.bf16.msra.mxu0 %v2101_v0  ;;  %s2288_s17 = scalar_lea.vmem %s3100_s0, %s1897_s14  ;;  %vm650_vm4 = vcmask 523264   ;;  %vm730_vm5 = vcmask 785408   ;;  %vm1541_vm6 = vcmask 1041409   ;;  %vm1543_vm7 = vcmask 1042434   ;;  %s3138_s20 = smov (!%p304_p4, %s3010_s20), 3 }
   0xe   : > { %1961 = vmatprep.subr.bf16.mxu0 %v2102_v1  ;;  %v310_v4 = vld [vmem:[%s2288_s17] sm:$0xff]  ;;  %v311_v5 = vld [vmem:[%s2288_s17 + $0x8] sm:$0xff]  ;;  %v312_v6 = vld [vmem:[%s2288_s17 + $0x10] sm:$0xff]  ;;  %vm1545_vm8 = vcmask 1043459   ;;  %vm1547_vm9 = vcmask 1044484   ;;  %vm1549_vm10 = vcmask 1045509  }
   0xf   : > { %v342_v7 = vrot.slane %v310_v4, 7  ;;  %v343_v8 = vrot.slane %v311_v5, 7  ;;  %v313_v9 = vld [vmem:[%s2288_s17 + $0x18] sm:$0xff]  ;;  %v316_v10 = vld [vmem:[%s2288_s17 + $0x30] sm:$0xff]  ;;  %v344_v12 = vrot.slane %v312_v6, 7  ;;  %v314_v54 = vld [vmem:[%s2288_s17 + $0x20] sm:$0xff] }
  0x10   : > { %v317_v11 = vld [vmem:[%s2288_s17 + $0x38] sm:$0xff]  ;;  %v345_v13 = vrot.slane %v313_v9, 7  ;;  %v348_v14 = vrot.slane %v316_v10, 7  ;;  %v315_v55 = vld [vmem:[%s2288_s17 + $0x28] sm:$0xff]  ;;  %v346_v0 = vrot.slane %v314_v54, 7  ;;  %vm1551_vm11 = vcmask 1046534  }
  0x11   : > { %1962 = vmatpush3.bf16.msra.mxu0 %v2102_v1  ;;  %v349_v15 = vrot.slane %v317_v11, 7  ;;  %v2300_v16 = vsel %vm374_vm0, 0.0, %v342_v7  ;;  %v2303_v17 = vsel %vm374_vm0, 0.0, %v343_v8  ;;  %v391_v18 = vsel %vm374_vm0, %v342_v7, 0.0 }
  0x12   : > { %1963 = vmatprep.subr.bf16.mxu0 %v2103_v2  ;;  %v392_v19 = vsel %vm374_vm0, %v343_v8, 0.0  ;;  %v537_v20 = vrot.slane %v2300_v16, 2  ;;  %v538_v21 = vrot.slane %v391_v18, 2  ;;  %v540_v22 = vrot.slane %v2303_v17, 2 }
  0x13   : > { %v541_v23 = vrot.slane %v392_v19, 2  ;;  %v440_v24 = vrot.slane %v2300_v16, 1  ;;  %v441_v25 = vrot.slane %v391_v18, 1  ;;  %v443_v26 = vrot.slane %v2303_v17, 1  ;;  %v320_v18 = vld [vmem:[%s2288_s17 + $0x50] sm:$0xff] }
  0x14   : > { %v444_v27 = vrot.slane %v392_v19, 1  ;;  %v539_v29 = vsel %vm536_vm1, %v537_v20, %v538_v21  ;;  %v2317_v31 = vsel %vm374_vm0, 0.0, %v344_v12  ;;  %v2320_v32 = vsel %vm374_vm0, 0.0, %v345_v13  ;;  %v321_v19 = vld [vmem:[%s2288_s17 + $0x58] sm:$0xff] }
  0x15   : > { %1964 = vmatpush3.bf16.msra.mxu0 %v2103_v2  ;;  %v542_v30 = vsel %vm536_vm1, %v540_v22, %v541_v23  ;;  %v442_v34 = vsel %vm439_vm2, %v440_v24, %v441_v25  ;;  %v393_v36 = vsel %vm374_vm0, %v344_v12, 0.0  ;;  %v394_v38 = vsel %vm374_vm0, %v345_v13, 0.0  ;;  %v318_v24 = vld [vmem:[%s2288_s17 + $0x40] sm:$0xff]  ;;  %v319_v25 = vld [vmem:[%s2288_s17 + $0x48] sm:$0xff] }
  0x16   : > { %1965 = vmatprep.subr.bf16.mxu0 %v2104_v3  ;;  %v2031_v33 = vpack.i.bf16 %v542_v30, %v539_v29  ;;  %v445_v35 = vsel %vm439_vm2, %v443_v26, %v444_v27  ;;  %v543_v39 = vrot.slane %v2317_v31, 2  ;;  %v544_v40 = vrot.slane %v393_v36, 2 }
  0x17   : > { %v2021_v37 = vpack.i.bf16 %v445_v35, %v442_v34  ;;  %v546_v42 = vrot.slane %v2320_v32, 2  ;;  %v547_v43 = vrot.slane %v394_v38, 2  ;;  %v446_v44 = vrot.slane %v2317_v31, 1 }
  0x18   : > { %2032 = vrot.lane.b32.xlu1 %v2031_v33, %s2219_s24  ;;  %v447_v45 = vrot.slane %v393_v36, 1  ;;  %v545_v46 = vsel %vm536_vm1, %v543_v39, %v544_v40  ;;  %v449_v47 = vrot.slane %v2320_v32, 1  ;;  %v450_v48 = vrot.slane %v394_v38, 1 }
  0x19   : > { %1966 = vmatpush3.bf16.msra.mxu0 %v2104_v3  ;;  %2022 = vrot.lane.b32.xlu0 %v2021_v37, %s2220_s25  ;;  %v2337_v49 = vsel %vm374_vm0, 0.0, %v348_v14  ;;  %v548_v50 = vsel %vm536_vm1, %v546_v42, %v547_v43  ;;  %v2342_v52 = vsel %vm374_vm0, 0.0, %v349_v15  ;;  %v397_v53 = vsel %vm374_vm0, %v348_v14, 0.0 }
  0x1a   : > { %1967 = vmatprep.subr.bf16.mxu0 %v2105_v28  ;;  %v448_v51 = vsel %vm439_vm2, %v446_v44, %v447_v45  ;;  %v2036_v56 = vpack.i.bf16 %v548_v50, %v545_v46  ;;  %v451_v57 = vsel %vm439_vm2, %v449_v47, %v450_v48  ;;  %v398_v58 = vsel %vm374_vm0, %v349_v15, 0.0 }
  0x1b   : > { %v458_v59 = vrot.slane %v2337_v49, 1  ;;  %v2026_v60 = vpack.i.bf16 %v451_v57, %v448_v51  ;;  %v459_v61 = vrot.slane %v397_v53, 1  ;;  %v461_v62 = vrot.slane %v2342_v52, 1 }
  0x1c   : > { %v462_v63 = vrot.slane %v398_v58, 1  ;;  %2037 = vrot.lane.b32.xlu1 %v2036_v56, %s2219_s24  ;;  %v347_v1 = vrot.slane %v315_v55, 7  ;;  %v555_v2 = vrot.slane %v2337_v49, 2  ;;  %v556_v3 = vrot.slane %v397_v53, 2 }
  0x1d   : > { %1968 = vmatpush3.bf16.msra.mxu0 %v2105_v28  ;;  %2027 = vrot.lane.b32.xlu0 %v2026_v60, %s2220_s25  ;;  %v460_v4 = vsel %vm439_vm2, %v458_v59, %v459_v61  ;;  %v558_v6 = vrot.slane %v2342_v52, 2  ;;  %v559_v7 = vrot.slane %v398_v58, 2  ;;  %v2358_v9 = vsel %vm374_vm0, 0.0, %v346_v0 }
  0x1e   : > { %1969 = vmatprep.subr.bf16.mxu0 %v2106_v41  ;;  %v463_v5 = vsel %vm439_vm2, %v461_v62, %v462_v63  ;;  %v2361_v10 = vsel %vm374_vm0, 0.0, %v347_v1  ;;  %v395_v11 = vsel %vm374_vm0, %v346_v0, 0.0  ;;  %v396_v12 = vsel %vm374_vm0, %v347_v1, 0.0 }
  0x1f   : > { %v2046_v8 = vpack.i.bf16 %v463_v5, %v460_v4  ;;  %v452_v13 = vrot.slane %v2358_v9, 1  ;;  %v453_v14 = vrot.slane %v395_v11, 1  ;;  %v455_v15 = vrot.slane %v2361_v10, 1 }
  0x20   : > { %v456_v20 = vrot.slane %v396_v12, 1  ;;  %v557_v21 = vsel %vm536_vm1, %v555_v2, %v556_v3  ;;  %v560_v22 = vsel %vm536_vm1, %v558_v6, %v559_v7  ;;  %v549_v23 = vrot.slane %v2358_v9, 2  ;;  %v324_v2 = vld [vmem:[%s2288_s17 + $0x70] sm:$0xff]  ;;  %v325_v3 = vld [vmem:[%s2288_s17 + $0x78] sm:$0xff] }
  0x21   : > { %1970 = vmatpush3.bf16.msra.mxu0 %v2106_v41  ;;  %2047 = vrot.lane.b32.xlu1 %v2046_v8, %s2220_s25  ;;  %v454_v26 = vsel %vm439_vm2, %v452_v13, %v453_v14  ;;  %v2056_v27 = vpack.i.bf16 %v560_v22, %v557_v21  ;;  %v550_v28 = vrot.slane %v395_v11, 2  ;;  %v552_v29 = vrot.slane %v2361_v10, 2  ;;  %v322_v8 = vld [vmem:[%s2288_s17 + $0x60] sm:$0xff]  ;;  %v323_v11 = vld [vmem:[%s2288_s17 + $0x68] sm:$0xff] }
  0x22   : > { %v457_v30 = vsel %vm439_vm2, %v455_v15, %v456_v20  ;;  %v553_v33 = vrot.slane %v396_v12, 2  ;;  %v352_v34 = vrot.slane %v320_v18, 7  ;;  %v353_v35 = vrot.slane %v321_v19, 7 }
  0x23   : > { %v2041_v36 = vpack.i.bf16 %v457_v30, %v454_v26  ;;  %v551_v37 = vsel %vm536_vm1, %v549_v23, %v550_v28  ;;  %v350_v38 = vrot.slane %v318_v24, 7  ;;  %v351_v39 = vrot.slane %v319_v25, 7 }
  0x24   : > { %v554_v40 = vsel %vm536_vm1, %v552_v29, %v553_v33  ;;  %v2382_v41 = vsel %vm374_vm0, 0.0, %v352_v34  ;;  %v2385_v42 = vsel %vm374_vm0, 0.0, %v353_v35  ;;  %v401_v43 = vsel %vm374_vm0, %v352_v34, 0.0 }
  0x25   : > { %2057 = vrot.lane.b32.xlu1 %v2056_v27, %s2219_s24  ;;  %2042 = vrot.lane.b32.xlu0 %v2041_v36, %s2220_s25  ;;  %v2051_v44 = vpack.i.bf16 %v554_v40, %v551_v37  ;;  %v402_v45 = vsel %vm374_vm0, %v353_v35, 0.0  ;;  %v470_v46 = vrot.slane %v2382_v41, 1  ;;  %v471_v47 = vrot.slane %v401_v43, 1 }
  0x26   : > { %v473_v48 = vrot.slane %v2385_v42, 1  ;;  %v474_v50 = vrot.slane %v402_v45, 1  ;;  %v2393_v51 = vsel %vm374_vm0, 0.0, %v350_v38  ;;  %v2396_v53 = vsel %vm374_vm0, 0.0, %v351_v39 }
  0x27   : > { %v472_v54 = vsel %vm439_vm2, %v470_v46, %v471_v47  ;;  %v399_v55 = vsel %vm374_vm0, %v350_v38, 0.0  ;;  %v400_v56 = vsel %vm374_vm0, %v351_v39, 0.0  ;;  %v464_v57 = vrot.slane %v2393_v51, 1 }
  0x28   : > { %v475_v58 = vsel %vm439_vm2, %v473_v48, %v474_v50  ;;  %v465_v59 = vrot.slane %v399_v55, 1  ;;  %v467_v60 = vrot.slane %v2396_v53, 1  ;;  %v468_v61 = vrot.slane %v400_v56, 1 }
  0x29   : > { %2052 = vrot.lane.b32.xlu0 %v2051_v44, %s2219_s24  ;;  %v2066_v62 = vpack.i.bf16 %v475_v58, %v472_v54  ;;  %v567_v63 = vrot.slane %v2382_v41, 2  ;;  %v568_v0 = vrot.slane %v401_v43, 2  ;;  %v570_v1 = vrot.slane %v2385_v42, 2 }
  0x2a   : > { %v466_v4 = vsel %vm439_vm2, %v464_v57, %v465_v59  ;;  %v469_v5 = vsel %vm439_vm2, %v467_v60, %v468_v61  ;;  %v571_v6 = vrot.slane %v402_v45, 2  ;;  %v561_v7 = vrot.slane %v2393_v51, 2 }
  0x2b   : > { %2067 = vrot.lane.b32.xlu1 %v2066_v62, %s2220_s25  ;;  %v2061_v12 = vpack.i.bf16 %v469_v5, %v466_v4  ;;  %v569_v13 = vsel %vm536_vm1, %v567_v63, %v568_v0  ;;  %v562_v14 = vrot.slane %v399_v55, 2  ;;  %v564_v15 = vrot.slane %v2396_v53, 2  ;;  %v2107_v62 = vld [vmem:[%s3103_s3 + $0x18] sm:$0xff]  }
  0x2c   : > { %v572_v18 = vsel %vm536_vm1, %v570_v1, %v571_v6  ;;  %v565_v19 = vrot.slane %v400_v56, 2  ;;  %v356_v20 = vrot.slane %v324_v2, 7  ;;  %v357_v21 = vrot.slane %v325_v3, 7  ;;  %1987 = vmatprep.subr.bf16.mxu1 %v2107_v62 }
  0x2d   : > { %2062 = vrot.lane.b32.xlu0 %v2061_v12, %s2220_s25  ;;  %v2076_v22 = vpack.i.bf16 %v572_v18, %v569_v13  ;;  %v563_v23 = vsel %vm536_vm1, %v561_v7, %v562_v14  ;;  %v354_v24 = vrot.slane %v322_v8, 7  ;;  %v355_v25 = vrot.slane %v323_v11, 7  ;;  %1988 = vmatpush3.bf16.msra.mxu1 %v2107_v62 }
  0x2e   : > { %v566_v26 = vsel %vm536_vm1, %v564_v15, %v565_v19  ;;  %v2422_v27 = vsel %vm374_vm0, 0.0, %v356_v20  ;;  %v2425_v28 = vsel %vm374_vm0, 0.0, %v357_v21  ;;  %v405_v29 = vsel %vm374_vm0, %v356_v20, 0.0 }
  0x2f   : > { %2077 = vrot.lane.b32.xlu1 %v2076_v22, %s2219_s24  ;;  %v2071_v30 = vpack.i.bf16 %v566_v26, %v563_v23  ;;  %v406_v33 = vsel %vm374_vm0, %v357_v21, 0.0  ;;  %v482_v34 = vrot.slane %v2422_v27, 1  ;;  %v483_v35 = vrot.slane %v405_v29, 1 }
  0x30   : > { %v485_v36 = vrot.slane %v2425_v28, 1  ;;  %v486_v37 = vrot.slane %v406_v33, 1  ;;  %v2433_v38 = vsel %vm374_vm0, 0.0, %v354_v24  ;;  %v2436_v39 = vsel %vm374_vm0, 0.0, %v355_v25 }
  0x31   : > { %2072 = vrot.lane.b32.xlu0 %v2071_v30, %s2219_s24  ;;  %v484_v40 = vsel %vm439_vm2, %v482_v34, %v483_v35  ;;  %v403_v43 = vsel %vm374_vm0, %v354_v24, 0.0  ;;  %v404_v44 = vsel %vm374_vm0, %v355_v25, 0.0  ;;  %v476_v45 = vrot.slane %v2433_v38, 1 }
  0x32   : > { %v487_v46 = vsel %vm439_vm2, %v485_v36, %v486_v37  ;;  %v477_v47 = vrot.slane %v403_v43, 1  ;;  %v479_v48 = vrot.slane %v2436_v39, 1  ;;  %v480_v50 = vrot.slane %v404_v44, 1 }
  0x33   : > { %v2086_v54 = vpack.i.bf16 %v487_v46, %v484_v40  ;;  %v579_v55 = vrot.slane %v2422_v27, 2  ;;  %v580_v56 = vrot.slane %v405_v29, 2  ;;  %v582_v57 = vrot.slane %v2425_v28, 2 }
  0x34   : > { %v478_v58 = vsel %vm439_vm2, %v476_v45, %v477_v47  ;;  %v481_v59 = vsel %vm439_vm2, %v479_v48, %v480_v50  ;;  %v583_v60 = vrot.slane %v406_v33, 2  ;;  %v573_v61 = vrot.slane %v2433_v38, 2 }
  0x35   : > { %2087 = vrot.lane.b32.xlu1 %v2086_v54, %s2220_s25  ;;  %v2081_v63 = vpack.i.bf16 %v481_v59, %v478_v58  ;;  %v581_v0 = vsel %vm536_vm1, %v579_v55, %v580_v56  ;;  %v574_v1 = vrot.slane %v403_v43, 2  ;;  %v576_v2 = vrot.slane %v2436_v39, 2 }
  0x36   : > { %v584_v3 = vsel %vm536_vm1, %v582_v57, %v583_v60  ;;  %v577_v4 = vrot.slane %v404_v44, 2  ;;  %vm1553_vm12 = vcmask 1047559  }
  0x37   : > { %2082 = vrot.lane.b32.xlu0 %v2081_v63, %s2220_s25  ;;  %v2096_v5 = vpack.i.bf16 %v584_v3, %v581_v0  ;;  %v575_v6 = vsel %vm536_vm1, %v573_v61, %v574_v1 }
  0x38   : > { %v578_v7 = vsel %vm536_vm1, %v576_v2, %v577_v4 }
  0x39   : > { %2097 = vrot.lane.b32.xlu1 %v2096_v5, %s2219_s24  ;;  %v2091_v8 = vpack.i.bf16 %v578_v7, %v575_v6 }
  0x3b   : > { %2092 = vrot.lane.b32.xlu0 %v2091_v8, %s2219_s24  ;;  %s1899_s24 = sshll.u32 %s3138_s20, 3 }
  0x3c   : > { %s3057_s29 = scalar_lea.vmem %s3108_s8, %s1899_s24 }
  0x8a   : > { %v2033_v11 = vpop.permute.xlu1 %2032 }
  0x8b   : > { %v2035_v12 = vunpack.i.h.bf16 %v2033_v11  ;;  %v2034_v13 = vunpack.i.l.bf16 %v2033_v11  ;;  %v2023_v14 = vpop.permute.xlu0 %2022 }
  0x8c   : > { %v2025_v15 = vunpack.i.h.bf16 %v2023_v14  ;;  %v2024_v18 = vunpack.i.l.bf16 %v2023_v14 }
  0x8e   : > { %v634_v19 = vsel %vm633_vm3, %v2300_v16, %v2024_v18  ;;  %v635_v20 = vsel %vm633_vm3, %v2303_v17, %v2025_v15  ;;  %v2038_v21 = vpop.permute.xlu1 %2037 }
  0x8f   : > { %v651_v22 = vsel %vm650_vm4, %v634_v19, %v2034_v13  ;;  %v652_v23 = vsel %vm650_vm4, %v635_v20, %v2035_v12  ;;  %v2040_v24 = vunpack.i.h.bf16 %v2038_v21  ;;  %v2039_v25 = vunpack.i.l.bf16 %v2038_v21  ;;  %v2028_v26 = vpop.permute.xlu0 %2027 }
  0x90   : > { %v667_v29 = vpack.c.bf16 %v652_v23, %v651_v22  ;;  %v2030_v30 = vunpack.i.h.bf16 %v2028_v26  ;;  %v2029_v33 = vunpack.i.l.bf16 %v2028_v26 }
  0x92   : > { %1971 = vmatprep.mubr.msk.bf16.mxu0 %vm730_vm5, %v667_v29  ;;  %v637_v16 = vsel %vm633_vm3, %v2320_v32, %v2030_v30  ;;  %v636_v17 = vsel %vm633_vm3, %v2317_v31, %v2029_v33 }
  0x93   : > { %v2048_v34 = vpop.permute.xlu1 %2047  ;;  %v653_v35 = vsel %vm650_vm4, %v636_v17, %v2039_v25  ;;  %v654_v36 = vsel %vm650_vm4, %v637_v16, %v2040_v24 }
  0x94   : > { %v668_v37 = vpack.c.bf16 %v654_v36, %v653_v35  ;;  %v2050_v40 = vunpack.i.h.bf16 %v2048_v34  ;;  %v2049_v43 = vunpack.i.l.bf16 %v2048_v34 }
  0x96   : > { %1972 = vmatmul.mubr.msk.bf16.vlgmr.msra.gmra.mxu0 %vm730_vm5, %v668_v37  ;;  %v641_v32 = vsel %vm633_vm3, %v2342_v52, %v2050_v40  ;;  %v640_v31 = vsel %vm633_vm3, %v2337_v49, %v2049_v43 }
  0x97   : > { %v2058_v44 = vpop.permute.xlu1 %2057  ;;  %v2043_v45 = vpop.permute.xlu0 %2042 }
  0x98   : > { %v2060_v46 = vunpack.i.h.bf16 %v2058_v44  ;;  %v2059_v47 = vunpack.i.l.bf16 %v2058_v44  ;;  %v2045_v48 = vunpack.i.h.bf16 %v2043_v45  ;;  %v2044_v50 = vunpack.i.l.bf16 %v2043_v45  ;;  %v2110_v45 = vld [vmem:[%s3103_s3] sm:$0xff]  }
  0x9a   : > { %v657_v54 = vsel %vm650_vm4, %v640_v31, %v2059_v47  ;;  %v658_v55 = vsel %vm650_vm4, %v641_v32, %v2060_v46  ;;  %v639_v59 = vsel %vm633_vm3, %v2361_v10, %v2045_v48  ;;  %v638_v60 = vsel %vm633_vm3, %v2358_v9, %v2044_v50  ;;  %v1900_v48 = vld [vmem:[%s3102_s2] ss:$0 sm:$0xff] }
  0x9b   : > { %v2053_v56 = vpop.permute.xlu0 %2052  ;;  %v670_v62 = vpack.c.bf16 %v658_v55, %v657_v54 }
  0x9c   : > { %v2055_v57 = vunpack.i.h.bf16 %v2053_v56  ;;  %v2054_v58 = vunpack.i.l.bf16 %v2053_v56 }
  0x9d   : > { %v2068_v61 = vpop.permute.xlu1 %2067 }
  0x9e   : > { %v655_v52 = vsel %vm650_vm4, %v638_v60, %v2054_v58  ;;  %v656_v63 = vsel %vm650_vm4, %v639_v59, %v2055_v57  ;;  %v2070_v0 = vunpack.i.h.bf16 %v2068_v61  ;;  %v2069_v1 = vunpack.i.l.bf16 %v2068_v61 }
  0x9f   : > { %v669_v49 = vpack.c.bf16 %v656_v63, %v655_v52  ;;  %v2063_v2 = vpop.permute.xlu0 %2062 }
  0xa0   : > { %v2065_v3 = vunpack.i.h.bf16 %v2063_v2  ;;  %v2064_v4 = vunpack.i.l.bf16 %v2063_v2  ;;  %v645_v9 = vsel %vm633_vm3, %v2385_v42, %v2070_v0  ;;  %v644_v7 = vsel %vm633_vm3, %v2382_v41, %v2069_v1 }
  0xa1   : > { %1975 = vmatprep.mubr.msk.bf16.mxu0 %vm730_vm5, %v669_v49  ;;  %v2078_v5 = vpop.permute.xlu1 %2077 }
  0xa2   : > { %1976 = vmatmul.mubr.msk.bf16.gmra.mxu0 %vm730_vm5, %v670_v62  ;;  %v2080_v10 = vunpack.i.h.bf16 %v2078_v5  ;;  %v2079_v6 = vunpack.i.l.bf16 %v2078_v5  ;;  %v643_v15 = vsel %vm633_vm3, %v2396_v53, %v2065_v3  ;;  %v642_v18 = vsel %vm633_vm3, %v2393_v51, %v2064_v4 }
  0xa3   : > { %v2073_v8 = vpop.permute.xlu0 %2072 }
  0xa4   : > { %v661_v11 = vsel %vm650_vm4, %v644_v7, %v2079_v6  ;;  %v662_v12 = vsel %vm650_vm4, %v645_v9, %v2080_v10  ;;  %v2075_v13 = vunpack.i.h.bf16 %v2073_v8  ;;  %v2074_v14 = vunpack.i.l.bf16 %v2073_v8 }
  0xa5   : > { %v672_v19 = vpack.c.bf16 %v662_v12, %v661_v11 }
  0xa6   : > { %v659_v20 = vsel %vm650_vm4, %v642_v18, %v2074_v14  ;;  %v660_v42 = vsel %vm650_vm4, %v643_v15, %v2075_v13 }
  0xa7   : > { %v671_v21 = vpack.c.bf16 %v660_v42, %v659_v20  ;;  %v2088_v41 = vpop.permute.xlu1 %2087 }
  0xa8   : > { %v2090_v22 = vunpack.i.h.bf16 %v2088_v41  ;;  %v2089_v23 = vunpack.i.l.bf16 %v2088_v41 }
  0xa9   : > { %v2083_v24 = vpop.permute.xlu0 %2082  ;;  %1979 = vmatprep.mubr.msk.bf16.mxu0 %vm730_vm5, %v671_v21 }
  0xaa   : > { %v2085_v25 = vunpack.i.h.bf16 %v2083_v24  ;;  %v2084_v26 = vunpack.i.l.bf16 %v2083_v24  ;;  %1980 = vmatmul.mubr.msk.bf16.gmra.mxu0 %vm730_vm5, %v672_v19  ;;  %v649_v53 = vsel %vm633_vm3, %v2425_v28, %v2090_v22  ;;  %v648_v51 = vsel %vm633_vm3, %v2422_v27, %v2089_v23 }
  0xab   : > { %v2098_v29 = vpop.permute.xlu1 %2097 }
  0xac   : > { %v2100_v30 = vunpack.i.h.bf16 %v2098_v29  ;;  %v2099_v33 = vunpack.i.l.bf16 %v2098_v29  ;;  %v647_v16 = vsel %vm633_vm3, %v2436_v39, %v2085_v25  ;;  %v646_v17 = vsel %vm633_vm3, %v2433_v38, %v2084_v26  ;;  %v2108_v38 = vld [vmem:[%s3103_s3 + $0x10] sm:$0xff]   ;;  %v2109_v39 = vld [vmem:[%s3103_s3 + $0x8] sm:$0xff]  }
  0xad   : > { %v2093_v34 = vpop.permute.xlu0 %2092  ;;  %1989 = vmatprep.subr.bf16.mxu1 %v2108_v38 }
  0xae   : > { %v665_v35 = vsel %vm650_vm4, %v648_v51, %v2099_v33  ;;  %v666_v36 = vsel %vm650_vm4, %v649_v53, %v2100_v30  ;;  %v2095_v37 = vunpack.i.h.bf16 %v2093_v34  ;;  %v2094_v40 = vunpack.i.l.bf16 %v2093_v34  ;;  %1990 = vmatpush3.bf16.msra.mxu1 %v2108_v38 }
  0xaf   : > { %v674_v28 = vpack.c.bf16 %v666_v36, %v665_v35  ;;  %1991 = vmatprep.subr.bf16.mxu1 %v2109_v39 }
  0xb0   : > { %v663_v43 = vsel %vm650_vm4, %v646_v17, %v2094_v40  ;;  %v664_v27 = vsel %vm650_vm4, %v647_v16, %v2095_v37 }
  0xb1   : > { %v673_v44 = vpack.c.bf16 %v664_v27, %v663_v43 }
  0xb2   : > { %1992 = vmatpush3.bf16.msra.mxu1 %v2109_v39 }
  0xb3   : > { %1983 = vmatprep.mubr.msk.bf16.mxu0 %vm730_vm5, %v673_v44  ;;  %1993 = vmatprep.subr.bf16.mxu1 %v2110_v45 }
  0xb4   : > { %1984 = vmatmul.mubr.msk.bf16.gmra.mxu0 %vm730_vm5, %v674_v28  ;;  %v2621_v28 = vld [vmem:[%s3104_s4] ss:$0 sm:$0xff] }
  0xb6   : > { %1994 = vmatpush3.bf16.msra.mxu1 %v2110_v45 }
 0x156   : > { %v1973_v46 = vpop.f32.mrf.mxu0 }
 0x157   : > { %v2534_v54 = vadd.f32 %v1973_v46, %v1900_v48 }
 0x158   : > { %v789_v47 = vpop.f32.mrf.mxu0 }
 0x159   : > { %v2530_v32 = vadd.f32 %v1900_v48, %v789_v47  ;;  %v854_v60 = vmax.f32 %v2534_v54, 0.0 }
 0x15a   : > { %v1974_v50 = vpop.f32.mrf.mxu0 }
 0x15b   : > { %v2532_v31 = vadd.f32 %v1974_v50, %v1900_v48  ;;  %v852_v58 = vmax.f32 %v2530_v32, 0.0 }
 0x15c   : > { %v792_v55 = vpop.f32.mrf.mxu0 }
 0x15d   : > { %v2536_v56 = vadd.f32 %v1900_v48, %v792_v55  ;;  %v3121_v57 = vmax.f32 %v2532_v31, 0.0 }
 0x15f   : > { %v853_v59 = vmax.f32 %v2536_v56, 0.0  ;;  %v879_v62 = vpack.c.bf16 %v3121_v57, %v854_v60 }
 0x161   : > { %v878_v61 = vpack.c.bf16 %v853_v59, %v852_v58 }
 0x162   : > { %v1977_v52 = vpop.f32.mrf.mxu0 }
 0x163   : > { %1995 = vmatprep.mubr.msk.bf16.mxu1 %vm650_vm4, %v878_v61  ;;  %v2556_v2 = vadd.f32 %v1977_v52, %v1900_v48  ;;  %v2631_v61 = vld [vmem:[%s3105_s5] ss:$0 sm:$0xff] }
 0x164   : > { %v805_v63 = vpop.f32.mrf.mxu0  ;;  %1996 = vmatmul.mubr.msk.bf16.vlgmr.msra.gmra.mxu1 %vm650_vm4, %v879_v62 }
 0x165   : > { %v2552_v0 = vadd.f32 %v1900_v48, %v805_v63  ;;  %v3118_v7 = vmax.f32 %v2556_v2, 0.0 }
 0x166   : > { %v1978_v49 = vpop.f32.mrf.mxu0 }
 0x167   : > { %v2554_v1 = vadd.f32 %v1978_v49, %v1900_v48  ;;  %v3120_v6 = vmax.f32 %v2552_v0, 0.0  ;;  %v3123_v54 = vmax.f32 %v2552_v0, 0.0 }
 0x168   : > { %v808_v3 = vpop.f32.mrf.mxu0 }
 0x169   : > { %v2558_v4 = vadd.f32 %v1900_v48, %v808_v3  ;;  %v3117_v5 = vmax.f32 %v2554_v1, 0.0 }
 0x16a   : > { %v1981_v10 = vpop.f32.mrf.mxu0 }
 0x16b   : > { %v3119_v9 = vmax.f32 %v2558_v4, 0.0  ;;  %v881_v12 = vpack.c.bf16 %v3117_v5, %v3118_v7  ;;  %v2577_v18 = vadd.f32 %v1981_v10, %v1900_v48 }
 0x16c   : > { %v821_v8 = vpop.f32.mrf.mxu0 }
 0x16d   : > { %v880_v11 = vpack.c.bf16 %v3119_v9, %v3120_v6  ;;  %v2572_v14 = vadd.f32 %v1900_v48, %v821_v8  ;;  %v3114_v22 = vmax.f32 %v2577_v18, 0.0 }
 0x16e   : > { %v1982_v13 = vpop.f32.mrf.mxu0 }
 0x16f   : > { %v2574_v15 = vadd.f32 %v1982_v13, %v1900_v48  ;;  %1999 = vmatprep.mubr.msk.bf16.mxu1 %vm650_vm4, %v880_v11  ;;  %v3116_v21 = vmax.f32 %v2572_v14, 0.0 }
 0x170   : > { %v824_v19 = vpop.f32.mrf.mxu0  ;;  %2000 = vmatmul.mubr.msk.bf16.gmra.mxu1 %vm650_vm4, %v881_v12 }
 0x171   : > { %v2580_v20 = vadd.f32 %v1900_v48, %v824_v19  ;;  %v3113_v42 = vmax.f32 %v2574_v15, 0.0 }
 0x173   : > { %v3115_v41 = vmax.f32 %v2580_v20, 0.0  ;;  %v883_v25 = vpack.c.bf16 %v3113_v42, %v3114_v22 }
 0x174   : > { %v1985_v23 = vpop.f32.mrf.mxu0 }
 0x175   : > { %v882_v24 = vpack.c.bf16 %v3115_v41, %v3116_v21  ;;  %v2600_v30 = vadd.f32 %v1985_v23, %v1900_v48 }
 0x176   : > { %v837_v26 = vpop.f32.mrf.mxu0 }
 0x177   : > { %2003 = vmatprep.mubr.msk.bf16.mxu1 %vm650_vm4, %v882_v24  ;;  %v2596_v51 = vadd.f32 %v1900_v48, %v837_v26  ;;  %v3110_v36 = vmax.f32 %v2600_v30, 0.0 }
 0x178   : > { %v1986_v53 = vpop.f32.mrf.mxu0  ;;  %2004 = vmatmul.mubr.msk.bf16.gmra.mxu1 %vm650_vm4, %v883_v25 }
 0x179   : > { %v2598_v29 = vadd.f32 %v1986_v53, %v1900_v48  ;;  %v3112_v34 = vmax.f32 %v2596_v51, 0.0 }
 0x17a   : > { %v840_v33 = vpop.f32.mrf.mxu0 }
 0x17b   : > { %v2602_v16 = vadd.f32 %v1900_v48, %v840_v33  ;;  %v3109_v17 = vmax.f32 %v2598_v29, 0.0 }
 0x17d   : > { %v3111_v35 = vmax.f32 %v2602_v16, 0.0  ;;  %v885_v40 = vpack.c.bf16 %v3109_v17, %v3110_v36 }
 0x17f   : > { %v884_v37 = vpack.c.bf16 %v3111_v35, %v3112_v34 }
 0x181   : > { %2007 = vmatprep.mubr.msk.bf16.mxu1 %vm650_vm4, %v884_v37 }
 0x182   : > { %2008 = vmatmul.mubr.msk.bf16.gmra.mxu1 %vm650_vm4, %v885_v40 }
 0x224   : > { %v1997_v43 = vpop.f32.mrf.mxu1 }
 0x225   : > { %v983_v27 = vadd.f32 %v1997_v43, %v2621_v28 }
 0x226   : > { %v974_v44 = vpop.f32.mrf.mxu1 }
 0x227   : > { %2111 = vtanh.f32 %v983_v27  ;;  %v975_v38 = vadd.f32 %v2621_v28, %v974_v44 }
 0x228   : > { %v1998_v39 = vpop.f32.mrf.mxu1 }
 0x229   : > { %2113 = vtanh.f32 %v975_v38  ;;  %v986_v45 = vadd.f32 %v1998_v39, %v2621_v28 }
 0x22a   : > { %v977_v46 = vpop.f32.mrf.mxu1 }
 0x22b   : > { %2115 = vtanh.f32 %v986_v45  ;;  %v978_v47 = vadd.f32 %v2621_v28, %v977_v46 }
 0x22d   : > { %2117 = vtanh.f32 %v978_v47 }
 0x230   : > { %v2001_v48 = vpop.f32.mrf.mxu1 }
 0x231   : > { %v999_v50 = vadd.f32 %v2001_v48, %v2621_v28 }
 0x232   : > { %v990_v55 = vpop.f32.mrf.mxu1 }
 0x233   : > { %2119 = vtanh.f32 %v999_v50  ;;  %v991_v62 = vadd.f32 %v2621_v28, %v990_v55 }
 0x234   : > { %v2112_v52 = vpop.eup %2111  ;;  %v2002_v63 = vpop.f32.mrf.mxu1 }
 0x235   : > { %2121 = vtanh.f32 %v991_v62  ;;  %v1061_v49 = vmul.f32 %v2112_v52, %v2631_v61  ;;  %v1002_v25 = vadd.f32 %v2002_v63, %v2621_v28 }
 0x236   : > { %v2114_v3 = vpop.eup %2113  ;;  %v993_v10 = vpop.f32.mrf.mxu1 }
 0x237   : > { %v994_v8 = vadd.f32 %v2621_v28, %v993_v10  ;;  %v1081_v11 = vsel %vm633_vm3, %v1061_v49, 0.0  ;;  %v1059_v12 = vmul.f32 %v2114_v3, %v2631_v61 }
 0x238   : > { %v2116_v13 = vpop.eup %2115  ;;  %v2005_v19 = vpop.f32.mrf.mxu1  ;;  %1082 = vadd.xlane.f32.xlu0 %v1081_v11 }
 0x239   : > { %2123 = vtanh.f32 %v994_v8  ;;  %v1015_v23 = vadd.f32 %v2005_v19, %v2621_v28  ;;  %v1075_v53 = vsel %vm633_vm3, %v1059_v12, 0.0  ;;  %v1062_v40 = vmul.f32 %v2116_v13, %v2631_v61 }
 0x23a   : > { %v2118_v24 = vpop.eup %2117  ;;  %v1006_v26 = vpop.f32.mrf.mxu1 }
 0x23b   : > { %2125 = vtanh.f32 %v1015_v23  ;;  %v1007_v33 = vadd.f32 %v2621_v28, %v1006_v26  ;;  %v1060_v37 = vmul.f32 %v2118_v24, %v2631_v61  ;;  %v1084_v45 = vsel %vm633_vm3, %v1062_v40, 0.0 }
 0x23c   : > { %v2006_v43 = vpop.f32.mrf.mxu1  ;;  %1076 = vadd.xlane.f32.xlu0 %v1075_v53 }
 0x23d   : > { %2127 = vtanh.f32 %v1007_v33  ;;  %v1018_v27 = vadd.f32 %v2006_v43, %v2621_v28  ;;  %v1078_v44 = vsel %vm633_vm3, %v1060_v37, 0.0 }
 0x23e   : > { %2129 = vtanh.f32 %v1002_v25  ;;  %v1009_v38 = vpop.f32.mrf.mxu1  ;;  %1079 = vadd.xlane.f32.xlu1 %v1078_v44 }
 0x23f   : > { %2131 = vtanh.f32 %v1018_v27  ;;  %v1010_v39 = vadd.f32 %v2621_v28, %v1009_v38 }
 0x240   : > { %v2120_v46 = vpop.eup %2119  ;;  %1085 = vadd.xlane.f32.xlu0 %v1084_v45 }
 0x241   : > { %2133 = vtanh.f32 %v1010_v39  ;;  %v1065_v47 = vmul.f32 %v2120_v46, %v2631_v61 }
 0x242   : > { %v2122_v48 = vpop.eup %2121  ;;  %v2009_v50 = vpop.f32.mrf.mxu1 }
 0x243   : > { %v1093_v55 = vsel %vm633_vm3, %v1065_v47, 0.0  ;;  %v1063_v62 = vmul.f32 %v2122_v48, %v2631_v61  ;;  %v1031_v3 = vadd.f32 %v2009_v50, %v2621_v28 }
 0x244   : > { %v1022_v52 = vpop.f32.mrf.mxu1  ;;  %1094 = vadd.xlane.f32.xlu0 %v1093_v55 }
 0x245   : > { %v1023_v63 = vadd.f32 %v2621_v28, %v1022_v52  ;;  %v1087_v11 = vsel %vm633_vm3, %v1063_v62, 0.0 }
 0x246   : > { %v2124_v49 = vpop.eup %2123  ;;  %v2010_v10 = vpop.f32.mrf.mxu1 }
 0x247   : > { %2135 = vtanh.f32 %v1023_v63  ;;  %v1034_v8 = vadd.f32 %v2010_v10, %v2621_v28  ;;  %v1064_v12 = vmul.f32 %v2124_v49, %v2631_v61 }
 0x248   : > { %v2126_v13 = vpop.eup %2125  ;;  %v1025_v19 = vpop.f32.mrf.mxu1  ;;  %1088 = vadd.xlane.f32.xlu0 %v1087_v11 }
 0x249   : > { %2137 = vtanh.f32 %v1034_v8  ;;  %v1026_v23 = vadd.f32 %v2621_v28, %v1025_v19  ;;  %v1069_v24 = vmul.f32 %v2126_v13, %v2631_v61  ;;  %v1090_v33 = vsel %vm633_vm3, %v1064_v12, 0.0 }
 0x24a   : > { %v2128_v25 = vpop.eup %2127  ;;  %2139 = vtanh.f32 %v1031_v3 }
 0x24b   : > { %v2130_v26 = vpop.eup %2129  ;;  %2141 = vtanh.f32 %v1026_v23  ;;  %v1105_v53 = vsel %vm633_vm3, %v1069_v24, 0.0  ;;  %v1067_v37 = vmul.f32 %v2128_v25, %v2631_v61 }
 0x24c   : > { %v2132_v40 = vpop.eup %2131  ;;  %1106 = vadd.xlane.f32.xlu1 %v1105_v53  ;;  %1091 = vadd.xlane.f32.xlu0 %v1090_v33  ;;  %v1066_v39 = vmul.f32 %v2130_v26, %v2631_v61 }
 0x24d   : > { %v1070_v43 = vmul.f32 %v2132_v40, %v2631_v61  ;;  %v1099_v38 = vsel %vm633_vm3, %v1067_v37, 0.0 }
 0x24e   : > { %v2134_v27 = vpop.eup %2133  ;;  %v1096_v46 = vsel %vm633_vm3, %v1066_v39, 0.0 }
 0x24f   : > { %v1108_v28 = vsel %vm633_vm3, %v1070_v43, 0.0  ;;  %v1068_v44 = vmul.f32 %v2134_v27, %v2631_v61 }
 0x250   : > { %1109 = vadd.xlane.f32.xlu1 %v1108_v28  ;;  %1100 = vadd.xlane.f32.xlu0 %v1099_v38 }
 0x251   : > { %v1102_v45 = vsel %vm633_vm3, %v1068_v44, 0.0 }
 0x254   : > { %v2136_v47 = vpop.eup %2135  ;;  %1103 = vadd.xlane.f32.xlu1 %v1102_v45  ;;  %1097 = vadd.xlane.f32.xlu0 %v1096_v46 }
 0x255   : > { %v1071_v48 = vmul.f32 %v2136_v47, %v2631_v61 }
 0x256   : > { %v2138_v50 = vpop.eup %2137 }
 0x257   : > { %v2140_v55 = vpop.eup %2139  ;;  %v1111_v62 = vsel %vm633_vm3, %v1071_v48, 0.0  ;;  %v1074_v52 = vmul.f32 %v2138_v50, %v2631_v61 }
 0x258   : > { %v2142_v63 = vpop.eup %2141  ;;  %1112 = vadd.xlane.f32.xlu1 %v1111_v62  ;;  %v1073_v8 = vmul.f32 %v2140_v55, %v2631_v61 }
 0x259   : > { %v1072_v49 = vmul.f32 %v2142_v63, %v2631_v61  ;;  %v1120_v3 = vsel %vm633_vm3, %v1074_v52, 0.0 }
 0x25a   : > { %1121 = vadd.xlane.f32.xlu0 %v1120_v3  ;;  %v1117_v11 = vsel %vm633_vm3, %v1073_v8, 0.0 }
 0x25b   : > { %v1114_v10 = vsel %vm633_vm3, %v1072_v49, 0.0 }
 0x25c   : > { %1115 = vadd.xlane.f32.xlu1 %v1114_v10 }
 0x260   : > { %1118 = vadd.xlane.f32.xlu1 %v1117_v11 }
 0x2c1   : > { %v1083_v12 = vpop.xlane.xlu0 %1082 }
 0x2c2   : > { %v1135_v13 = vrot.slane %v1083_v12, 4 }
 0x2c4   : > { %v1136_v19 = vmax.f32 %v1083_v12, %v1135_v13 }
 0x2c5   : > { %v1077_v23 = vpop.xlane.xlu0 %1076 }
 0x2c6   : > { %v1137_v24 = vrot.slane %v1136_v19, 2  ;;  %v1123_v25 = vrot.slane %v1077_v23, 4 }
 0x2c7   : > { %v1080_v26 = vpop.xlane.xlu1 %1079 }
 0x2c8   : > { %v1138_v53 = vmax.f32 %v1136_v19, %v1137_v24  ;;  %v1124_v33 = vmax.f32 %v1077_v23, %v1123_v25  ;;  %v1129_v37 = vrot.slane %v1080_v26, 4 }
 0x2c9   : > { %v1086_v40 = vpop.xlane.xlu0 %1085 }
 0x2ca   : > { %v1139_v43 = vrot.slane %v1138_v53, 1  ;;  %v1125_v27 = vrot.slane %v1124_v33, 2  ;;  %v1130_v28 = vmax.f32 %v1080_v26, %v1129_v37  ;;  %v1141_v44 = vrot.slane %v1086_v40, 4 }
 0x2cc   : > { %v1140_v61 = vmax.f32 %v1138_v53, %v1139_v43  ;;  %v1126_v38 = vmax.f32 %v1124_v33, %v1125_v27  ;;  %v1131_v39 = vrot.slane %v1130_v28, 2  ;;  %v1142_v45 = vmax.f32 %v1086_v40, %v1141_v44 }
 0x2cd   : > { %v1095_v46 = vpop.xlane.xlu0 %1094 }
 0x2ce   : > { %v1221_v47 = vsub.f32 %v1083_v12, %v1140_v61  ;;  %v1127_v48 = vrot.slane %v1126_v38, 1  ;;  %v1132_v50 = vmax.f32 %v1130_v28, %v1131_v39  ;;  %v1143_v55 = vrot.slane %v1142_v45, 2 }
 0x2cf   : > { %v1159_v62 = vrot.slane %v1095_v46, 4 }
 0x2d0   : > { %v1239_v52 = vmul.f32 1.442695, %v1221_v47  ;;  %v1128_v63 = vmax.f32 %v1126_v38, %v1127_v48  ;;  %v1133_v49 = vrot.slane %v1132_v50, 1  ;;  %v1144_v3 = vmax.f32 %v1142_v45, %v1143_v55 }
 0x2d1   : > { %v1160_v10 = vmax.f32 %v1095_v46, %v1159_v62  ;;  %v1089_v8 = vpop.xlane.xlu0 %1088 }
 0x2d2   : > { %2143 = vpow2.f32 %v1239_v52  ;;  %v1219_v11 = vsub.f32 %v1077_v23, %v1128_v63  ;;  %v1134_v13 = vmax.f32 %v1132_v50, %v1133_v49  ;;  %v1145_v19 = vrot.slane %v1144_v3, 1 }
 0x2d3   : > { %v1161_v24 = vrot.slane %v1160_v10, 2  ;;  %v1147_v25 = vrot.slane %v1089_v8, 4 }
 0x2d4   : > { %v1235_v53 = vmul.f32 1.442695, %v1219_v11  ;;  %v1220_v33 = vsub.f32 %v1080_v26, %v1134_v13  ;;  %v1146_v37 = vmax.f32 %v1144_v3, %v1145_v19 }
 0x2d5   : > { %v1162_v12 = vmax.f32 %v1160_v10, %v1161_v24  ;;  %v1107_v43 = vpop.xlane.xlu1 %1106  ;;  %v1148_v27 = vmax.f32 %v1089_v8, %v1147_v25  ;;  %v1092_v28 = vpop.xlane.xlu0 %1091 }
 0x2d6   : > { %2145 = vpow2.f32 %v1235_v53  ;;  %v1237_v44 = vmul.f32 1.442695, %v1220_v33  ;;  %v1222_v61 = vsub.f32 %v1086_v40, %v1146_v37  ;;  %v1183_v38 = vrot.slane %v1107_v43, 4 }
 0x2d7   : > { %v1163_v39 = vrot.slane %v1162_v12, 1  ;;  %v1149_v45 = vrot.slane %v1148_v27, 2  ;;  %v1153_v47 = vrot.slane %v1092_v28, 4 }
 0x2d8   : > { %2147 = vpow2.f32 %v1237_v44  ;;  %v1241_v23 = vmul.f32 1.442695, %v1222_v61  ;;  %v1184_v48 = vmax.f32 %v1107_v43, %v1183_v38 }
 0x2d9   : > { %v1164_v50 = vmax.f32 %v1162_v12, %v1163_v39  ;;  %v1150_v55 = vmax.f32 %v1148_v27, %v1149_v45  ;;  %v2676_v62 = vpop.xlane.xlu1 %1109  ;;  %v1154_v26 = vmax.f32 %v1092_v28, %v1153_v47  ;;  %v2678_v52 = vpop.xlane.xlu0 %1100 }
 0x2da   : > { %2149 = vpow2.f32 %v1241_v23  ;;  %v1185_v63 = vrot.slane %v1184_v48, 2  ;;  %v1189_v49 = vrot.slane %v2676_v62, 4  ;;  %v1171_v40 = vrot.slane %v2678_v52, 4 }
 0x2db   : > { %v1225_v3 = vsub.f32 %v1095_v46, %v1164_v50  ;;  %v1151_v10 = vrot.slane %v1150_v55, 1  ;;  %v1155_v11 = vrot.slane %v1154_v26, 2 }
 0x2dc   : > { %v1186_v13 = vmax.f32 %v1184_v48, %v1185_v63  ;;  %v1190_v19 = vmax.f32 %v2676_v62, %v1189_v49  ;;  %v1172_v24 = vmax.f32 %v2678_v52, %v1171_v40 }
 0x2dd   : > { %v1247_v25 = vmul.f32 1.442695, %v1225_v3  ;;  %v1152_v53 = vmax.f32 %v1150_v55, %v1151_v10  ;;  %v1156_v33 = vmax.f32 %v1154_v26, %v1155_v11  ;;  %v2684_v37 = vpop.xlane.xlu1 %1103  ;;  %v2687_v38 = vpop.xlane.xlu0 %1097 }
 0x2de   : > { %v1187_v12 = vrot.slane %v1186_v13, 1  ;;  %v1191_v27 = vrot.slane %v1190_v19, 2  ;;  %v1177_v44 = vrot.slane %v2684_v37, 4  ;;  %v1173_v61 = vrot.slane %v1172_v24, 2 }
 0x2df   : > { %v2689_v46 = vpop.eup %2143  ;;  %2151 = vpow2.f32 %v1247_v25  ;;  %v1223_v39 = vsub.f32 %v1089_v8, %v1152_v53  ;;  %v1157_v45 = vrot.slane %v1156_v33, 1  ;;  %v1165_v40 = vrot.slane %v2687_v38, 4 }
 0x2e0   : > { %v1279_v47 = vrot.slane %v2689_v46, 4  ;;  %v1188_v23 = vmax.f32 %v1186_v13, %v1187_v12  ;;  %v1192_v48 = vmax.f32 %v1190_v19, %v1191_v27  ;;  %v1178_v50 = vmax.f32 %v2684_v37, %v1177_v44 }
 0x2e1   : > { %v1243_v55 = vmul.f32 1.442695, %v1223_v39  ;;  %v1158_v26 = vmax.f32 %v1156_v33, %v1157_v45  ;;  %v1174_v63 = vmax.f32 %v1172_v24, %v1173_v61  ;;  %v2693_v49 = vpop.xlane.xlu1 %1112 }
 0x2e2   : > { %v1280_v3 = vadd.f32 %v2689_v46, %v1279_v47  ;;  %v1229_v10 = vsub.f32 %v1107_v43, %v1188_v23  ;;  %v1193_v11 = vrot.slane %v1192_v48, 1  ;;  %v1179_v25 = vrot.slane %v1178_v50, 2 }
 0x2e3   : > { %v2697_v8 = vpop.eup %2145  ;;  %2153 = vpow2.f32 %v1243_v55  ;;  %v1224_v53 = vsub.f32 %v1092_v28, %v1158_v26  ;;  %v1175_v13 = vrot.slane %v1174_v63, 1  ;;  %v1195_v19 = vrot.slane %v2693_v49, 4 }
 0x2e4   : > { %v1281_v12 = vrot.slane %v1280_v3, 2  ;;  %v1267_v33 = vrot.slane %v2697_v8, 4  ;;  %v1255_v24 = vmul.f32 1.442695, %v1229_v10  ;;  %v1194_v27 = vmax.f32 %v1192_v48, %v1193_v11 }
 0x2e5   : > { %v2701_v44 = vpop.eup %2147  ;;  %v1245_v61 = vmul.f32 1.442695, %v1224_v53  ;;  %v1180_v39 = vmax.f32 %v1178_v50, %v1179_v25  ;;  %v1176_v45 = vmax.f32 %v1174_v63, %v1175_v13  ;;  %v1196_v43 = vmax.f32 %v2693_v49, %v1195_v19 }
 0x2e6   : > { %v1268_v47 = vadd.f32 %v2697_v8, %v1267_v33  ;;  %v1273_v23 = vrot.slane %v2701_v44, 4  ;;  %2155 = vpow2.f32 %v1255_v24  ;;  %v1166_v28 = vmax.f32 %v2687_v38, %v1165_v40  ;;  %v2714_v33 = vpop.xlane.xlu1 %1115 }
 0x2e7   : > { %v2707_v55 = vpop.eup %2149  ;;  %v1230_v26 = vsub.f32 %v2676_v62, %v1194_v27  ;;  %2157 = vpow2.f32 %v1245_v61  ;;  %v1181_v48 = vrot.slane %v1180_v39, 1  ;;  %v1227_v10 = vsub.f32 %v2678_v52, %v1176_v45  ;;  %v2720_v45 = vpop.xlane.xlu0 %1121 }
 0x2e8   : > { %v2711_v11 = vadd.f32 %v1281_v12, %v1280_v3  ;;  %v1269_v50 = vrot.slane %v1268_v47, 2  ;;  %v1274_v63 = vadd.f32 %v2701_v44, %v1273_v23  ;;  %v1197_v19 = vrot.slane %v1196_v43, 2 }
 0x2e9   : > { %v1257_v25 = vmul.f32 1.442695, %v1230_v26  ;;  %v1182_v53 = vmax.f32 %v1180_v39, %v1181_v48  ;;  %v1251_v13 = vmul.f32 1.442695, %v1227_v10  ;;  %v1285_v17 = vrot.slane %v2707_v55, 4 }
 0x2ea   : > { %v1270_v40 = vadd.f32 %v1269_v50, %v1268_v47  ;;  %v1275_v24 = vrot.slane %v1274_v63, 2  ;;  %v1198_v27 = vmax.f32 %v1196_v43, %v1197_v19  ;;  %v1167_v52 = vrot.slane %v1166_v28, 2 }
 0x2eb   : > { %2159 = vpow2.f32 %v1257_v25  ;;  %v1228_v62 = vsub.f32 %v2684_v37, %v1182_v53  ;;  %v1283_v39 = vrot.slane %v2711_v11, 1  ;;  %v1286_v50 = vadd.f32 %v2707_v55, %v1285_v17 }
 0x2ec   : > { %v2718_v3 = vpop.eup %2151  ;;  %v1271_v12 = vrot.slane %v1270_v40, 1  ;;  %v1276_v61 = vadd.f32 %v1275_v24, %v1274_v63  ;;  %2161 = vpow2.f32 %v1251_v13  ;;  %v1199_v26 = vrot.slane %v1198_v27, 1  ;;  %v2726_v63 = vpop.xlane.xlu1 %1118 }
 0x2ed   : > { %v1253_v23 = vmul.f32 1.442695, %v1228_v62  ;;  %v1168_v47 = vmax.f32 %v1166_v28, %v1167_v52  ;;  %v1201_v37 = vrot.slane %v2714_v33, 4  ;;  %v1213_v53 = vrot.slane %v2720_v45, 4 }
 0x2ee   : > { %v1272_v48 = vadd.f32 %v1271_v12, %v1270_v40  ;;  %v1277_v10 = vrot.slane %v1276_v61, 1  ;;  %v1200_v43 = vmax.f32 %v1198_v27, %v1199_v26  ;;  %v1303_v24 = vrot.slane %v2718_v3, 4 }
 0x2ef   : > { %2163 = vpow2.f32 %v1253_v23  ;;  %v1169_v25 = vrot.slane %v1168_v47, 1  ;;  %v1202_v28 = vmax.f32 %v2714_v33, %v1201_v37  ;;  %v1214_v27 = vmax.f32 %v2720_v45, %v1213_v53 }
 0x2f0   : > { %v2728_v13 = vpop.eup %2153  ;;  %2165 = vrcp.f32 %v1272_v48  ;;  %v1278_v19 = vadd.f32 %v1277_v10, %v1276_v61  ;;  %v1231_v17 = vsub.f32 %v2693_v49, %v1200_v43  ;;  %v1287_v52 = vrot.slane %v1286_v50, 2 }
 0x2f1   : > { %v1291_v40 = vrot.slane %v2728_v13, 4  ;;  %v1170_v62 = vmax.f32 %v1168_v47, %v1169_v25  ;;  %v1203_v12 = vrot.slane %v1202_v28, 2  ;;  %v1207_v23 = vrot.slane %v2726_v63, 4 }
 0x2f2   : > { %2167 = vrcp.f32 %v1278_v19  ;;  %v1259_v48 = vmul.f32 1.442695, %v1231_v17  ;;  %v1215_v37 = vrot.slane %v1214_v27, 2  ;;  %v1304_v25 = vadd.f32 %v2718_v3, %v1303_v24 }
 0x2f3   : > { %v2736_v26 = vpop.eup %2155  ;;  %v1292_v61 = vadd.f32 %v2728_v13, %v1291_v40  ;;  %v1226_v10 = vsub.f32 %v2687_v38, %v1170_v62  ;;  %v1204_v47 = vmax.f32 %v1202_v28, %v1203_v12  ;;  %v1208_v43 = vmax.f32 %v2726_v63, %v1207_v23 }
 0x2f4   : > { %v2740_v36 = vpop.eup %2157  ;;  %v1327_v49 = vrot.slane %v2736_v26, 4  ;;  %2169 = vpow2.f32 %v1259_v48  ;;  %v1288_v34 = vadd.f32 %v1287_v52, %v1286_v50  ;;  %v1216_v17 = vmax.f32 %v1214_v27, %v1215_v37 }
 0x2f5   : > { %v1293_v53 = vrot.slane %v1292_v61, 2  ;;  %v1297_v19 = vrot.slane %v2740_v36, 4  ;;  %v1249_v35 = vmul.f32 1.442695, %v1226_v10  ;;  %v1205_v40 = vrot.slane %v1204_v47, 1 }
 0x2f6   : > { %v1209_v42 = vrot.slane %v1208_v43, 2  ;;  %v1328_v38 = vadd.f32 %v2736_v26, %v1327_v49  ;;  %v1217_v12 = vrot.slane %v1216_v17, 1  ;;  %v1305_v24 = vrot.slane %v1304_v25, 2 }
 0x2f7   : > { %v1298_v62 = vadd.f32 %v2740_v36, %v1297_v19  ;;  %2171 = vpow2.f32 %v1249_v35  ;;  %v1206_v28 = vmax.f32 %v1204_v47, %v1205_v40  ;;  %v1284_v48 = vadd.f32 %v1283_v39, %v2711_v11 }
 0x2f8   : > { %v2748_v22 = vpop.eup %2159  ;;  %v1210_v23 = vmax.f32 %v1208_v43, %v1209_v42  ;;  %v1294_v10 = vadd.f32 %v1293_v53, %v1292_v61  ;;  %v1289_v52 = vrot.slane %v1288_v34, 1  ;;  %v1218_v35 = vmax.f32 %v1216_v17, %v1217_v12 }
 0x2f9   : > { %v2750_v41 = vpop.eup %2161  ;;  %v1333_v50 = vrot.slane %v2748_v22, 4  ;;  %v1299_v27 = vrot.slane %v1298_v62, 2  ;;  %v1232_v49 = vsub.f32 %v2714_v33, %v1206_v28  ;;  %v1329_v19 = vrot.slane %v1328_v38, 2 }
 0x2fa   : > { %v1315_v37 = vrot.slane %v2750_v41, 4  ;;  %v1211_v40 = vrot.slane %v1210_v23, 1  ;;  %v1234_v39 = vsub.f32 %v2720_v45, %v1218_v35  ;;  %v1306_v61 = vadd.f32 %v1305_v24, %v1304_v25 }
 0x2fb   : > { %v1334_v47 = vadd.f32 %v2748_v22, %v1333_v50  ;;  %v1300_v42 = vadd.f32 %v1299_v27, %v1298_v62  ;;  %v1261_v11 = vmul.f32 1.442695, %v1232_v49  ;;  %v1295_v33 = vrot.slane %v1294_v10, 1 }
 0x2fc   : > { %v2757_v43 = vpop.eup %2163  ;;  %v1316_v21 = vadd.f32 %v2750_v41, %v1315_v37  ;;  %v1212_v9 = vmax.f32 %v1210_v23, %v1211_v40  ;;  %v1265_v28 = vmul.f32 1.442695, %v1234_v39  ;;  %v1330_v62 = vadd.f32 %v1329_v19, %v1328_v38 }
 0x2fd   : > { %v2166_v53 = vpop.eup %2165  ;;  %v1335_v5 = vrot.slane %v1334_v47, 2  ;;  %v1321_v7 = vrot.slane %v2757_v43, 4  ;;  %2173 = vpow2.f32 %v1261_v11  ;;  %v1301_v12 = vrot.slane %v1300_v42, 1 }
 0x2fe   : > { %v1317_v17 = vrot.slane %v1316_v21, 2  ;;  %v1233_v37 = vsub.f32 %v2726_v63, %v1212_v9  ;;  %v1290_v49 = vadd.f32 %v1289_v52, %v1288_v34  ;;  %2175 = vpow2.f32 %v1265_v28 }
 0x2ff   : > { %v2168_v50 = vpop.eup %2167  ;;  %v1322_v27 = vadd.f32 %v2757_v43, %v1321_v7  ;;  %v1307_v45 = vrot.slane %v1306_v61, 1  ;;  %v1364_v25 = vmul.f32 %v2166_v53, %v2697_v8  ;;  %v1296_v23 = vadd.f32 %v1295_v33, %v1294_v10 }
 0x300   : > { %v1318_v6 = vadd.f32 %v1317_v17, %v1316_v21  ;;  %v1263_v35 = vmul.f32 1.442695, %v1233_v37  ;;  %v1366_v40 = vmul.f32 %v2168_v50, %v2701_v44  ;;  %v1336_v39 = vadd.f32 %v1335_v5, %v1334_v47 }
 0x301   : > { %v1323_v24 = vrot.slane %v1322_v27, 2  ;;  %v2766_v11 = vpop.eup %2169  ;;  %v1302_v57 = vadd.f32 %v1301_v12, %v1300_v42  ;;  %2177 = vrcp.f32 %v1284_v48  ;;  %v1395_v7 = vmul.f32 %v1364_v25, %v852_v58 }
 0x302   : > { %v1339_v21 = vrot.slane %v2766_v11, 4  ;;  %2179 = vpow2.f32 %v1263_v35  ;;  %v1396_v34 = vmul.f32 %v1366_v40, %v853_v59  ;;  %v1319_v63 = vrot.slane %v1318_v6, 1 }
 0x303   : > { %v1324_v9 = vadd.f32 %v1323_v24, %v1322_v27  ;;  %v1308_v38 = vadd.f32 %v1307_v45, %v1306_v61  ;;  %2181 = vrcp.f32 %v1290_v49  ;;  %v1411_v44 = vsel %vm650_vm4, %v1395_v7, 0.0 }
 0x304   : > { %v2773_v8 = vpop.eup %2171  ;;  %v1340_v48 = vadd.f32 %v2766_v11, %v1339_v21  ;;  %2183 = vrcp.f32 %v1296_v23  ;;  %v1331_v58 = vrot.slane %v1330_v62, 1  ;;  %v1412_v10 = vrot.slane %v1411_v44, 4 }
 0x305   : > { %v1325_v5 = vrot.slane %v1324_v9, 1  ;;  %v1309_v32 = vrot.slane %v2773_v8, 4  ;;  %v1418_v52 = vsel %vm650_vm4, %v1396_v34, 0.0  ;;  %v1337_v19 = vrot.slane %v1336_v39, 1 }
 0x306   : > { %v1341_v56 = vrot.slane %v1340_v48, 2  ;;  %2185 = vrcp.f32 %v1302_v57  ;;  %v1320_v47 = vadd.f32 %v1319_v63, %v1318_v6  ;;  %v1419_v42 = vrot.slane %v1418_v52, 4 }
 0x307   : > { %v1310_v59 = vadd.f32 %v2773_v8, %v1309_v32  ;;  %2187 = vrcp.f32 %v1308_v38  ;;  %v1326_v61 = vadd.f32 %v1325_v5, %v1324_v9  ;;  %v1332_v17 = vadd.f32 %v1331_v58, %v1330_v62 }
 0x308   : > { %v1342_v53 = vadd.f32 %v1341_v56, %v1340_v48  ;;  %v1413_v28 = vadd.f32 %v1412_v10, %v1411_v44  ;;  %v1338_v27 = vadd.f32 %v1337_v19, %v1336_v39  ;;  %2189 = vrcp.f32 %v1320_v47 }
 0x309   : > { %v1311_v33 = vrot.slane %v1310_v59, 2  ;;  %v1420_v45 = vadd.f32 %v1419_v42, %v1418_v52  ;;  %2191 = vrcp.f32 %v1326_v61  ;;  %v3122_v19 = vmax.f32 %v2532_v31, 0.0 }
 0x30a   : > { %v2780_v12 = vpop.eup %2173  ;;  %v1343_v37 = vrot.slane %v1342_v53, 1  ;;  %v1414_v35 = vrot.slane %v1413_v28, 2  ;;  %2193 = vrcp.f32 %v1332_v17  ;;  %v3124_v31 = vmax.f32 %v2558_v4, 0.0 }
 0x30b   : > { %v1312_v50 = vadd.f32 %v1311_v33, %v1310_v59  ;;  %v1345_v49 = vrot.slane %v2780_v12, 4  ;;  %v2783_v25 = vpop.eup %2175  ;;  %2195 = vrcp.f32 %v1338_v27  ;;  %v1421_v9 = vrot.slane %v1420_v45, 2 }
 0x30c   : > { %v1344_v6 = vadd.f32 %v1343_v37, %v1342_v53  ;;  %v1357_v62 = vrot.slane %v2783_v25, 4  ;;  %v1415_v32 = vadd.f32 %v1414_v35, %v1413_v28 }
 0x30d   : > { %v1313_v57 = vrot.slane %v1312_v50, 1  ;;  %v1346_v24 = vadd.f32 %v2780_v12, %v1345_v49  ;;  %v1422_v59 = vadd.f32 %v1421_v9, %v1420_v45 }
 0x30e   : > { %v2178_v23 = vpop.eup %2177  ;;  %2197 = vrcp.f32 %v1344_v6  ;;  %v1358_v38 = vadd.f32 %v2783_v25, %v1357_v62  ;;  %v1416_v17 = vrot.slane %v1415_v32, 1 }
 0x30f   : > { %v1314_v40 = vadd.f32 %v1313_v57, %v1312_v50  ;;  %v2787_v39 = vpop.eup %2179  ;;  %v1368_v7 = vmul.f32 %v2178_v23, %v2689_v46  ;;  %v1347_v21 = vrot.slane %v1346_v24, 2 }
 0x310   : > { %v2182_v34 = vpop.eup %2181  ;;  %v1351_v63 = vrot.slane %v2787_v39, 4  ;;  %v1359_v10 = vrot.slane %v1358_v38, 2 }
 0x311   : > { %2199 = vrcp.f32 %v1314_v40  ;;  %v2184_v44 = vpop.eup %2183  ;;  %v1370_v5 = vmul.f32 %v2182_v34, %v2707_v55  ;;  %v1397_v48 = vmul.f32 %v1368_v7, %v854_v60  ;;  %v1348_v42 = vadd.f32 %v1347_v21, %v1346_v24 }
 0x312   : > { %v1372_v58 = vmul.f32 %v2184_v44, %v2728_v13  ;;  %v1352_v46 = vadd.f32 %v2787_v39, %v1351_v63  ;;  %v1360_v50 = vadd.f32 %v1359_v10, %v1358_v38 }
 0x313   : > { %v2186_v52 = vpop.eup %2185  ;;  %v1398_v56 = vmul.f32 %v1370_v5, %v3122_v19  ;;  %v1425_v47 = vsel %vm650_vm4, %v1397_v48, 0.0  ;;  %v1349_v6 = vrot.slane %v1348_v42, 1 }
 0x314   : > { %v2188_v61 = vpop.eup %2187  ;;  %v1374_v55 = vmul.f32 %v2186_v52, %v2740_v36  ;;  %v1399_v60 = vmul.f32 %v1372_v58, %v3123_v54  ;;  %v1426_v53 = vrot.slane %v1425_v47, 4  ;;  %v1353_v33 = vrot.slane %v1352_v46, 2 }
 0x315   : > { %v1376_v13 = vmul.f32 %v2188_v61, %v2718_v3  ;;  %v1432_v28 = vsel %vm650_vm4, %v1398_v56, 0.0  ;;  %v3125_v36 = vmax.f32 %v2556_v2, 0.0  ;;  %v2190_v35 = vpop.eup %2189  ;;  %v1423_v3 = vrot.slane %v1422_v59, 1 }
 0x316   : > { %v1400_v27 = vmul.f32 %v1374_v55, %v3124_v31  ;;  %v1427_v37 = vadd.f32 %v1426_v53, %v1425_v47  ;;  %v1433_v49 = vrot.slane %v1432_v28, 4  ;;  %v1439_v45 = vsel %vm650_vm4, %v1399_v60, 0.0  ;;  %v2192_v7 = vpop.eup %2191 }
 0x317   : > { %v1401_v0 = vmul.f32 %v1376_v13, %v3125_v36  ;;  %v1440_v57 = vrot.slane %v1439_v45, 4  ;;  %v1354_v24 = vadd.f32 %v1353_v33, %v1352_v46  ;;  %v2194_v63 = vpop.eup %2193  ;;  %v1361_v5 = vrot.slane %v1360_v50, 1 }
 0x318   : > { %v1428_v62 = vrot.slane %v1427_v37, 2  ;;  %v1434_v23 = vadd.f32 %v1433_v49, %v1432_v28  ;;  %v1446_v40 = vsel %vm650_vm4, %v1400_v27, 0.0  ;;  %v2196_v48 = vpop.eup %2195  ;;  %v2812_v58 = vadd.f32 %v1416_v17, %v1415_v32 }
 0x319   : > { %v1441_v4 = vadd.f32 %v1440_v57, %v1439_v45  ;;  %v1447_v9 = vrot.slane %v1446_v40, 4  ;;  %v1453_v21 = vsel %vm650_vm4, %v1401_v0, 0.0  ;;  %v1355_v34 = vrot.slane %v1354_v24, 1 }
 0x31a   : > { %v1429_v38 = vadd.f32 %v1428_v62, %v1427_v37  ;;  %v1435_v2 = vrot.slane %v1434_v23, 2  ;;  %v1454_v44 = vrot.slane %v1453_v21, 4  ;;  %v1350_v52 = vadd.f32 %v1349_v6, %v1348_v42 }
 0x31b   : > { %v1442_v46 = vrot.slane %v1441_v4, 2  ;;  %v1448_v10 = vadd.f32 %v1447_v9, %v1446_v40  ;;  %v2198_v19 = vpop.eup %2197  ;;  %v2814_v56 = vadd.f32 %v1423_v3, %v1422_v59  ;;  %v1380_v55 = vmul.f32 %v2190_v35, %v2750_v41 }
 0x31c   : > { %v1436_v47 = vadd.f32 %v1435_v2, %v1434_v23  ;;  %v1455_v61 = vadd.f32 %v1454_v44, %v1453_v21  ;;  %v1356_v33 = vadd.f32 %v1355_v34, %v1354_v24  ;;  %v1382_v13 = vmul.f32 %v2192_v7, %v2757_v43 }
 0x31d   : > { %v1443_v60 = vadd.f32 %v1442_v46, %v1441_v4  ;;  %v1449_v53 = vrot.slane %v1448_v10, 2  ;;  %v1430_v17 = vrot.slane %v1429_v38, 1  ;;  %v1362_v28 = vadd.f32 %v1361_v5, %v1360_v50 }
 0x31e   : > { %v2200_v54 = vpop.eup %2199  ;;  %v1384_v42 = vmul.f32 %v2194_v63, %v2736_v26  ;;  %v1437_v31 = vrot.slane %v1436_v47, 1  ;;  %v1456_v27 = vrot.slane %v1455_v61, 2  ;;  %2201 = vrcp.f32 %v1350_v52 }
 0x31f   : > { %v1378_v32 = vmul.f32 %v2200_v54, %v2773_v8  ;;  %v1450_v59 = vadd.f32 %v1449_v53, %v1448_v10  ;;  %v3126_v41 = vmax.f32 %v2554_v1, 0.0  ;;  %v1386_v49 = vmul.f32 %v2196_v48, %v2748_v22 }
 0x320   : > { %v1388_v45 = vmul.f32 %v2198_v19, %v2766_v11  ;;  %v3127_v43 = vmax.f32 %v2572_v14, 0.0  ;;  %v1444_v36 = vrot.slane %v1443_v60, 1  ;;  %v1542_v26 = vsel %vm1541_vm6, %v2814_v56, %v2812_v58 }
 0x321   : > { %v1402_v37 = vmul.f32 %v1378_v32, %v3126_v41  ;;  %2203 = vrcp.f32 %v1356_v33  ;;  %v3128_v50 = vmax.f32 %v2580_v20, 0.0  ;;  %v2831_v57 = vadd.f32 %v1430_v17, %v1429_v38 }
 0x322   : > { %v1403_v8 = vmul.f32 %v1380_v55, %v3127_v43  ;;  %v1451_v1 = vrot.slane %v1450_v59, 1  ;;  %2205 = vrcp.f32 %v1362_v28  ;;  %v2834_v22 = vadd.f32 %v1437_v31, %v1436_v47 }
 0x323   : > { %v1404_v0 = vmul.f32 %v1382_v13, %v3128_v50  ;;  %v1460_v6 = vsel %vm650_vm4, %v1402_v37, 0.0  ;;  %v1457_v11 = vadd.f32 %v1456_v27, %v1455_v61  ;;  %v3129_v24 = vmax.f32 %v2577_v18, 0.0 }
 0x324   : > { %v1461_v14 = vrot.slane %v1460_v6, 4  ;;  %v1544_v3 = vsel %vm1543_vm7, %v2831_v57, %v1542_v26  ;;  %v3130_v20 = vmax.f32 %v2574_v15, 0.0  ;;  %v3131_v23 = vmax.f32 %v2596_v51, 0.0 }
 0x325   : > { %v1405_v35 = vmul.f32 %v1384_v42, %v3129_v24  ;;  %v1467_v7 = vsel %vm650_vm4, %v1403_v8, 0.0  ;;  %v2845_v4 = vadd.f32 %v1444_v36, %v1443_v60  ;;  %v1474_v34 = vsel %vm650_vm4, %v1404_v0, 0.0 }
 0x326   : > { %v1406_v62 = vmul.f32 %v1386_v49, %v3130_v20  ;;  %v1407_v40 = vmul.f32 %v1388_v45, %v3131_v23  ;;  %v1462_v9 = vadd.f32 %v1461_v14, %v1460_v6  ;;  %v1468_v21 = vrot.slane %v1467_v7, 4 }
 0x327   : > { %v2848_v63 = vadd.f32 %v1451_v1, %v1450_v59  ;;  %v1475_v18 = vrot.slane %v1474_v34, 4  ;;  %v1481_v38 = vsel %vm650_vm4, %v1405_v35, 0.0  ;;  %v1458_v48 = vrot.slane %v1457_v11, 1 }
 0x328   : > { %v1488_v2 = vsel %vm650_vm4, %v1406_v62, 0.0  ;;  %v1463_v15 = vrot.slane %v1462_v9, 2  ;;  %v1469_v44 = vadd.f32 %v1468_v21, %v1467_v7  ;;  %v1482_v5 = vrot.slane %v1481_v38, 4 }
 0x329   : > { %v1489_v51 = vrot.slane %v1488_v2, 4  ;;  %v1546_v46 = vsel %vm1545_vm8, %v2834_v22, %v1544_v3  ;;  %v1476_v10 = vadd.f32 %v1475_v18, %v1474_v34  ;;  %v1495_v52 = vsel %vm650_vm4, %v1407_v40, 0.0 }
 0x32a   : > { %v1464_v19 = vadd.f32 %v1463_v15, %v1462_v9  ;;  %v1470_v47 = vrot.slane %v1469_v44, 2  ;;  %v1483_v61 = vadd.f32 %v1482_v5, %v1481_v38  ;;  %v1548_v54 = vsel %vm1547_vm9, %v2845_v4, %v1546_v46 }
 0x32b   : > { %v1490_v55 = vadd.f32 %v1489_v51, %v1488_v2  ;;  %v1477_v60 = vrot.slane %v1476_v10, 2  ;;  %v1496_v53 = vrot.slane %v1495_v52, 4  ;;  %v1550_v13 = vsel %vm1549_vm10, %v2848_v63, %v1548_v54  ;;  %v2202_v28 = vpop.eup %2201 }
 0x32c   : > { %v1465_v33 = vrot.slane %v1464_v19, 1  ;;  %v1471_v32 = vadd.f32 %v1470_v47, %v1469_v44  ;;  %v1484_v17 = vrot.slane %v1483_v61, 2  ;;  %v2859_v42 = vadd.f32 %v1458_v48, %v1457_v11 }
 0x32d   : > { %v1478_v31 = vadd.f32 %v1477_v60, %v1476_v10  ;;  %v1491_v59 = vrot.slane %v1490_v55, 2  ;;  %v1497_v27 = vadd.f32 %v1496_v53, %v1495_v52  ;;  %v1390_v37 = vmul.f32 %v2202_v28, %v2780_v12 }
 0x32e   : > { %v2861_v41 = vadd.f32 %v1465_v33, %v1464_v19  ;;  %v1472_v49 = vrot.slane %v1471_v32, 1  ;;  %v2204_v45 = vpop.eup %2203  ;;  %v1552_v43 = vsel %vm1551_vm11, %v2859_v42, %v1550_v13  ;;  %v1485_v36 = vadd.f32 %v1484_v17, %v1483_v61 }
 0x32f   : > { %v1479_v8 = vrot.slane %v1478_v31, 1  ;;  %v1498_v26 = vrot.slane %v1497_v27, 2  ;;  %v2206_v50 = vpop.eup %2205  ;;  %v1392_v1 = vmul.f32 %v2204_v45, %v2787_v39  ;;  %v3132_v6 = vmax.f32 %v2602_v16, 0.0 }
 0x330   : > { %v1554_v0 = vsel %vm1553_vm12, %v2861_v41, %v1552_v43  ;;  %v1394_v12 = vmul.f32 %v2206_v50, %v2783_v25  ;;  %v1492_v24 = vadd.f32 %v1491_v59, %v1490_v55  ;;  %v3133_v35 = vmax.f32 %v2600_v30, 0.0 }
 0x331   : > { %v1408_v11 = vmul.f32 %v1390_v37, %v3132_v6  ;;  %v1564_v14 = vsel %vm650_vm4, %v1554_v0, 0.0  ;;  %v2875_v20 = vadd.f32 %v1472_v49, %v1471_v32  ;;  %v2877_v62 = vadd.f32 %v1479_v8, %v1478_v31 }
 0x332   : > { %1565 = vadd.xlane.f32.xlu1 %v1564_v14  ;;  %v1409_v3 = vmul.f32 %v1392_v1, %v3133_v35  ;;  %v3134_v39 = vmax.f32 %v2598_v29, 0.0  ;;  %v1486_v16 = vrot.slane %v1485_v36, 1  ;;  %v1499_v7 = vadd.f32 %v1498_v26, %v1497_v27 }
 0x333   : > { %v1502_v23 = vsel %vm650_vm4, %v1408_v11, 0.0  ;;  %v1493_v30 = vrot.slane %v1492_v24, 1  ;;  %v1555_v2 = vsel %vm1541_vm6, %v2877_v62, %v2875_v20 }
 0x334   : > { %v1410_v40 = vmul.f32 %v1394_v12, %v3134_v39  ;;  %v1503_v9 = vrot.slane %v1502_v23, 4  ;;  %v1509_v21 = vsel %vm650_vm4, %v1409_v3, 0.0  ;;  %v2887_v15 = vadd.f32 %v1486_v16, %v1485_v36 }
 0x335   : > { %v1510_v34 = vrot.slane %v1509_v21, 4  ;;  %v1500_v44 = vrot.slane %v1499_v7, 1  ;;  %v2891_v52 = vadd.f32 %v1493_v30, %v1492_v24 }
 0x336   : > { %v1504_v25 = vadd.f32 %v1503_v9, %v1502_v23  ;;  %v1516_v18 = vsel %vm650_vm4, %v1410_v40, 0.0  ;;  %v1556_v10 = vsel %vm1543_vm7, %v2887_v15, %v1555_v2 }
 0x337   : > { %v1517_v38 = vrot.slane %v1516_v18, 4  ;;  %v1511_v5 = vadd.f32 %v1510_v34, %v1509_v21  ;;  %v2893_v47 = vadd.f32 %v1500_v44, %v1499_v7  ;;  %v1557_v60 = vsel %vm1545_vm8, %v2891_v52, %v1556_v10 }
 0x338   : > { %v1505_v29 = vrot.slane %v1504_v25, 2 }
 0x339   : > { %v1518_v51 = vadd.f32 %v1517_v38, %v1516_v18  ;;  %v1512_v46 = vrot.slane %v1511_v5, 2  ;;  %v1558_v17 = vsel %vm1547_vm9, %v2893_v47, %v1557_v60 }
 0x33a   : > { %v1506_v48 = vadd.f32 %v1505_v29, %v1504_v25 }
 0x33b   : > { %v1519_v19 = vrot.slane %v1518_v51, 2  ;;  %v1513_v55 = vadd.f32 %v1512_v46, %v1511_v5 }
 0x33c   : > { %v1507_v61 = vrot.slane %v1506_v48, 1 }
 0x33d   : > { %v1520_v54 = vadd.f32 %v1519_v19, %v1518_v51  ;;  %v1514_v33 = vrot.slane %v1513_v55, 1 }
 0x33e   : > { %v2897_v53 = vadd.f32 %v1507_v61, %v1506_v48 }
 0x33f   : > { %v1521_v13 = vrot.slane %v1520_v54, 1  ;;  %v2899_v32 = vadd.f32 %v1514_v33, %v1513_v55 }
 0x340   : > { %v1559_v31 = vsel %vm1549_vm10, %v2897_v53, %v1558_v17 }
 0x341   : > { %v2903_v28 = vadd.f32 %v1521_v13, %v1520_v54  ;;  %v1560_v59 = vsel %vm1551_vm11, %v2899_v32, %v1559_v31 }
 0x343   : > { %v1561_v27 = vsel %vm1553_vm12, %v2903_v28, %v1560_v59 }
 0x344   : > { %v1567_v37 = vsel %vm650_vm4, %v1561_v27, 0.0 }
 0x345   : > { %1568 = vadd.xlane.f32.xlu0 %v1567_v37 }
 0x3bb   : > { %v1566_v49 = vpop.xlane.xlu1 %1565 }
 0x3bc   : > { %v1571_v45 = vmul.f32 0.015625, %v1566_v49 }
 0x3be   : > { %v1575_v43 = vrot.slane %v1571_v45, 1  ;;  %v1576_v8 = vrot.slane %v1571_v45, 2  ;;  %v1577_v36 = vrot.slane %v1571_v45, 3  ;;  %v1578_v26 = vrot.slane %v1571_v45, 4 }
 0x3bf   : > { %v1579_v50 = vrot.slane %v1571_v45, 5  ;;  %v1580_v0 = vrot.slane %v1571_v45, 6  ;;  %v1581_v1 = vrot.slane %v1571_v45, 7  ;;  %v2913_v6 = vsub.f32 %v2812_v58, %v1571_v45 }
 0x3c0   : > { %v2916_v11 = vsub.f32 %v2814_v56, %v1575_v43  ;;  %v2919_v14 = vsub.f32 %v2831_v57, %v1576_v8  ;;  %v2922_v12 = vsub.f32 %v2834_v22, %v1577_v36  ;;  %v2925_v24 = vsub.f32 %v2845_v4, %v1578_v26 }
 0x3c1   : > { %v2928_v35 = vsub.f32 %v2848_v63, %v1579_v50  ;;  %v2931_v3 = vsub.f32 %v2859_v42, %v1580_v0  ;;  %v2934_v58 = vsub.f32 %v2861_v41, %v1581_v1  ;;  %v1621_v63 = vmul.f32 %v2913_v6, %v2913_v6 }
 0x3c2   : > { %v1622_v56 = vmul.f32 %v2916_v11, %v2916_v11  ;;  %v1623_v57 = vmul.f32 %v2919_v14, %v2919_v14  ;;  %v1624_v22 = vmul.f32 %v2922_v12, %v2922_v12  ;;  %v1625_v4 = vmul.f32 %v2925_v24, %v2925_v24 }
 0x3c3   : > { %v1626_v42 = vmul.f32 %v2928_v35, %v2928_v35  ;;  %v1627_v39 = vmul.f32 %v2931_v3, %v2931_v3  ;;  %v1628_v40 = vmul.f32 %v2934_v58, %v2934_v58 }
 0x3c4   : > { %v1653_v41 = vrot.slane %v1622_v56, 7  ;;  %v1655_v23 = vrot.slane %v1623_v57, 6  ;;  %v1657_v7 = vrot.slane %v1624_v22, 5  ;;  %v1659_v21 = vrot.slane %v1625_v4, 4 }
 0x3c5   : > { %v1661_v34 = vrot.slane %v1626_v42, 3  ;;  %v1663_v30 = vrot.slane %v1627_v39, 2  ;;  %v1665_v2 = vrot.slane %v1628_v40, 1 }
 0x3c6   : > { %v1654_v16 = vsel %vm1541_vm6, %v1653_v41, %v1621_v63 }
 0x3c7   : > { %v1656_v9 = vsel %vm1543_vm7, %v1655_v23, %v1654_v16 }
 0x3c8   : > { %v1658_v25 = vsel %vm1545_vm8, %v1657_v7, %v1656_v9  ;;  %v3015_v7 = vld [vmem:[%s3106_s6] ss:$0 sm:$0xff] }
 0x3c9   : > { %v1660_v18 = vsel %vm1547_vm9, %v1659_v21, %v1658_v25 }
 0x3ca   : > { %v1662_v38 = vsel %vm1549_vm10, %v1661_v34, %v1660_v18 }
 0x3cb   : > { %v1664_v44 = vsel %vm1551_vm11, %v1663_v30, %v1662_v38 }
 0x3cc   : > { %v1666_v29 = vsel %vm1553_vm12, %v1665_v2, %v1664_v44 }
 0x3cd   : > { %v1683_v51 = vsel %vm650_vm4, %v1666_v29, 0.0 }
 0x3ce   : > { %v1569_v5 = vpop.xlane.xlu0 %1568  ;;  %1684 = vadd.xlane.f32.xlu1 %v1683_v51 }
 0x3cf   : > { %v1572_v48 = vmul.f32 0.015625, %v1569_v5 }
 0x3d1   : > { %v1582_v46 = vrot.slane %v1572_v48, 1  ;;  %v1583_v10 = vrot.slane %v1572_v48, 2  ;;  %v1584_v19 = vrot.slane %v1572_v48, 3  ;;  %v1585_v61 = vrot.slane %v1572_v48, 4 }
 0x3d2   : > { %v1586_v55 = vrot.slane %v1572_v48, 5  ;;  %v1587_v54 = vrot.slane %v1572_v48, 6  ;;  %v1588_v60 = vrot.slane %v1572_v48, 7  ;;  %v2961_v33 = vsub.f32 %v2875_v20, %v1572_v48 }
 0x3d3   : > { %v2964_v13 = vsub.f32 %v2877_v62, %v1582_v46  ;;  %v2967_v17 = vsub.f32 %v2887_v15, %v1583_v10  ;;  %v2970_v31 = vsub.f32 %v2891_v52, %v1584_v19  ;;  %v2973_v59 = vsub.f32 %v2893_v47, %v1585_v61 }
 0x3d4   : > { %v2976_v27 = vsub.f32 %v2897_v53, %v1586_v55  ;;  %v2979_v37 = vsub.f32 %v2899_v32, %v1587_v54  ;;  %v2982_v20 = vsub.f32 %v2903_v28, %v1588_v60  ;;  %v1629_v53 = vmul.f32 %v2961_v33, %v2961_v33 }
 0x3d5   : > { %v1630_v62 = vmul.f32 %v2964_v13, %v2964_v13  ;;  %v1631_v15 = vmul.f32 %v2967_v17, %v2967_v17  ;;  %v1632_v52 = vmul.f32 %v2970_v31, %v2970_v31  ;;  %v1633_v47 = vmul.f32 %v2973_v59, %v2973_v59 }
 0x3d6   : > { %v1634_v32 = vmul.f32 %v2976_v27, %v2976_v27  ;;  %v1635_v45 = vmul.f32 %v2979_v37, %v2979_v37  ;;  %v1636_v43 = vmul.f32 %v2982_v20, %v2982_v20 }
 0x3d7   : > { %v1667_v28 = vrot.slane %v1630_v62, 7  ;;  %v1669_v49 = vrot.slane %v1631_v15, 6  ;;  %v1671_v36 = vrot.slane %v1632_v52, 5  ;;  %v1673_v50 = vrot.slane %v1633_v47, 4 }
 0x3d8   : > { %v1675_v1 = vrot.slane %v1634_v32, 3  ;;  %v1677_v57 = vrot.slane %v1635_v45, 2  ;;  %v1679_v4 = vrot.slane %v1636_v43, 1 }
 0x3d9   : > { %v1668_v8 = vsel %vm1541_vm6, %v1667_v28, %v1629_v53 }
 0x3da   : > { %v1670_v26 = vsel %vm1543_vm7, %v1669_v49, %v1668_v8 }
 0x3db   : > { %v1672_v0 = vsel %vm1545_vm8, %v1671_v36, %v1670_v26 }
 0x3dc   : > { %v1674_v56 = vsel %vm1547_vm9, %v1673_v50, %v1672_v0 }
 0x3dd   : > { %v1676_v22 = vsel %vm1549_vm10, %v1675_v1, %v1674_v56 }
 0x3de   : > { %v1678_v63 = vsel %vm1551_vm11, %v1677_v57, %v1676_v22 }
 0x3df   : > { %v1680_v42 = vsel %vm1553_vm12, %v1679_v4, %v1678_v63 }
 0x3e0   : > { %v1686_v41 = vsel %vm650_vm4, %v1680_v42, 0.0 }
 0x3e1   : > { %1687 = vadd.xlane.f32.xlu0 %v1686_v41 }
 0x457   : > { %v1685_v23 = vpop.xlane.xlu1 %1684 }
 0x458   : > { %v1689_v39 = vmul.f32 0.015625, %v1685_v23 }
 0x45a   : > { %v1691_v40 = vadd.f32 1e-05, %v1689_v39 }
 0x45c   : > { %2207 = vrsqrt.f32 %v1691_v40 }
 0x469   : > { %v2208_v16 = vpop.eup %2207 }
 0x46a   : > { %v1697_v9 = vrot.slane %v2208_v16, 1  ;;  %v1698_v21 = vrot.slane %v2208_v16, 2  ;;  %v1699_v25 = vrot.slane %v2208_v16, 3  ;;  %v1700_v34 = vrot.slane %v2208_v16, 4 }
 0x46b   : > { %v1701_v18 = vrot.slane %v2208_v16, 5  ;;  %v1702_v30 = vrot.slane %v2208_v16, 6  ;;  %v1703_v38 = vrot.slane %v2208_v16, 7  ;;  %v1727_v2 = vmul.f32 %v2208_v16, %v2913_v6 }
 0x46c   : > { %v1728_v44 = vmul.f32 %v1697_v9, %v2916_v11  ;;  %v1729_v29 = vmul.f32 %v1698_v21, %v2919_v14  ;;  %v1730_v5 = vmul.f32 %v1699_v25, %v2922_v12  ;;  %v1731_v51 = vmul.f32 %v1700_v34, %v2925_v24  ;;  %v1688_v24 = vpop.xlane.xlu0 %1687 }
 0x46d   : > { %v1732_v48 = vmul.f32 %v1701_v18, %v2928_v35  ;;  %v1733_v46 = vmul.f32 %v1702_v30, %v2931_v3  ;;  %v1734_v10 = vmul.f32 %v1703_v38, %v2934_v58  ;;  %v1749_v19 = vmul.f32 %v3015_v7, %v1727_v2  ;;  %v3034_v35 = vld [vmem:[%s3107_s7] ss:$0 sm:$0xff] }
 0x46e   : > { %v1750_v6 = vmul.f32 %v3015_v7, %v1728_v44  ;;  %v1751_v11 = vmul.f32 %v3015_v7, %v1729_v29  ;;  %v1752_v14 = vmul.f32 %v3015_v7, %v1730_v5  ;;  %v1753_v12 = vmul.f32 %v3015_v7, %v1731_v51 }
 0x46f   : > { %v1754_v3 = vmul.f32 %v3015_v7, %v1732_v48  ;;  %v1755_v58 = vmul.f32 %v3015_v7, %v1733_v46  ;;  %v1756_v61 = vmul.f32 %v3015_v7, %v1734_v10  ;;  %v1690_v15 = vmul.f32 0.015625, %v1688_v24 }
 0x470   : > { %v1772_v55 = vadd.f32 %v3034_v35, %v1750_v6  ;;  %v1773_v54 = vadd.f32 %v3034_v35, %v1751_v11  ;;  %v1774_v60 = vadd.f32 %v3034_v35, %v1752_v14  ;;  %v1775_v62 = vadd.f32 %v3034_v35, %v1753_v12 }
 0x471   : > { %v1771_v52 = vadd.f32 %v3034_v35, %v1749_v19  ;;  %v1776_v47 = vadd.f32 %v3034_v35, %v1754_v3  ;;  %v1777_v28 = vadd.f32 %v3034_v35, %v1755_v58  ;;  %v1692_v49 = vadd.f32 1e-05, %v1690_v15 }
 0x472   : > { %v1803_v53 = vrot.slane %v1772_v55, 7  ;;  %v1805_v32 = vrot.slane %v1773_v54, 6  ;;  %v1778_v45 = vadd.f32 %v3034_v35, %v1756_v61  ;;  %v1807_v8 = vrot.slane %v1774_v60, 5 }
 0x473   : > { %v1809_v26 = vrot.slane %v1775_v62, 4  ;;  %2209 = vrsqrt.f32 %v1692_v49  ;;  %v1811_v0 = vrot.slane %v1776_v47, 3  ;;  %v1813_v56 = vrot.slane %v1777_v28, 2 }
 0x474   : > { %v1804_v43 = vsel %vm1541_vm6, %v1803_v53, %v1771_v52  ;;  %v1815_v22 = vrot.slane %v1778_v45, 1 }
 0x475   : > { %v1806_v36 = vsel %vm1543_vm7, %v1805_v32, %v1804_v43 }
 0x476   : > { %v1808_v50 = vsel %vm1545_vm8, %v1807_v8, %v1806_v36 }
 0x477   : > { %v1810_v1 = vsel %vm1547_vm9, %v1809_v26, %v1808_v50 }
 0x478   : > { %v1812_v57 = vsel %vm1549_vm10, %v1811_v0, %v1810_v1 }
 0x479   : > { %v1814_v4 = vsel %vm1551_vm11, %v1813_v56, %v1812_v57 }
 0x47a   : > { %v1816_v63 = vsel %vm1553_vm12, %v1815_v22, %v1814_v4 }
 0x47b   : > { %1833 = vst.msk [vmem:[%s3057_s29] sm:$0xff] %vm650_vm4, %v1816_v63 }
 0x480   : > { %v2210_v42 = vpop.eup %2209 }
 0x481   : > { %v1704_v41 = vrot.slane %v2210_v42, 1  ;;  %v1705_v23 = vrot.slane %v2210_v42, 2  ;;  %v1706_v39 = vrot.slane %v2210_v42, 3  ;;  %v1707_v40 = vrot.slane %v2210_v42, 4 }
 0x482   : > { %v1708_v16 = vrot.slane %v2210_v42, 5  ;;  %v1709_v9 = vrot.slane %v2210_v42, 6  ;;  %v1710_v21 = vrot.slane %v2210_v42, 7  ;;  %v1735_v25 = vmul.f32 %v2210_v42, %v2961_v33 }
 0x483   : > { %v1736_v34 = vmul.f32 %v1704_v41, %v2964_v13  ;;  %v1737_v18 = vmul.f32 %v1705_v23, %v2967_v17  ;;  %v1738_v30 = vmul.f32 %v1706_v39, %v2970_v31  ;;  %v1739_v38 = vmul.f32 %v1707_v40, %v2973_v59 }
 0x484   : > { %v1740_v2 = vmul.f32 %v1708_v16, %v2976_v27  ;;  %v1741_v44 = vmul.f32 %v1709_v9, %v2979_v37  ;;  %v1742_v29 = vmul.f32 %v1710_v21, %v2982_v20  ;;  %v1757_v5 = vmul.f32 %v3015_v7, %v1735_v25 }
 0x485   : > { %v1758_v51 = vmul.f32 %v3015_v7, %v1736_v34  ;;  %v1759_v33 = vmul.f32 %v3015_v7, %v1737_v18  ;;  %v1760_v13 = vmul.f32 %v3015_v7, %v1738_v30  ;;  %v1761_v17 = vmul.f32 %v3015_v7, %v1739_v38 }
 0x486   : > { %v1762_v31 = vmul.f32 %v3015_v7, %v1740_v2  ;;  %v1763_v59 = vmul.f32 %v3015_v7, %v1741_v44  ;;  %v1764_v27 = vmul.f32 %v3015_v7, %v1742_v29  ;;  %v1779_v10 = vadd.f32 %v3034_v35, %v1757_v5 }
 0x487   : > { %v1780_v37 = vadd.f32 %v3034_v35, %v1758_v51  ;;  %v1781_v20 = vadd.f32 %v3034_v35, %v1759_v33  ;;  %v1782_v48 = vadd.f32 %v3034_v35, %v1760_v13  ;;  %v1783_v46 = vadd.f32 %v3034_v35, %v1761_v17 }
 0x488   : > { %v1784_v19 = vadd.f32 %v3034_v35, %v1762_v31  ;;  %v1785_v14 = vadd.f32 %v3034_v35, %v1763_v59  ;;  %v1786_v12 = vadd.f32 %v3034_v35, %v1764_v27 }
 0x489   : > { %v1817_v6 = vrot.slane %v1780_v37, 7  ;;  %v1819_v11 = vrot.slane %v1781_v20, 6  ;;  %v1821_v24 = vrot.slane %v1782_v48, 5  ;;  %v1823_v58 = vrot.slane %v1783_v46, 4 }
 0x48a   : > { %v1825_v55 = vrot.slane %v1784_v19, 3  ;;  %v1827_v60 = vrot.slane %v1785_v14, 2  ;;  %v1829_v15 = vrot.slane %v1786_v12, 1 }
 0x48b   : > { %v1818_v7 = vsel %vm1541_vm6, %v1817_v6, %v1779_v10 }
 0x48c   : > { %v1820_v3 = vsel %vm1543_vm7, %v1819_v11, %v1818_v7 }
 0x48d   : > { %v1822_v61 = vsel %vm1545_vm8, %v1821_v24, %v1820_v3 }
 0x48e   : > { %v1824_v54 = vsel %vm1547_vm9, %v1823_v58, %v1822_v61 }
 0x48f   : > { %v1826_v62 = vsel %vm1549_vm10, %v1825_v55, %v1824_v54 }
 0x490   : > { %v1828_v52 = vsel %vm1551_vm11, %v1827_v60, %v1826_v62 }
 0x491   : > { %v1830_v47 = vsel %vm1553_vm12, %v1829_v15, %v1828_v52 }
 0x492   : > { %1834 = vst.msk [vmem:[%s3057_s29 + $0x8] sm:$0xff] %vm650_vm4, %v1830_v47 }
 0x493 PF: > { %s18_s27 = sadd.s32 1, %s2217_s27  }
 0x494   : > { %p15_p5 = scmp.ge.s32.totalorder %s18_s27, 4  }
 0x496   :  { %17 = sbr.rel (!%p15_p5) target bundleno = 1 (0x1), region = 82 }

</bundles_post_ra>
